<compile_context>
chip_gen: v7x
topology: tpu7x:2x2x1
jax: 0.10.0
libtpu: 0.0.40
codegen_flags: <defaults>
</compile_context>

<pallas_src>
import functools

import jax
import jax.numpy as jnp
from jax.experimental import pallas as pl
from jax.experimental.pallas import tpu as pltpu

BN_EPS = 1e-5
_HIGHEST = jax.lax.Precision.HIGHEST


# --------------------- kernel 1: MaxPool3d(2) + pad writer -------------------
def _pool_pad_kernel(xe_ref, xo_ref, o_ref, *, Ho, Wo, Cin, Dp):
    dp = pl.program_id(1)
    o_ref[...] = jnp.zeros_like(o_ref)                      # zero border / planes

    @pl.when(jnp.logical_and(dp >= 1, dp <= Dp - 2))
    def _():
        m = jnp.maximum(xe_ref[...], xo_ref[...])           # (Ho, 2, Wo, 2*Cin)
        m = jnp.max(m, axis=1)                              # pool H   -> (Ho, Wo, 2*Cin)
        m = jnp.maximum(m[..., :Cin], m[..., Cin:])         # pool W   -> (Ho, Wo, Cin)
        o_ref[1:Ho + 1, 1:Wo + 1, :] = m.astype(o_ref.dtype)


def maxpool3d_padded(x_ndhwc):
    """2x2x2/stride-2 max pool, written straight into a zero-bordered
    (N, Do+2, Ho+2, Wo+2, C) layout (the padding conv1 needs)."""
    N, D, H, W, C = x_ndhwc.shape
    Do, Ho, Wo = D // 2, H // 2, W // 2
    Dp, Hp, Wp = Do + 2, Ho + 2, Wo + 2
    # free reshapes: split H/W into (coarse, parity), pack (w-parity, C), merge N,D
    xr = x_ndhwc.reshape(N * D, Ho, 2, Wo, 2 * C)

    def in_map(parity):
        def m(n, dp):
            return (n * D + jnp.clip(2 * dp - 2 + parity, 0, D - 1), 0, 0, 0, 0)
        return m

    kern = functools.partial(_pool_pad_kernel, Ho=Ho, Wo=Wo, Cin=C, Dp=Dp)
    return pl.pallas_call(
        kern,
        out_shape=jax.ShapeDtypeStruct((N, Dp, Hp, Wp, C), x_ndhwc.dtype),
        grid=(N, Dp),
        in_specs=[pl.BlockSpec((None, Ho, 2, Wo, 2 * C), in_map(0)),
                  pl.BlockSpec((None, Ho, 2, Wo, 2 * C), in_map(1))],
        out_specs=pl.BlockSpec((None, None, Hp, Wp, C),
                               lambda n, dp: (n, dp, 0, 0, 0)),
        compiler_params=pltpu.CompilerParams(
            dimension_semantics=("parallel", "parallel")),
    )(xr, xr)


# ---------- kernel 2: conv3x3x3 + bias, padded output, BN partial stats ------
def _conv_pad_stats_kernel(x0_ref, x1_ref, x2_ref, B_ref, bias_ref, S_ref,
                           o_ref, st_ref, *, Ho, Wo, Cout, Dp):
    dp = pl.program_id(1)

    @pl.when(dp == 0)
    def _():
        st_ref[...] = jnp.zeros_like(st_ref)                # per-batch stats init

    o_ref[...] = jnp.zeros_like(o_ref)                      # zero border / planes

    @pl.when(jnp.logical_and(dp >= 1, dp <= Dp - 2))
    def _():
        planes = (x0_ref[...], x1_ref[...], x2_ref[...])    # (Hp, Wp*Cin) each
        acc = jnp.zeros((Ho, Wo * Cout), jnp.float32)
        for kd in range(3):
            p = planes[kd]
            for kh in range(3):
                acc = acc + jnp.dot(p[kh:kh + Ho, :], B_ref[kd * 3 + kh],
                                    preferred_element_type=jnp.float32,
                                    precision=_HIGHEST)
        acc = acc + bias_ref[...]
        o_ref[1:Ho + 1, Cout:Cout + Wo * Cout] = acc.astype(o_ref.dtype)
        # single-traversal BN stats: per-channel sum and sum-of-squares
        srow = jnp.sum(acc, axis=0, keepdims=True)
        qrow = jnp.sum(acc * acc, axis=0, keepdims=True)
        st_ref[0:1, :] = st_ref[0:1, :] + jnp.dot(
            srow, S_ref[...], preferred_element_type=jnp.float32, precision=_HIGHEST)
        st_ref[1:2, :] = st_ref[1:2, :] + jnp.dot(
            qrow, S_ref[...], preferred_element_type=jnp.float32, precision=_HIGHEST)


def conv3d_pad_stats(xp, Bmat, bias_p, S, Cout):
    # xp: (N, Dp, Hp, Wp*Cin) zero-padded packed input
    N, Dp, Hp, WpCin = xp.shape
    Ho = Hp - 2
    Wo = Bmat.shape[2] // Cout
    Wp = Wo + 2
    assert Bmat.shape[1] == WpCin

    def x_map(kd):
        def m(n, dp):
            return (n, jnp.clip(dp - 1 + kd, 0, Dp - 1), 0, 0)
        return m

    kern = functools.partial(_conv_pad_stats_kernel, Ho=Ho, Wo=Wo, Cout=Cout, Dp=Dp)
    return pl.pallas_call(
        kern,
        out_shape=(jax.ShapeDtypeStruct((N, Dp, Hp, Wp * Cout), jnp.float32),
                   jax.ShapeDtypeStruct((N, 2, Cout), jnp.float32)),
        grid=(N, Dp),
        in_specs=[pl.BlockSpec((None, None, Hp, WpCin), x_map(0)),
                  pl.BlockSpec((None, None, Hp, WpCin), x_map(1)),
                  pl.BlockSpec((None, None, Hp, WpCin), x_map(2)),
                  pl.BlockSpec(Bmat.shape, lambda n, dp: (0, 0, 0)),     # resident
                  pl.BlockSpec(bias_p.shape, lambda n, dp: (0, 0)),      # resident
                  pl.BlockSpec(S.shape, lambda n, dp: (0, 0))],          # resident
        out_specs=(pl.BlockSpec((None, None, Hp, Wp * Cout),
                                lambda n, dp: (n, dp, 0, 0)),
                   pl.BlockSpec((None, 2, Cout), lambda n, dp: (n, 0, 0))),
        compiler_params=pltpu.CompilerParams(
            dimension_semantics=("parallel", "arbitrary")),
    )(xp, xp, xp, Bmat, bias_p, S)


# -------- kernel 3: fused BN1-affine+ReLU -> conv3x3x3 + bias + BN2 stats ----
def _bnrelu_conv_stats_kernel(x0_ref, x1_ref, x2_ref, a_ref, b_ref,
                              B_ref, bias_ref, S_ref, o_ref, st_ref,
                              *, Ho, Wo, Cout, Do):
    d = pl.program_id(1)

    @pl.when(d == 0)
    def _():
        st_ref[...] = jnp.zeros_like(st_ref)

    refs = (x0_ref, x1_ref, x2_ref)
    a = a_ref[...]                                           # (Hp, Wp*Cmid), pre-masked
    b = b_ref[...]
    acc = jnp.zeros((Ho, Wo * Cout), jnp.float32)
    for kd in range(3):
        # BN1 affine + ReLU applied on the fly; H/W padding is already zeroed
        # because a/b carry the interior mask (mask in {0,1} commutes with ReLU).
        p = jnp.maximum(refs[kd][...] * a + b, 0.0)
        # D-padding planes can only come from the first / last depth tap.
        if kd == 0:
            p = p * (d >= 1).astype(jnp.float32)
        elif kd == 2:
            p = p * (d <= Do - 2).astype(jnp.float32)
        for kh in range(3):
            acc = acc + jnp.dot(p[kh:kh + Ho, :], B_ref[kd * 3 + kh],
                                preferred_element_type=jnp.float32,
                                precision=_HIGHEST)
    acc = acc + bias_ref[...]
    o_ref[...] = acc.astype(o_ref.dtype)
    srow = jnp.sum(acc, axis=0, keepdims=True)
    qrow = jnp.sum(acc * acc, axis=0, keepdims=True)
    st_ref[0:1, :] = st_ref[0:1, :] + jnp.dot(
        srow, S_ref[...], preferred_element_type=jnp.float32, precision=_HIGHEST)
    st_ref[1:2, :] = st_ref[1:2, :] + jnp.dot(
        qrow, S_ref[...], preferred_element_type=jnp.float32, precision=_HIGHEST)


def bnrelu_conv3d_stats(y1p, a_p, b_p, Bmat, bias_p, S, Cout):
    N, Dp, Hp, WpCin = y1p.shape
    Do, Ho = Dp - 2, Hp - 2
    Wo = Bmat.shape[2] // Cout
    assert Bmat.shape[1] == WpCin

    def x_map(kd):
        def m(n, d):
            return (n, d + kd, 0, 0)
        return m

    kern = functools.partial(_bnrelu_conv_stats_kernel, Ho=Ho, Wo=Wo, Cout=Cout, Do=Do)
    return pl.pallas_call(
        kern,
        out_shape=(jax.ShapeDtypeStruct((N, Do, Ho, Wo * Cout), jnp.float32),
                   jax.ShapeDtypeStruct((N, 2, Cout), jnp.float32)),
        grid=(N, Do),
        in_specs=[pl.BlockSpec((None, None, Hp, WpCin), x_map(0)),
                  pl.BlockSpec((None, None, Hp, WpCin), x_map(1)),
                  pl.BlockSpec((None, None, Hp, WpCin), x_map(2)),
                  pl.BlockSpec(a_p.shape, lambda n, d: (0, 0)),          # resident
                  pl.BlockSpec(b_p.shape, lambda n, d: (0, 0)),          # resident
                  pl.BlockSpec(Bmat.shape, lambda n, d: (0, 0, 0)),      # resident
                  pl.BlockSpec(bias_p.shape, lambda n, d: (0, 0)),       # resident
                  pl.BlockSpec(S.shape, lambda n, d: (0, 0))],           # resident
        out_specs=(pl.BlockSpec((None, None, Ho, Wo * Cout),
                                lambda n, d: (n, d, 0, 0)),
                   pl.BlockSpec((None, 2, Cout), lambda n, d: (n, 0, 0))),
        compiler_params=pltpu.CompilerParams(
            dimension_semantics=("parallel", "arbitrary")),
    )(y1p, y1p, y1p, a_p, b_p, Bmat, bias_p, S)


# --------------------- kernel 4: BN2 affine + ReLU epilogue ------------------
def _affine_relu_kernel(y_ref, a_ref, b_ref, o_ref):
    o_ref[...] = jnp.maximum(y_ref[...] * a_ref[...] + b_ref[...],
                             0.0).astype(o_ref.dtype)


def affine_relu(y, a_p, b_p):
    N, Do, Ho, WC = y.shape
    return pl.pallas_call(
        _affine_relu_kernel,
        out_shape=jax.ShapeDtypeStruct(y.shape, jnp.float32),
        grid=(N, Do),
        in_specs=[pl.BlockSpec((None, None, Ho, WC), lambda n, d: (n, d, 0, 0)),
                  pl.BlockSpec(a_p.shape, lambda n, d: (0, 0)),
                  pl.BlockSpec(b_p.shape, lambda n, d: (0, 0))],
        out_specs=pl.BlockSpec((None, None, Ho, WC), lambda n, d: (n, d, 0, 0)),
        compiler_params=pltpu.CompilerParams(
            dimension_semantics=("parallel", "parallel")),
    )(y, a_p, b_p)


# ------------------------------ weight packing -------------------------------
def _band_weight_matrix(w, Wo):
    # w: (Cout, Cin, 3, 3, 3) PyTorch layout -> (9, (Wo+2)*Cin, Wo*Cout)
    # B[(kd*3+kh), w_in*Cin+ci, w_out*Cout+co] = w[co,ci,kd,kh,w_in-w_out] (band)
    Cout, Cin = w.shape[0], w.shape[1]
    Wp = Wo + 2
    wt = jnp.transpose(w, (2, 3, 4, 1, 0)).astype(jnp.float32)      # (kd,kh,kw,Cin,Cout)
    shift = jnp.arange(Wp)[None, :, None] - jnp.arange(Wo)[None, None, :]
    onehot = (shift == jnp.arange(3)[:, None, None]).astype(jnp.float32)  # (3,Wp,Wo)
    B = jnp.einsum('abkic,kwo->abwioc', wt, onehot, precision=_HIGHEST)
    return B.reshape(9, Wp * Cin, Wo * Cout)


def _channel_sum_matrix(C, Wo):
    # maps a (1, Wo*C) lane-packed row-sum to per-channel sums: (Wo*C, C)
    return jnp.tile(jnp.eye(C, dtype=jnp.float32), (Wo, 1))


def _bn_affine(stats, gamma, beta, count):
    s = jnp.sum(stats, axis=0)                 # (2, C): [sum, sumsq] over batch
    mean = s[0] / count
    var = s[1] / count - mean * mean           # biased variance (E[x^2]-mean^2)
    a = gamma * jax.lax.rsqrt(var + BN_EPS)
    b = beta - mean * a
    return a, b


# --------------------------------- Encoder -----------------------------------
def encoder_forward(x_ncdhw, params, down=True):
    x = jnp.transpose(x_ncdhw, (0, 2, 3, 4, 1)).astype(jnp.float32)   # -> NDHWC
    N, D, H, W, Cin = x.shape
    if down:
        y0p5 = maxpool3d_padded(x)              # (N, Do+2, Ho+2, Wo+2, Cin)
        Do, Ho, Wo = D // 2, H // 2, W // 2
    else:
        # TODO(synk): down=False path keeps an XLA pad instead of a fused writer.
        y0p5 = jnp.pad(x, ((0, 0), (1, 1), (1, 1), (1, 1), (0, 0)))
        Do, Ho, Wo = D, H, W
    Dp, Hp, Wp = Do + 2, Ho + 2, Wo + 2

    w1, b1 = params["w1"], params["b1"]
    w2, b2 = params["w2"], params["b2"]
    Cmid, Cout = w1.shape[0], w2.shape[0]
    count = float(N * Do * Ho * Wo)

    y0p = y0p5.reshape(N, Dp, Hp, Wp * Cin)     # free packing reshape

    # conv1 (+bias) -> padded packed output + per-batch BN1 partial stats
    B1 = _band_weight_matrix(w1, Wo)
    S1 = _channel_sum_matrix(Cmid, Wo)
    y1p, stats1 = conv3d_pad_stats(y0p, B1, jnp.tile(b1, Wo)[None, :], S1, Cmid)
    a1, c1 = _bn_affine(stats1, params["g1"], params["beta1"], count)

    # conv2 consumes y1p, applying BN1 affine + ReLU on load; the interior
    # (H, W) mask is folded directly into the affine tables (mask in {0,1}).
    B2 = _band_weight_matrix(w2, Wo)
    S2 = _channel_sum_matrix(Cout, Wo)
    row_in = ((jnp.arange(Hp) >= 1) & (jnp.arange(Hp) <= Ho)).astype(jnp.float32)
    col_in = jnp.repeat(((jnp.arange(Wp) >= 1) & (jnp.arange(Wp) <= Wo)
                         ).astype(jnp.float32), Cmid)
    mask = row_in[:, None] * col_in[None, :]    # (Hp, Wp*Cmid) interior mask
    a1_2d = mask * jnp.tile(a1, Wp)[None, :]
    c1_2d = mask * jnp.tile(c1, Wp)[None, :]
    y2, stats2 = bnrelu_conv3d_stats(
        y1p, a1_2d, c1_2d, B2, jnp.tile(b2, Wo)[None, :], S2, Cout)
    a2, c2 = _bn_affine(stats2, params["g2"], params["beta2"], count)

    out = affine_relu(y2, jnp.tile(a2, Wo)[None, :], jnp.tile(c2, Wo)[None, :])
    out = out.reshape(N, Do, Ho, Wo, Cout)
    return jnp.transpose(out, (0, 4, 1, 2, 3))  # NDHWC -> NCDHW


def init_params(key, in_channels, out_channels, mid_channels=None):
    if not mid_channels:
        mid_channels = out_channels if in_channels > out_channels else in_channels
    ks = jax.random.split(key, 8)

    def conv_w(k, cin, cout):
        bound = 1.0 / ((cin * 27) ** 0.5)
        return jax.random.uniform(k, (cout, cin, 3, 3, 3), jnp.float32, -bound, bound)

    return {
        "w1": conv_w(ks[0], in_channels, mid_channels),
        "b1": 0.1 * jax.random.normal(ks[1], (mid_channels,), jnp.float32),
        "g1": 1.0 + 0.1 * jax.random.normal(ks[2], (mid_channels,), jnp.float32),
        "beta1": 0.1 * jax.random.normal(ks[3], (mid_channels,), jnp.float32),
        "w2": conv_w(ks[4], mid_channels, out_channels),
        "b2": 0.1 * jax.random.normal(ks[5], (out_channels,), jnp.float32),
        "g2": 1.0 + 0.1 * jax.random.normal(ks[6], (out_channels,), jnp.float32),
        "beta2": 0.1 * jax.random.normal(ks[7], (out_channels,), jnp.float32),
    }


# ----------------------------- pure-JAX reference ----------------------------
def _reference(x, params):
    def conv_bn_relu_ref(x, w, b, g, beta):
        y = jax.lax.conv_general_dilated(
            x, w, window_strides=(1, 1, 1), padding=((1, 1), (1, 1), (1, 1)),
            dimension_numbers=("NCDHW", "OIDHW", "NCDHW"), precision=_HIGHEST)
        y = y + b[None, :, None, None, None]
        mean = jnp.mean(y, axis=(0, 2, 3, 4), keepdims=True)
        var = jnp.mean((y - mean) ** 2, axis=(0, 2, 3, 4), keepdims=True)
        y = (y - mean) * jax.lax.rsqrt(var + BN_EPS)
        y = y * g[None, :, None, None, None] + beta[None, :, None, None, None]
        return jnp.maximum(y, 0.0)

    N, C, D, H, W = x.shape
    xp = x.reshape(N, C, D // 2, 2, H // 2, 2, W // 2, 2).max(axis=(3, 5, 7))
    y = conv_bn_relu_ref(xp, params["w1"], params["b1"], params["g1"], params["beta1"])
    y = conv_bn_relu_ref(y, params["w2"], params["b2"], params["g2"], params["beta2"])
    return y


if __name__ == "__main__":
    key = jax.random.PRNGKey(0)
    kx, kp = jax.random.split(key)

    N, Cin, D, H, W = 2, 4, 16, 16, 16
    Cout = 8

    x = jax.random.normal(kx, (N, Cin, D, H, W), jnp.float32)
    params = init_params(kp, Cin, Cout)

    fwd = jax.jit(functools.partial(encoder_forward, down=True))
    y = jax.block_until_ready(fwd(x, params))
    assert y.shape == (N, Cout, D // 2, H // 2, W // 2), y.shape

    y_ref = jax.block_until_ready(_reference(x, params))
    err = float(jnp.max(jnp.abs(y - y_ref)))
    assert jnp.allclose(y, y_ref, atol=5e-3, rtol=5e-3), err

    print("KERNEL_OK")
</pallas_src>

<mosaic_0001>
module attributes {stable_mosaic.version = 11 : i64} {
  func.func @_pool_pad_kernel(%arg0: i32, %arg1: i32, %arg2: memref<1x8x2x8x8xf32, #tpu.memory_space<vmem>>, %arg3: memref<1x8x2x8x8xf32, #tpu.memory_space<vmem>>, %arg4: memref<1x1x10x10x4xf32, #tpu.memory_space<vmem>>) attributes {dimension_semantics = [#tpu.dimension_semantics<parallel>, #tpu.dimension_semantics<parallel>], iteration_bounds = array<i64: 2, 10>, scalar_prefetch = 0 : i64, scratch_operands = 0 : i64, tpu.core_type = #tpu.core_type<tc>, window_params = [{transform_indices = @transform_0, window_bounds = array<i64: 1, 8, 2, 8, 8>}, {transform_indices = @transform_1, window_bounds = array<i64: 1, 8, 2, 8, 8>}, {transform_indices = @transform_2, window_bounds = array<i64: 1, 1, 10, 10, 4>}]} {
    %cst = arith.constant 0.000000e+00 : f32
    %0 = vector.broadcast %cst : f32 to vector<10x10x4xf32>
    %c0 = arith.constant 0 : index
    %c0_0 = arith.constant 0 : index
    %c0_1 = arith.constant 0 : index
    %c0_2 = arith.constant 0 : index
    %c0_3 = arith.constant 0 : index
    %1 = vector.load %arg4[%c0, %c0_0, %c0_1, %c0_2, %c0_3] : memref<1x1x10x10x4xf32, #tpu.memory_space<vmem>>, vector<1x1x10x10x4xf32>
    %2 = vector.shape_cast %1 : vector<1x1x10x10x4xf32> to vector<10x10x4xf32>
    %3 = vector.shape_cast %0 : vector<10x10x4xf32> to vector<1x1x10x10x4xf32>
    tpu.vector_store %arg4[%c0, %c0_0, %c0_1, %c0_2, %c0_3], %3 {strides = array<i32>} : memref<1x1x10x10x4xf32, #tpu.memory_space<vmem>>, vector<1x1x10x10x4xf32>,
    %c1_i32 = arith.constant 1 : i32
    %4 = arith.cmpi sge, %arg1, %c1_i32 : i32
    %c8_i32 = arith.constant 8 : i32
    %5 = arith.cmpi sle, %arg1, %c8_i32 : i32
    %6 = arith.andi %4, %5 : i1
    %7 = arith.extui %6 : i1 to i32
    %c0_i32 = arith.constant 0 : i32
    %8 = arith.cmpi ne, %7, %c0_i32 : i32
    scf.if %8 {
      %c0_4 = arith.constant 0 : index
      %c0_5 = arith.constant 0 : index
      %c0_6 = arith.constant 0 : index
      %c0_7 = arith.constant 0 : index
      %c0_8 = arith.constant 0 : index
      %9 = vector.load %arg2[%c0_4, %c0_5, %c0_6, %c0_7, %c0_8] : memref<1x8x2x8x8xf32, #tpu.memory_space<vmem>>, vector<1x8x2x8x8xf32>
      %10 = vector.shape_cast %9 : vector<1x8x2x8x8xf32> to vector<8x2x8x8xf32>
      %c0_9 = arith.constant 0 : index
      %c0_10 = arith.constant 0 : index
      %c0_11 = arith.constant 0 : index
      %c0_12 = arith.constant 0 : index
      %c0_13 = arith.constant 0 : index
      %11 = vector.load %arg3[%c0_9, %c0_10, %c0_11, %c0_12, %c0_13] : memref<1x8x2x8x8xf32, #tpu.memory_space<vmem>>, vector<1x8x2x8x8xf32>
      %12 = vector.shape_cast %11 : vector<1x8x2x8x8xf32> to vector<8x2x8x8xf32>
      %13 = arith.maximumf %10, %12 : vector<8x2x8x8xf32>
      %cst_14 = arith.constant dense<0xFF800000> : vector<8x8x8xf32>
      %14 = vector.multi_reduction <maximumf>, %13, %cst_14 [1] : vector<8x2x8x8xf32> to vector<8x8x8xf32>
      %15 = vector.extract_strided_slice %14 {offsets = [0, 0, 0], sizes = [8, 8, 4], strides = [1, 1, 1]} : vector<8x8x8xf32> to vector<8x8x4xf32>
      %16 = vector.extract_strided_slice %14 {offsets = [0, 0, 4], sizes = [8, 8, 4], strides = [1, 1, 1]} : vector<8x8x8xf32> to vector<8x8x4xf32>
      %17 = arith.maximumf %15, %16 : vector<8x8x4xf32>
      %c0_15 = arith.constant 0 : index
      %c0_16 = arith.constant 0 : index
      %c1 = arith.constant 1 : index
      %c1_17 = arith.constant 1 : index
      %c0_18 = arith.constant 0 : index
      %18 = vector.load %arg4[%c0_15, %c0_16, %c1, %c1_17, %c0_18] : memref<1x1x10x10x4xf32, #tpu.memory_space<vmem>>, vector<1x1x8x8x4xf32>
      %19 = vector.shape_cast %18 : vector<1x1x8x8x4xf32> to vector<8x8x4xf32>
      %20 = vector.shape_cast %17 : vector<8x8x4xf32> to vector<1x1x8x8x4xf32>
      tpu.vector_store %arg4[%c0_15, %c0_16, %c1, %c1_17, %c0_18], %20 {strides = array<i32>} : memref<1x1x10x10x4xf32, #tpu.memory_space<vmem>>, vector<1x1x8x8x4xf32>,
    } else {
    }
    return
  }
  func.func @transform_0(%arg0: i32, %arg1: i32) -> (i32, i32, i32, i32, i32) {
    %c16_i32 = arith.constant 16 : i32
    %0 = arith.muli %arg0, %c16_i32 : i32
    %c2_i32 = arith.constant 2 : i32
    %1 = arith.muli %c2_i32, %arg1 : i32
    %c2_i32_0 = arith.constant 2 : i32
    %2 = arith.subi %1, %c2_i32_0 : i32
    %c0_i32 = arith.constant 0 : i32
    %3 = arith.addi %2, %c0_i32 : i32
    %c0_i32_1 = arith.constant 0 : i32
    %c15_i32 = arith.constant 15 : i32
    %4 = arith.maxsi %c0_i32_1, %3 : i32
    %5 = arith.minsi %c15_i32, %4 : i32
    %6 = arith.addi %0, %5 : i32
    %c0_i32_2 = arith.constant 0 : i32
    %c0_i32_3 = arith.constant 0 : i32
    %c0_i32_4 = arith.constant 0 : i32
    %c0_i32_5 = arith.constant 0 : i32
    %c0_i32_6 = arith.constant 0 : i32
    return %6, %c0_i32_2, %c0_i32_3, %c0_i32_4, %c0_i32_5 : i32, i32, i32, i32, i32
  }
  func.func @transform_1(%arg0: i32, %arg1: i32) -> (i32, i32, i32, i32, i32) {
    %c16_i32 = arith.constant 16 : i32
    %0 = arith.muli %arg0, %c16_i32 : i32
    %c2_i32 = arith.constant 2 : i32
    %1 = arith.muli %c2_i32, %arg1 : i32
    %c2_i32_0 = arith.constant 2 : i32
    %2 = arith.subi %1, %c2_i32_0 : i32
    %c1_i32 = arith.constant 1 : i32
    %3 = arith.addi %2, %c1_i32 : i32
    %c0_i32 = arith.constant 0 : i32
    %c15_i32 = arith.constant 15 : i32
    %4 = arith.maxsi %c0_i32, %3 : i32
    %5 = arith.minsi %c15_i32, %4 : i32
    %6 = arith.addi %0, %5 : i32
    %c0_i32_1 = arith.constant 0 : i32
    %c0_i32_2 = arith.constant 0 : i32
    %c0_i32_3 = arith.constant 0 : i32
    %c0_i32_4 = arith.constant 0 : i32
    %c0_i32_5 = arith.constant 0 : i32
    return %6, %c0_i32_1, %c0_i32_2, %c0_i32_3, %c0_i32_4 : i32, i32, i32, i32, i32
  }
  func.func @transform_2(%arg0: i32, %arg1: i32) -> (i32, i32, i32, i32, i32) {
    %c0_i32 = arith.constant 0 : i32
    %c0_i32_0 = arith.constant 0 : i32
    %c0_i32_1 = arith.constant 0 : i32
    %c0_i32_2 = arith.constant 0 : i32
    return %arg0, %arg1, %c0_i32, %c0_i32_0, %c0_i32_1 : i32, i32, i32, i32, i32
  }
}

module attributes {stable_mosaic.version = 11 : i64} {
  func.func @_conv_pad_stats_kernel(%arg0: i32, %arg1: i32, %arg2: memref<1x1x10x40xf32, #tpu.memory_space<vmem>>, %arg3: memref<1x1x10x40xf32, #tpu.memory_space<vmem>>, %arg4: memref<1x1x10x40xf32, #tpu.memory_space<vmem>>, %arg5: memref<9x40x32xf32, #tpu.memory_space<vmem>>, %arg6: memref<1x32xf32, #tpu.memory_space<vmem>>, %arg7: memref<32x4xf32, #tpu.memory_space<vmem>>, %arg8: memref<1x1x10x40xf32, #tpu.memory_space<vmem>>, %arg9: memref<1x2x4xf32, #tpu.memory_space<vmem>>) attributes {dimension_semantics = [#tpu.dimension_semantics<parallel>, #tpu.dimension_semantics<arbitrary>], iteration_bounds = array<i64: 2, 10>, scalar_prefetch = 0 : i64, scratch_operands = 0 : i64, tpu.core_type = #tpu.core_type<tc>, window_params = [{transform_indices = @transform_0, window_bounds = array<i64: 1, 1, 10, 40>}, {transform_indices = @transform_1, window_bounds = array<i64: 1, 1, 10, 40>}, {transform_indices = @transform_2, window_bounds = array<i64: 1, 1, 10, 40>}, {pipeline_mode = #tpu.pipeline_mode<synchronous>, transform_indices = @transform_3, window_bounds = array<i64: 9, 40, 32>}, {pipeline_mode = #tpu.pipeline_mode<synchronous>, transform_indices = @transform_4, window_bounds = array<i64: 1, 32>}, {pipeline_mode = #tpu.pipeline_mode<synchronous>, transform_indices = @transform_5, window_bounds = array<i64: 32, 4>}, {transform_indices = @transform_6, window_bounds = array<i64: 1, 1, 10, 40>}, {transform_indices = @transform_7, window_bounds = array<i64: 1, 2, 4>}]} {
    %c0_i32 = arith.constant 0 : i32
    %0 = arith.cmpi eq, %arg1, %c0_i32 : i32
    %1 = arith.extui %0 : i1 to i32
    %c0_i32_0 = arith.constant 0 : i32
    %2 = arith.cmpi ne, %1, %c0_i32_0 : i32
    scf.if %2 {
      %cst_5 = arith.constant 0.000000e+00 : f32
      %12 = vector.broadcast %cst_5 : f32 to vector<2x4xf32>
      %c0_6 = arith.constant 0 : index
      %c0_7 = arith.constant 0 : index
      %c0_8 = arith.constant 0 : index
      %13 = vector.load %arg9[%c0_6, %c0_7, %c0_8] : memref<1x2x4xf32, #tpu.memory_space<vmem>>, vector<1x2x4xf32>
      %14 = vector.shape_cast %13 : vector<1x2x4xf32> to vector<2x4xf32>
      %15 = vector.shape_cast %12 : vector<2x4xf32> to vector<1x2x4xf32>
      tpu.vector_store %arg9[%c0_6, %c0_7, %c0_8], %15 {strides = array<i32>} : memref<1x2x4xf32, #tpu.memory_space<vmem>>, vector<1x2x4xf32>,
    } else {
    }
    %cst = arith.constant 0.000000e+00 : f32
    %3 = vector.broadcast %cst : f32 to vector<10x40xf32>
    %c0 = arith.constant 0 : index
    %c0_1 = arith.constant 0 : index
    %c0_2 = arith.constant 0 : index
    %c0_3 = arith.constant 0 : index
    %4 = vector.load %arg8[%c0, %c0_1, %c0_2, %c0_3] : memref<1x1x10x40xf32, #tpu.memory_space<vmem>>, vector<1x1x10x40xf32>
    %5 = vector.shape_cast %4 : vector<1x1x10x40xf32> to vector<10x40xf32>
    %6 = vector.shape_cast %3 : vector<10x40xf32> to vector<1x1x10x40xf32>
    tpu.vector_store %arg8[%c0, %c0_1, %c0_2, %c0_3], %6 {strides = array<i32>} : memref<1x1x10x40xf32, #tpu.memory_space<vmem>>, vector<1x1x10x40xf32>,
    %c1_i32 = arith.constant 1 : i32
    %7 = arith.cmpi sge, %arg1, %c1_i32 : i32
    %c8_i32 = arith.constant 8 : i32
    %8 = arith.cmpi sle, %arg1, %c8_i32 : i32
    %9 = arith.andi %7, %8 : i1
    %10 = arith.extui %9 : i1 to i32
    %c0_i32_4 = arith.constant 0 : i32
    %11 = arith.cmpi ne, %10, %c0_i32_4 : i32
    scf.if %11 {
      %c0_5 = arith.constant 0 : index
      %c0_6 = arith.constant 0 : index
      %c0_7 = arith.constant 0 : index
      %c0_8 = arith.constant 0 : index
      %12 = vector.load %arg2[%c0_5, %c0_6, %c0_7, %c0_8] : memref<1x1x10x40xf32, #tpu.memory_space<vmem>>, vector<1x1x10x40xf32>
      %13 = vector.shape_cast %12 : vector<1x1x10x40xf32> to vector<10x40xf32>
      %c0_9 = arith.constant 0 : index
      %c0_10 = arith.constant 0 : index
      %c0_11 = arith.constant 0 : index
      %c0_12 = arith.constant 0 : index
      %14 = vector.load %arg3[%c0_9, %c0_10, %c0_11, %c0_12] : memref<1x1x10x40xf32, #tpu.memory_space<vmem>>, vector<1x1x10x40xf32>
      %15 = vector.shape_cast %14 : vector<1x1x10x40xf32> to vector<10x40xf32>
      %c0_13 = arith.constant 0 : index
      %c0_14 = arith.constant 0 : index
      %c0_15 = arith.constant 0 : index
      %c0_16 = arith.constant 0 : index
      %16 = vector.load %arg4[%c0_13, %c0_14, %c0_15, %c0_16] : memref<1x1x10x40xf32, #tpu.memory_space<vmem>>, vector<1x1x10x40xf32>
      %17 = vector.shape_cast %16 : vector<1x1x10x40xf32> to vector<10x40xf32>
      %cst_17 = arith.constant 0.000000e+00 : f32
      %18 = vector.broadcast %cst_17 : f32 to vector<8x32xf32>
      %19 = vector.extract_strided_slice %13 {offsets = [0, 0], sizes = [8, 40], strides = [1, 1]} : vector<10x40xf32> to vector<8x40xf32>
      %c0_18 = arith.constant 0 : index
      %c0_19 = arith.constant 0 : index
      %c0_20 = arith.constant 0 : index
      %20 = vector.load %arg5[%c0_18, %c0_19, %c0_20] : memref<9x40x32xf32, #tpu.memory_space<vmem>>, vector<1x40x32xf32>
      %21 = vector.shape_cast %20 : vector<1x40x32xf32> to vector<40x32xf32>
      %cst_21 = arith.constant dense<0.000000e+00> : vector<8x32xf32>
      %22 = tpu.matmul %19, %21, %cst_21 {dimension_numbers = #tpu.dot_dimension_numbers<[1], [0], [0], [1], [0, 0, 1, 1], [], []>, precision = #tpu.contract_precision<fp32>} : vector<8x40xf32>, vector<40x32xf32>, vector<8x32xf32> -> vector<8x32xf32>
      %23 = arith.addf %18, %22 : vector<8x32xf32>
      %24 = vector.extract_strided_slice %13 {offsets = [1, 0], sizes = [8, 40], strides = [1, 1]} : vector<10x40xf32> to vector<8x40xf32>
      %c1 = arith.constant 1 : index
      %c0_22 = arith.constant 0 : index
      %c0_23 = arith.constant 0 : index
      %25 = vector.load %arg5[%c1, %c0_22, %c0_23] : memref<9x40x32xf32, #tpu.memory_space<vmem>>, vector<1x40x32xf32>
      %26 = vector.shape_cast %25 : vector<1x40x32xf32> to vector<40x32xf32>
      %cst_24 = arith.constant dense<0.000000e+00> : vector<8x32xf32>
      %27 = tpu.matmul %24, %26, %cst_24 {dimension_numbers = #tpu.dot_dimension_numbers<[1], [0], [0], [1], [0, 0, 1, 1], [], []>, precision = #tpu.contract_precision<fp32>} : vector<8x40xf32>, vector<40x32xf32>, vector<8x32xf32> -> vector<8x32xf32>
      %28 = arith.addf %23, %27 : vector<8x32xf32>
      %29 = vector.extract_strided_slice %13 {offsets = [2, 0], sizes = [8, 40], strides = [1, 1]} : vector<10x40xf32> to vector<8x40xf32>
      %c2 = arith.constant 2 : index
      %c0_25 = arith.constant 0 : index
      %c0_26 = arith.constant 0 : index
      %30 = vector.load %arg5[%c2, %c0_25, %c0_26] : memref<9x40x32xf32, #tpu.memory_space<vmem>>, vector<1x40x32xf32>
      %31 = vector.shape_cast %30 : vector<1x40x32xf32> to vector<40x32xf32>
      %cst_27 = arith.constant dense<0.000000e+00> : vector<8x32xf32>
      %32 = tpu.matmul %29, %31, %cst_27 {dimension_numbers = #tpu.dot_dimension_numbers<[1], [0], [0], [1], [0, 0, 1, 1], [], []>, precision = #tpu.contract_precision<fp32>} : vector<8x40xf32>, vector<40x32xf32>, vector<8x32xf32> -> vector<8x32xf32>
      %33 = arith.addf %28, %32 : vector<8x32xf32>
      %34 = vector.extract_strided_slice %15 {offsets = [0, 0], sizes = [8, 40], strides = [1, 1]} : vector<10x40xf32> to vector<8x40xf32>
      %c3 = arith.constant 3 : index
      %c0_28 = arith.constant 0 : index
      %c0_29 = arith.constant 0 : index
      %35 = vector.load %arg5[%c3, %c0_28, %c0_29] : memref<9x40x32xf32, #tpu.memory_space<vmem>>, vector<1x40x32xf32>
      %36 = vector.shape_cast %35 : vector<1x40x32xf32> to vector<40x32xf32>
      %cst_30 = arith.constant dense<0.000000e+00> : vector<8x32xf32>
      %37 = tpu.matmul %34, %36, %cst_30 {dimension_numbers = #tpu.dot_dimension_numbers<[1], [0], [0], [1], [0, 0, 1, 1], [], []>, precision = #tpu.contract_precision<fp32>} : vector<8x40xf32>, vector<40x32xf32>, vector<8x32xf32> -> vector<8x32xf32>
      %38 = arith.addf %33, %37 : vector<8x32xf32>
      %39 = vector.extract_strided_slice %15 {offsets = [1, 0], sizes = [8, 40], strides = [1, 1]} : vector<10x40xf32> to vector<8x40xf32>
      %c4 = arith.constant 4 : index
      %c0_31 = arith.constant 0 : index
      %c0_32 = arith.constant 0 : index
      %40 = vector.load %arg5[%c4, %c0_31, %c0_32] : memref<9x40x32xf32, #tpu.memory_space<vmem>>, vector<1x40x32xf32>
      %41 = vector.shape_cast %40 : vector<1x40x32xf32> to vector<40x32xf32>
      %cst_33 = arith.constant dense<0.000000e+00> : vector<8x32xf32>
      %42 = tpu.matmul %39, %41, %cst_33 {dimension_numbers = #tpu.dot_dimension_numbers<[1], [0], [0], [1], [0, 0, 1, 1], [], []>, precision = #tpu.contract_precision<fp32>} : vector<8x40xf32>, vector<40x32xf32>, vector<8x32xf32> -> vector<8x32xf32>
      %43 = arith.addf %38, %42 : vector<8x32xf32>
      %44 = vector.extract_strided_slice %15 {offsets = [2, 0], sizes = [8, 40], strides = [1, 1]} : vector<10x40xf32> to vector<8x40xf32>
      %c5 = arith.constant 5 : index
      %c0_34 = arith.constant 0 : index
      %c0_35 = arith.constant 0 : index
      %45 = vector.load %arg5[%c5, %c0_34, %c0_35] : memref<9x40x32xf32, #tpu.memory_space<vmem>>, vector<1x40x32xf32>
      %46 = vector.shape_cast %45 : vector<1x40x32xf32> to vector<40x32xf32>
      %cst_36 = arith.constant dense<0.000000e+00> : vector<8x32xf32>
      %47 = tpu.matmul %44, %46, %cst_36 {dimension_numbers = #tpu.dot_dimension_numbers<[1], [0], [0], [1], [0, 0, 1, 1], [], []>, precision = #tpu.contract_precision<fp32>} : vector<8x40xf32>, vector<40x32xf32>, vector<8x32xf32> -> vector<8x32xf32>
      %48 = arith.addf %43, %47 : vector<8x32xf32>
      %49 = vector.extract_strided_slice %17 {offsets = [0, 0], sizes = [8, 40], strides = [1, 1]} : vector<10x40xf32> to vector<8x40xf32>
      %c6 = arith.constant 6 : index
      %c0_37 = arith.constant 0 : index
      %c0_38 = arith.constant 0 : index
      %50 = vector.load %arg5[%c6, %c0_37, %c0_38] : memref<9x40x32xf32, #tpu.memory_space<vmem>>, vector<1x40x32xf32>
      %51 = vector.shape_cast %50 : vector<1x40x32xf32> to vector<40x32xf32>
      %cst_39 = arith.constant dense<0.000000e+00> : vector<8x32xf32>
      %52 = tpu.matmul %49, %51, %cst_39 {dimension_numbers = #tpu.dot_dimension_numbers<[1], [0], [0], [1], [0, 0, 1, 1], [], []>, precision = #tpu.contract_precision<fp32>} : vector<8x40xf32>, vector<40x32xf32>, vector<8x32xf32> -> vector<8x32xf32>
      %53 = arith.addf %48, %52 : vector<8x32xf32>
      %54 = vector.extract_strided_slice %17 {offsets = [1, 0], sizes = [8, 40], strides = [1, 1]} : vector<10x40xf32> to vector<8x40xf32>
      %c7 = arith.constant 7 : index
      %c0_40 = arith.constant 0 : index
      %c0_41 = arith.constant 0 : index
      %55 = vector.load %arg5[%c7, %c0_40, %c0_41] : memref<9x40x32xf32, #tpu.memory_space<vmem>>, vector<1x40x32xf32>
      %56 = vector.shape_cast %55 : vector<1x40x32xf32> to vector<40x32xf32>
      %cst_42 = arith.constant dense<0.000000e+00> : vector<8x32xf32>
      %57 = tpu.matmul %54, %56, %cst_42 {dimension_numbers = #tpu.dot_dimension_numbers<[1], [0], [0], [1], [0, 0, 1, 1], [], []>, precision = #tpu.contract_precision<fp32>} : vector<8x40xf32>, vector<40x32xf32>, vector<8x32xf32> -> vector<8x32xf32>
      %58 = arith.addf %53, %57 : vector<8x32xf32>
      %59 = vector.extract_strided_slice %17 {offsets = [2, 0], sizes = [8, 40], strides = [1, 1]} : vector<10x40xf32> to vector<8x40xf32>
      %c8 = arith.constant 8 : index
      %c0_43 = arith.constant 0 : index
      %c0_44 = arith.constant 0 : index
      %60 = vector.load %arg5[%c8, %c0_43, %c0_44] : memref<9x40x32xf32, #tpu.memory_space<vmem>>, vector<1x40x32xf32>
      %61 = vector.shape_cast %60 : vector<1x40x32xf32> to vector<40x32xf32>
      %cst_45 = arith.constant dense<0.000000e+00> : vector<8x32xf32>
      %62 = tpu.matmul %59, %61, %cst_45 {dimension_numbers = #tpu.dot_dimension_numbers<[1], [0], [0], [1], [0, 0, 1, 1], [], []>, precision = #tpu.contract_precision<fp32>} : vector<8x40xf32>, vector<40x32xf32>, vector<8x32xf32> -> vector<8x32xf32>
      %63 = arith.addf %58, %62 : vector<8x32xf32>
      %c0_46 = arith.constant 0 : index
      %c0_47 = arith.constant 0 : index
      %64 = vector.load %arg6[%c0_46, %c0_47] : memref<1x32xf32, #tpu.memory_space<vmem>>, vector<1x32xf32>
      %65 = vector.broadcast %64 : vector<1x32xf32> to vector<8x32xf32>
      %66 = arith.addf %63, %65 : vector<8x32xf32>
      %c0_48 = arith.constant 0 : index
      %c0_49 = arith.constant 0 : index
      %c1_50 = arith.constant 1 : index
      %c4_51 = arith.constant 4 : index
      %67 = vector.load %arg8[%c0_48, %c0_49, %c1_50, %c4_51] : memref<1x1x10x40xf32, #tpu.memory_space<vmem>>, vector<1x1x8x32xf32>
      %68 = vector.shape_cast %67 : vector<1x1x8x32xf32> to vector<8x32xf32>
      %69 = vector.shape_cast %66 : vector<8x32xf32> to vector<1x1x8x32xf32>
      tpu.vector_store %arg8[%c0_48, %c0_49, %c1_50, %c4_51], %69 {strides = array<i32>} : memref<1x1x10x40xf32, #tpu.memory_space<vmem>>, vector<1x1x8x32xf32>,
      %cst_52 = arith.constant dense<0.000000e+00> : vector<32xf32>
      %70 = vector.multi_reduction <add>, %66, %cst_52 [0] : vector<8x32xf32> to vector<32xf32>
      %71 = vector.shape_cast %70 : vector<32xf32> to vector<1x32xf32>
      %72 = arith.mulf %66, %66 : vector<8x32xf32>
      %cst_53 = arith.constant dense<0.000000e+00> : vector<32xf32>
      %73 = vector.multi_reduction <add>, %72, %cst_53 [0] : vector<8x32xf32> to vector<32xf32>
      %74 = vector.shape_cast %73 : vector<32xf32> to vector<1x32xf32>
      %c0_54 = arith.constant 0 : index
      %c0_55 = arith.constant 0 : index
      %c0_56 = arith.constant 0 : index
      %75 = vector.load %arg9[%c0_54, %c0_55, %c0_56] : memref<1x2x4xf32, #tpu.memory_space<vmem>>, vector<1x1x4xf32>
      %76 = vector.shape_cast %75 : vector<1x1x4xf32> to vector<1x4xf32>
      %c0_57 = arith.constant 0 : index
      %c0_58 = arith.constant 0 : index
      %77 = vector.load %arg7[%c0_57, %c0_58] : memref<32x4xf32, #tpu.memory_space<vmem>>, vector<32x4xf32>
      %cst_59 = arith.constant dense<0.000000e+00> : vector<1x4xf32>
      %78 = tpu.matmul %71, %77, %cst_59 {dimension_numbers = #tpu.dot_dimension_numbers<[1], [0], [0], [1], [0, 0, 1, 1], [], []>, precision = #tpu.contract_precision<fp32>} : vector<1x32xf32>, vector<32x4xf32>, vector<1x4xf32> -> vector<1x4xf32>
      %79 = arith.addf %76, %78 : vector<1x4xf32>
      %c0_60 = arith.constant 0 : index
      %c0_61 = arith.constant 0 : index
      %c0_62 = arith.constant 0 : index
      %80 = vector.load %arg9[%c0_60, %c0_61, %c0_62] : memref<1x2x4xf32, #tpu.memory_space<vmem>>, vector<1x1x4xf32>
      %81 = vector.shape_cast %80 : vector<1x1x4xf32> to vector<1x4xf32>
      %82 = vector.shape_cast %79 : vector<1x4xf32> to vector<1x1x4xf32>
      tpu.vector_store %arg9[%c0_60, %c0_61, %c0_62], %82 {strides = array<i32>} : memref<1x2x4xf32, #tpu.memory_space<vmem>>, vector<1x1x4xf32>,
      %c0_63 = arith.constant 0 : index
      %c1_64 = arith.constant 1 : index
      %c0_65 = arith.constant 0 : index
      %83 = vector.load %arg9[%c0_63, %c1_64, %c0_65] : memref<1x2x4xf32, #tpu.memory_space<vmem>>, vector<1x1x4xf32>
      %84 = vector.shape_cast %83 : vector<1x1x4xf32> to vector<1x4xf32>
      %c0_66 = arith.constant 0 : index
      %c0_67 = arith.constant 0 : index
      %85 = vector.load %arg7[%c0_66, %c0_67] : memref<32x4xf32, #tpu.memory_space<vmem>>, vector<32x4xf32>
      %cst_68 = arith.constant dense<0.000000e+00> : vector<1x4xf32>
      %86 = tpu.matmul %74, %85, %cst_68 {dimension_numbers = #tpu.dot_dimension_numbers<[1], [0], [0], [1], [0, 0, 1, 1], [], []>, precision = #tpu.contract_precision<fp32>} : vector<1x32xf32>, vector<32x4xf32>, vector<1x4xf32> -> vector<1x4xf32>
      %87 = arith.addf %84, %86 : vector<1x4xf32>
      %c0_69 = arith.constant 0 : index
      %c1_70 = arith.constant 1 : index
      %c0_71 = arith.constant 0 : index
      %88 = vector.load %arg9[%c0_69, %c1_70, %c0_71] : memref<1x2x4xf32, #tpu.memory_space<vmem>>, vector<1x1x4xf32>
      %89 = vector.shape_cast %88 : vector<1x1x4xf32> to vector<1x4xf32>
      %90 = vector.shape_cast %87 : vector<1x4xf32> to vector<1x1x4xf32>
      tpu.vector_store %arg9[%c0_69, %c1_70, %c0_71], %90 {strides = array<i32>} : memref<1x2x4xf32, #tpu.memory_space<vmem>>, vector<1x1x4xf32>,
    } else {
    }
    return
  }
  func.func @transform_0(%arg0: i32, %arg1: i32) -> (i32, i32, i32, i32) {
    %c1_i32 = arith.constant 1 : i32
    %0 = arith.subi %arg1, %c1_i32 : i32
    %c0_i32 = arith.constant 0 : i32
    %1 = arith.addi %0, %c0_i32 : i32
    %c0_i32_0 = arith.constant 0 : i32
    %c9_i32 = arith.constant 9 : i32
    %2 = arith.maxsi %c0_i32_0, %1 : i32
    %3 = arith.minsi %c9_i32, %2 : i32
    %c0_i32_1 = arith.constant 0 : i32
    %c0_i32_2 = arith.constant 0 : i32
    %c0_i32_3 = arith.constant 0 : i32
    return %arg0, %3, %c0_i32_1, %c0_i32_2 : i32, i32, i32, i32
  }
  func.func @transform_1(%arg0: i32, %arg1: i32) -> (i32, i32, i32, i32) {
    %c1_i32 = arith.constant 1 : i32
    %0 = arith.subi %arg1, %c1_i32 : i32
    %c1_i32_0 = arith.constant 1 : i32
    %1 = arith.addi %0, %c1_i32_0 : i32
    %c0_i32 = arith.constant 0 : i32
    %c9_i32 = arith.constant 9 : i32
    %2 = arith.maxsi %c0_i32, %1 : i32
    %3 = arith.minsi %c9_i32, %2 : i32
    %c0_i32_1 = arith.constant 0 : i32
    %c0_i32_2 = arith.constant 0 : i32
    %c0_i32_3 = arith.constant 0 : i32
    return %arg0, %3, %c0_i32_1, %c0_i32_2 : i32, i32, i32, i32
  }
  func.func @transform_2(%arg0: i32, %arg1: i32) -> (i32, i32, i32, i32) {
    %c1_i32 = arith.constant 1 : i32
    %0 = arith.subi %arg1, %c1_i32 : i32
    %c2_i32 = arith.constant 2 : i32
    %1 = arith.addi %0, %c2_i32 : i32
    %c0_i32 = arith.constant 0 : i32
    %c9_i32 = arith.constant 9 : i32
    %2 = arith.maxsi %c0_i32, %1 : i32
    %3 = arith.minsi %c9_i32, %2 : i32
    %c0_i32_0 = arith.constant 0 : i32
    %c0_i32_1 = arith.constant 0 : i32
    %c0_i32_2 = arith.constant 0 : i32
    return %arg0, %3, %c0_i32_0, %c0_i32_1 : i32, i32, i32, i32
  }
  func.func @transform_3(%arg0: i32, %arg1: i32) -> (i32, i32, i32) {
    %c0_i32 = arith.constant 0 : i32
    %c0_i32_0 = arith.constant 0 : i32
    %c0_i32_1 = arith.constant 0 : i32
    %c0_i32_2 = arith.constant 0 : i32
    return %c0_i32, %c0_i32_0, %c0_i32_1 : i32, i32, i32
  }
  func.func @transform_4(%arg0: i32, %arg1: i32) -> (i32, i32) {
    %c0_i32 = arith.constant 0 : i32
    %c0_i32_0 = arith.constant 0 : i32
    %c0_i32_1 = arith.constant 0 : i32
    return %c0_i32, %c0_i32_0 : i32, i32
  }
  func.func @transform_5(%arg0: i32, %arg1: i32) -> (i32, i32) {
    %c0_i32 = arith.constant 0 : i32
    %c0_i32_0 = arith.constant 0 : i32
    %c0_i32_1 = arith.constant 0 : i32
    return %c0_i32, %c0_i32_0 : i32, i32
  }
  func.func @transform_6(%arg0: i32, %arg1: i32) -> (i32, i32, i32, i32) {
    %c0_i32 = arith.constant 0 : i32
    %c0_i32_0 = arith.constant 0 : i32
    %c0_i32_1 = arith.constant 0 : i32
    return %arg0, %arg1, %c0_i32, %c0_i32_0 : i32, i32, i32, i32
  }
  func.func @transform_7(%arg0: i32, %arg1: i32) -> (i32, i32, i32) {
    %c0_i32 = arith.constant 0 : i32
    %c0_i32_0 = arith.constant 0 : i32
    %c0_i32_1 = arith.constant 0 : i32
    return %arg0, %c0_i32, %c0_i32_0 : i32, i32, i32
  }
}

module attributes {stable_mosaic.version = 11 : i64} {
  func.func @_bnrelu_conv_stats_kernel(%arg0: i32, %arg1: i32, %arg2: memref<1x1x10x40xf32, #tpu.memory_space<vmem>>, %arg3: memref<1x1x10x40xf32, #tpu.memory_space<vmem>>, %arg4: memref<1x1x10x40xf32, #tpu.memory_space<vmem>>, %arg5: memref<10x40xf32, #tpu.memory_space<vmem>>, %arg6: memref<10x40xf32, #tpu.memory_space<vmem>>, %arg7: memref<9x40x64xf32, #tpu.memory_space<vmem>>, %arg8: memref<1x64xf32, #tpu.memory_space<vmem>>, %arg9: memref<64x8xf32, #tpu.memory_space<vmem>>, %arg10: memref<1x1x8x64xf32, #tpu.memory_space<vmem>>, %arg11: memref<1x2x8xf32, #tpu.memory_space<vmem>>) attributes {dimension_semantics = [#tpu.dimension_semantics<parallel>, #tpu.dimension_semantics<arbitrary>], iteration_bounds = array<i64: 2, 8>, scalar_prefetch = 0 : i64, scratch_operands = 0 : i64, tpu.core_type = #tpu.core_type<tc>, window_params = [{transform_indices = @transform_0, window_bounds = array<i64: 1, 1, 10, 40>}, {transform_indices = @transform_1, window_bounds = array<i64: 1, 1, 10, 40>}, {transform_indices = @transform_2, window_bounds = array<i64: 1, 1, 10, 40>}, {pipeline_mode = #tpu.pipeline_mode<synchronous>, transform_indices = @transform_3, window_bounds = array<i64: 10, 40>}, {pipeline_mode = #tpu.pipeline_mode<synchronous>, transform_indices = @transform_4, window_bounds = array<i64: 10, 40>}, {pipeline_mode = #tpu.pipeline_mode<synchronous>, transform_indices = @transform_5, window_bounds = array<i64: 9, 40, 64>}, {pipeline_mode = #tpu.pipeline_mode<synchronous>, transform_indices = @transform_6, window_bounds = array<i64: 1, 64>}, {pipeline_mode = #tpu.pipeline_mode<synchronous>, transform_indices = @transform_7, window_bounds = array<i64: 64, 8>}, {transform_indices = @transform_8, window_bounds = array<i64: 1, 1, 8, 64>}, {transform_indices = @transform_9, window_bounds = array<i64: 1, 2, 8>}]} {
    %c0_i32 = arith.constant 0 : i32
    %0 = arith.cmpi eq, %arg1, %c0_i32 : i32
    %1 = arith.extui %0 : i1 to i32
    %c0_i32_0 = arith.constant 0 : i32
    %2 = arith.cmpi ne, %1, %c0_i32_0 : i32
    scf.if %2 {
      %cst_73 = arith.constant 0.000000e+00 : f32
      %106 = vector.broadcast %cst_73 : f32 to vector<2x8xf32>
      %c0_74 = arith.constant 0 : index
      %c0_75 = arith.constant 0 : index
      %c0_76 = arith.constant 0 : index
      %107 = vector.load %arg11[%c0_74, %c0_75, %c0_76] : memref<1x2x8xf32, #tpu.memory_space<vmem>>, vector<1x2x8xf32>
      %108 = vector.shape_cast %107 : vector<1x2x8xf32> to vector<2x8xf32>
      %109 = vector.shape_cast %106 : vector<2x8xf32> to vector<1x2x8xf32>
      tpu.vector_store %arg11[%c0_74, %c0_75, %c0_76], %109 {strides = array<i32>} : memref<1x2x8xf32, #tpu.memory_space<vmem>>, vector<1x2x8xf32>,
    } else {
    }
    %c0 = arith.constant 0 : index
    %c0_1 = arith.constant 0 : index
    %3 = vector.load %arg5[%c0, %c0_1] : memref<10x40xf32, #tpu.memory_space<vmem>>, vector<10x40xf32>
    %c0_2 = arith.constant 0 : index
    %c0_3 = arith.constant 0 : index
    %4 = vector.load %arg6[%c0_2, %c0_3] : memref<10x40xf32, #tpu.memory_space<vmem>>, vector<10x40xf32>
    %cst = arith.constant 0.000000e+00 : f32
    %5 = vector.broadcast %cst : f32 to vector<8x64xf32>
    %c0_4 = arith.constant 0 : index
    %c0_5 = arith.constant 0 : index
    %c0_6 = arith.constant 0 : index
    %c0_7 = arith.constant 0 : index
    %6 = vector.load %arg2[%c0_4, %c0_5, %c0_6, %c0_7] : memref<1x1x10x40xf32, #tpu.memory_space<vmem>>, vector<1x1x10x40xf32>
    %7 = vector.shape_cast %6 : vector<1x1x10x40xf32> to vector<10x40xf32>
    %8 = arith.mulf %7, %3 : vector<10x40xf32>
    %9 = arith.addf %8, %4 : vector<10x40xf32>
    %cst_8 = arith.constant 0.000000e+00 : f32
    %10 = vector.broadcast %cst_8 : f32 to vector<10x40xf32>
    %11 = arith.maximumf %9, %10 : vector<10x40xf32>
    %c1_i32 = arith.constant 1 : i32
    %12 = arith.cmpi sge, %arg1, %c1_i32 : i32
    %13 = arith.extui %12 : i1 to i32
    %14 = arith.sitofp %13 : i32 to f32
    %15 = vector.broadcast %14 : f32 to vector<10x40xf32>
    %16 = arith.mulf %11, %15 : vector<10x40xf32>
    %17 = vector.extract_strided_slice %16 {offsets = [0, 0], sizes = [8, 40], strides = [1, 1]} : vector<10x40xf32> to vector<8x40xf32>
    %c0_9 = arith.constant 0 : index
    %c0_10 = arith.constant 0 : index
    %c0_11 = arith.constant 0 : index
    %18 = vector.load %arg7[%c0_9, %c0_10, %c0_11] : memref<9x40x64xf32, #tpu.memory_space<vmem>>, vector<1x40x64xf32>
    %19 = vector.shape_cast %18 : vector<1x40x64xf32> to vector<40x64xf32>
    %cst_12 = arith.constant dense<0.000000e+00> : vector<8x64xf32>
    %20 = tpu.matmul %17, %19, %cst_12 {dimension_numbers = #tpu.dot_dimension_numbers<[1], [0], [0], [1], [0, 0, 1, 1], [], []>, precision = #tpu.contract_precision<fp32>} : vector<8x40xf32>, vector<40x64xf32>, vector<8x64xf32> -> vector<8x64xf32>
    %21 = arith.addf %5, %20 : vector<8x64xf32>
    %22 = vector.extract_strided_slice %16 {offsets = [1, 0], sizes = [8, 40], strides = [1, 1]} : vector<10x40xf32> to vector<8x40xf32>
    %c1 = arith.constant 1 : index
    %c0_13 = arith.constant 0 : index
    %c0_14 = arith.constant 0 : index
    %23 = vector.load %arg7[%c1, %c0_13, %c0_14] : memref<9x40x64xf32, #tpu.memory_space<vmem>>, vector<1x40x64xf32>
    %24 = vector.shape_cast %23 : vector<1x40x64xf32> to vector<40x64xf32>
    %cst_15 = arith.constant dense<0.000000e+00> : vector<8x64xf32>
    %25 = tpu.matmul %22, %24, %cst_15 {dimension_numbers = #tpu.dot_dimension_numbers<[1], [0], [0], [1], [0, 0, 1, 1], [], []>, precision = #tpu.contract_precision<fp32>} : vector<8x40xf32>, vector<40x64xf32>, vector<8x64xf32> -> vector<8x64xf32>
    %26 = arith.addf %21, %25 : vector<8x64xf32>
    %27 = vector.extract_strided_slice %16 {offsets = [2, 0], sizes = [8, 40], strides = [1, 1]} : vector<10x40xf32> to vector<8x40xf32>
    %c2 = arith.constant 2 : index
    %c0_16 = arith.constant 0 : index
    %c0_17 = arith.constant 0 : index
    %28 = vector.load %arg7[%c2, %c0_16, %c0_17] : memref<9x40x64xf32, #tpu.memory_space<vmem>>, vector<1x40x64xf32>
    %29 = vector.shape_cast %28 : vector<1x40x64xf32> to vector<40x64xf32>
    %cst_18 = arith.constant dense<0.000000e+00> : vector<8x64xf32>
    %30 = tpu.matmul %27, %29, %cst_18 {dimension_numbers = #tpu.dot_dimension_numbers<[1], [0], [0], [1], [0, 0, 1, 1], [], []>, precision = #tpu.contract_precision<fp32>} : vector<8x40xf32>, vector<40x64xf32>, vector<8x64xf32> -> vector<8x64xf32>
    %31 = arith.addf %26, %30 : vector<8x64xf32>
    %c0_19 = arith.constant 0 : index
    %c0_20 = arith.constant 0 : index
    %c0_21 = arith.constant 0 : index
    %c0_22 = arith.constant 0 : index
    %32 = vector.load %arg3[%c0_19, %c0_20, %c0_21, %c0_22] : memref<1x1x10x40xf32, #tpu.memory_space<vmem>>, vector<1x1x10x40xf32>
    %33 = vector.shape_cast %32 : vector<1x1x10x40xf32> to vector<10x40xf32>
    %34 = arith.mulf %33, %3 : vector<10x40xf32>
    %35 = arith.addf %34, %4 : vector<10x40xf32>
    %cst_23 = arith.constant 0.000000e+00 : f32
    %36 = vector.broadcast %cst_23 : f32 to vector<10x40xf32>
    %37 = arith.maximumf %35, %36 : vector<10x40xf32>
    %38 = vector.extract_strided_slice %37 {offsets = [0, 0], sizes = [8, 40], strides = [1, 1]} : vector<10x40xf32> to vector<8x40xf32>
    %c3 = arith.constant 3 : index
    %c0_24 = arith.constant 0 : index
    %c0_25 = arith.constant 0 : index
    %39 = vector.load %arg7[%c3, %c0_24, %c0_25] : memref<9x40x64xf32, #tpu.memory_space<vmem>>, vector<1x40x64xf32>
    %40 = vector.shape_cast %39 : vector<1x40x64xf32> to vector<40x64xf32>
    %cst_26 = arith.constant dense<0.000000e+00> : vector<8x64xf32>
    %41 = tpu.matmul %38, %40, %cst_26 {dimension_numbers = #tpu.dot_dimension_numbers<[1], [0], [0], [1], [0, 0, 1, 1], [], []>, precision = #tpu.contract_precision<fp32>} : vector<8x40xf32>, vector<40x64xf32>, vector<8x64xf32> -> vector<8x64xf32>
    %42 = arith.addf %31, %41 : vector<8x64xf32>
    %43 = vector.extract_strided_slice %37 {offsets = [1, 0], sizes = [8, 40], strides = [1, 1]} : vector<10x40xf32> to vector<8x40xf32>
    %c4 = arith.constant 4 : index
    %c0_27 = arith.constant 0 : index
    %c0_28 = arith.constant 0 : index
    %44 = vector.load %arg7[%c4, %c0_27, %c0_28] : memref<9x40x64xf32, #tpu.memory_space<vmem>>, vector<1x40x64xf32>
    %45 = vector.shape_cast %44 : vector<1x40x64xf32> to vector<40x64xf32>
    %cst_29 = arith.constant dense<0.000000e+00> : vector<8x64xf32>
    %46 = tpu.matmul %43, %45, %cst_29 {dimension_numbers = #tpu.dot_dimension_numbers<[1], [0], [0], [1], [0, 0, 1, 1], [], []>, precision = #tpu.contract_precision<fp32>} : vector<8x40xf32>, vector<40x64xf32>, vector<8x64xf32> -> vector<8x64xf32>
    %47 = arith.addf %42, %46 : vector<8x64xf32>
    %48 = vector.extract_strided_slice %37 {offsets = [2, 0], sizes = [8, 40], strides = [1, 1]} : vector<10x40xf32> to vector<8x40xf32>
    %c5 = arith.constant 5 : index
    %c0_30 = arith.constant 0 : index
    %c0_31 = arith.constant 0 : index
    %49 = vector.load %arg7[%c5, %c0_30, %c0_31] : memref<9x40x64xf32, #tpu.memory_space<vmem>>, vector<1x40x64xf32>
    %50 = vector.shape_cast %49 : vector<1x40x64xf32> to vector<40x64xf32>
    %cst_32 = arith.constant dense<0.000000e+00> : vector<8x64xf32>
    %51 = tpu.matmul %48, %50, %cst_32 {dimension_numbers = #tpu.dot_dimension_numbers<[1], [0], [0], [1], [0, 0, 1, 1], [], []>, precision = #tpu.contract_precision<fp32>} : vector<8x40xf32>, vector<40x64xf32>, vector<8x64xf32> -> vector<8x64xf32>
    %52 = arith.addf %47, %51 : vector<8x64xf32>
    %c0_33 = arith.constant 0 : index
    %c0_34 = arith.constant 0 : index
    %c0_35 = arith.constant 0 : index
    %c0_36 = arith.constant 0 : index
    %53 = vector.load %arg4[%c0_33, %c0_34, %c0_35, %c0_36] : memref<1x1x10x40xf32, #tpu.memory_space<vmem>>, vector<1x1x10x40xf32>
    %54 = vector.shape_cast %53 : vector<1x1x10x40xf32> to vector<10x40xf32>
    %55 = arith.mulf %54, %3 : vector<10x40xf32>
    %56 = arith.addf %55, %4 : vector<10x40xf32>
    %cst_37 = arith.constant 0.000000e+00 : f32
    %57 = vector.broadcast %cst_37 : f32 to vector<10x40xf32>
    %58 = arith.maximumf %56, %57 : vector<10x40xf32>
    %c6_i32 = arith.constant 6 : i32
    %59 = arith.cmpi sle, %arg1, %c6_i32 : i32
    %60 = arith.extui %59 : i1 to i32
    %61 = arith.sitofp %60 : i32 to f32
    %62 = vector.broadcast %61 : f32 to vector<10x40xf32>
    %63 = arith.mulf %58, %62 : vector<10x40xf32>
    %64 = vector.extract_strided_slice %63 {offsets = [0, 0], sizes = [8, 40], strides = [1, 1]} : vector<10x40xf32> to vector<8x40xf32>
    %c6 = arith.constant 6 : index
    %c0_38 = arith.constant 0 : index
    %c0_39 = arith.constant 0 : index
    %65 = vector.load %arg7[%c6, %c0_38, %c0_39] : memref<9x40x64xf32, #tpu.memory_space<vmem>>, vector<1x40x64xf32>
    %66 = vector.shape_cast %65 : vector<1x40x64xf32> to vector<40x64xf32>
    %cst_40 = arith.constant dense<0.000000e+00> : vector<8x64xf32>
    %67 = tpu.matmul %64, %66, %cst_40 {dimension_numbers = #tpu.dot_dimension_numbers<[1], [0], [0], [1], [0, 0, 1, 1], [], []>, precision = #tpu.contract_precision<fp32>} : vector<8x40xf32>, vector<40x64xf32>, vector<8x64xf32> -> vector<8x64xf32>
    %68 = arith.addf %52, %67 : vector<8x64xf32>
    %69 = vector.extract_strided_slice %63 {offsets = [1, 0], sizes = [8, 40], strides = [1, 1]} : vector<10x40xf32> to vector<8x40xf32>
    %c7 = arith.constant 7 : index
    %c0_41 = arith.constant 0 : index
    %c0_42 = arith.constant 0 : index
    %70 = vector.load %arg7[%c7, %c0_41, %c0_42] : memref<9x40x64xf32, #tpu.memory_space<vmem>>, vector<1x40x64xf32>
    %71 = vector.shape_cast %70 : vector<1x40x64xf32> to vector<40x64xf32>
    %cst_43 = arith.constant dense<0.000000e+00> : vector<8x64xf32>
    %72 = tpu.matmul %69, %71, %cst_43 {dimension_numbers = #tpu.dot_dimension_numbers<[1], [0], [0], [1], [0, 0, 1, 1], [], []>, precision = #tpu.contract_precision<fp32>} : vector<8x40xf32>, vector<40x64xf32>, vector<8x64xf32> -> vector<8x64xf32>
    %73 = arith.addf %68, %72 : vector<8x64xf32>
    %74 = vector.extract_strided_slice %63 {offsets = [2, 0], sizes = [8, 40], strides = [1, 1]} : vector<10x40xf32> to vector<8x40xf32>
    %c8 = arith.constant 8 : index
    %c0_44 = arith.constant 0 : index
    %c0_45 = arith.constant 0 : index
    %75 = vector.load %arg7[%c8, %c0_44, %c0_45] : memref<9x40x64xf32, #tpu.memory_space<vmem>>, vector<1x40x64xf32>
    %76 = vector.shape_cast %75 : vector<1x40x64xf32> to vector<40x64xf32>
    %cst_46 = arith.constant dense<0.000000e+00> : vector<8x64xf32>
    %77 = tpu.matmul %74, %76, %cst_46 {dimension_numbers = #tpu.dot_dimension_numbers<[1], [0], [0], [1], [0, 0, 1, 1], [], []>, precision = #tpu.contract_precision<fp32>} : vector<8x40xf32>, vector<40x64xf32>, vector<8x64xf32> -> vector<8x64xf32>
    %78 = arith.addf %73, %77 : vector<8x64xf32>
    %c0_47 = arith.constant 0 : index
    %c0_48 = arith.constant 0 : index
    %79 = vector.load %arg8[%c0_47, %c0_48] : memref<1x64xf32, #tpu.memory_space<vmem>>, vector<1x64xf32>
    %80 = vector.broadcast %79 : vector<1x64xf32> to vector<8x64xf32>
    %81 = arith.addf %78, %80 : vector<8x64xf32>
    %c0_49 = arith.constant 0 : index
    %c0_50 = arith.constant 0 : index
    %c0_51 = arith.constant 0 : index
    %c0_52 = arith.constant 0 : index
    %82 = vector.load %arg10[%c0_49, %c0_50, %c0_51, %c0_52] : memref<1x1x8x64xf32, #tpu.memory_space<vmem>>, vector<1x1x8x64xf32>
    %83 = vector.shape_cast %82 : vector<1x1x8x64xf32> to vector<8x64xf32>
    %84 = vector.shape_cast %81 : vector<8x64xf32> to vector<1x1x8x64xf32>
    tpu.vector_store %arg10[%c0_49, %c0_50, %c0_51, %c0_52], %84 {strides = array<i32>} : memref<1x1x8x64xf32, #tpu.memory_space<vmem>>, vector<1x1x8x64xf32>,
    %cst_53 = arith.constant dense<0.000000e+00> : vector<64xf32>
    %85 = vector.multi_reduction <add>, %81, %cst_53 [0] : vector<8x64xf32> to vector<64xf32>
    %86 = vector.shape_cast %85 : vector<64xf32> to vector<1x64xf32>
    %87 = arith.mulf %81, %81 : vector<8x64xf32>
    %cst_54 = arith.constant dense<0.000000e+00> : vector<64xf32>
    %88 = vector.multi_reduction <add>, %87, %cst_54 [0] : vector<8x64xf32> to vector<64xf32>
    %89 = vector.shape_cast %88 : vector<64xf32> to vector<1x64xf32>
    %c0_55 = arith.constant 0 : index
    %c0_56 = arith.constant 0 : index
    %c0_57 = arith.constant 0 : index
    %90 = vector.load %arg11[%c0_55, %c0_56, %c0_57] : memref<1x2x8xf32, #tpu.memory_space<vmem>>, vector<1x1x8xf32>
    %91 = vector.shape_cast %90 : vector<1x1x8xf32> to vector<1x8xf32>
    %c0_58 = arith.constant 0 : index
    %c0_59 = arith.constant 0 : index
    %92 = vector.load %arg9[%c0_58, %c0_59] : memref<64x8xf32, #tpu.memory_space<vmem>>, vector<64x8xf32>
    %cst_60 = arith.constant dense<0.000000e+00> : vector<1x8xf32>
    %93 = tpu.matmul %86, %92, %cst_60 {dimension_numbers = #tpu.dot_dimension_numbers<[1], [0], [0], [1], [0, 0, 1, 1], [], []>, precision = #tpu.contract_precision<fp32>} : vector<1x64xf32>, vector<64x8xf32>, vector<1x8xf32> -> vector<1x8xf32>
    %94 = arith.addf %91, %93 : vector<1x8xf32>
    %c0_61 = arith.constant 0 : index
    %c0_62 = arith.constant 0 : index
    %c0_63 = arith.constant 0 : index
    %95 = vector.load %arg11[%c0_61, %c0_62, %c0_63] : memref<1x2x8xf32, #tpu.memory_space<vmem>>, vector<1x1x8xf32>
    %96 = vector.shape_cast %95 : vector<1x1x8xf32> to vector<1x8xf32>
    %97 = vector.shape_cast %94 : vector<1x8xf32> to vector<1x1x8xf32>
    tpu.vector_store %arg11[%c0_61, %c0_62, %c0_63], %97 {strides = array<i32>} : memref<1x2x8xf32, #tpu.memory_space<vmem>>, vector<1x1x8xf32>,
    %c0_64 = arith.constant 0 : index
    %c1_65 = arith.constant 1 : index
    %c0_66 = arith.constant 0 : index
    %98 = vector.load %arg11[%c0_64, %c1_65, %c0_66] : memref<1x2x8xf32, #tpu.memory_space<vmem>>, vector<1x1x8xf32>
    %99 = vector.shape_cast %98 : vector<1x1x8xf32> to vector<1x8xf32>
    %c0_67 = arith.constant 0 : index
    %c0_68 = arith.constant 0 : index
    %100 = vector.load %arg9[%c0_67, %c0_68] : memref<64x8xf32, #tpu.memory_space<vmem>>, vector<64x8xf32>
    %cst_69 = arith.constant dense<0.000000e+00> : vector<1x8xf32>
    %101 = tpu.matmul %89, %100, %cst_69 {dimension_numbers = #tpu.dot_dimension_numbers<[1], [0], [0], [1], [0, 0, 1, 1], [], []>, precision = #tpu.contract_precision<fp32>} : vector<1x64xf32>, vector<64x8xf32>, vector<1x8xf32> -> vector<1x8xf32>
    %102 = arith.addf %99, %101 : vector<1x8xf32>
    %c0_70 = arith.constant 0 : index
    %c1_71 = arith.constant 1 : index
    %c0_72 = arith.constant 0 : index
    %103 = vector.load %arg11[%c0_70, %c1_71, %c0_72] : memref<1x2x8xf32, #tpu.memory_space<vmem>>, vector<1x1x8xf32>
    %104 = vector.shape_cast %103 : vector<1x1x8xf32> to vector<1x8xf32>
    %105 = vector.shape_cast %102 : vector<1x8xf32> to vector<1x1x8xf32>
    tpu.vector_store %arg11[%c0_70, %c1_71, %c0_72], %105 {strides = array<i32>} : memref<1x2x8xf32, #tpu.memory_space<vmem>>, vector<1x1x8xf32>,
    return
  }
  func.func @transform_0(%arg0: i32, %arg1: i32) -> (i32, i32, i32, i32) {
    %c0_i32 = arith.constant 0 : i32
    %0 = arith.addi %arg1, %c0_i32 : i32
    %c0_i32_0 = arith.constant 0 : i32
    %c0_i32_1 = arith.constant 0 : i32
    %c0_i32_2 = arith.constant 0 : i32
    return %arg0, %0, %c0_i32_0, %c0_i32_1 : i32, i32, i32, i32
  }
  func.func @transform_1(%arg0: i32, %arg1: i32) -> (i32, i32, i32, i32) {
    %c1_i32 = arith.constant 1 : i32
    %0 = arith.addi %arg1, %c1_i32 : i32
    %c0_i32 = arith.constant 0 : i32
    %c0_i32_0 = arith.constant 0 : i32
    %c0_i32_1 = arith.constant 0 : i32
    return %arg0, %0, %c0_i32, %c0_i32_0 : i32, i32, i32, i32
  }
  func.func @transform_2(%arg0: i32, %arg1: i32) -> (i32, i32, i32, i32) {
    %c2_i32 = arith.constant 2 : i32
    %0 = arith.addi %arg1, %c2_i32 : i32
    %c0_i32 = arith.constant 0 : i32
    %c0_i32_0 = arith.constant 0 : i32
    %c0_i32_1 = arith.constant 0 : i32
    return %arg0, %0, %c0_i32, %c0_i32_0 : i32, i32, i32, i32
  }
  func.func @transform_3(%arg0: i32, %arg1: i32) -> (i32, i32) {
    %c0_i32 = arith.constant 0 : i32
    %c0_i32_0 = arith.constant 0 : i32
    %c0_i32_1 = arith.constant 0 : i32
    return %c0_i32, %c0_i32_0 : i32, i32
  }
  func.func @transform_4(%arg0: i32, %arg1: i32) -> (i32, i32) {
    %c0_i32 = arith.constant 0 : i32
    %c0_i32_0 = arith.constant 0 : i32
    %c0_i32_1 = arith.constant 0 : i32
    return %c0_i32, %c0_i32_0 : i32, i32
  }
  func.func @transform_5(%arg0: i32, %arg1: i32) -> (i32, i32, i32) {
    %c0_i32 = arith.constant 0 : i32
    %c0_i32_0 = arith.constant 0 : i32
    %c0_i32_1 = arith.constant 0 : i32
    %c0_i32_2 = arith.constant 0 : i32
    return %c0_i32, %c0_i32_0, %c0_i32_1 : i32, i32, i32
  }
  func.func @transform_6(%arg0: i32, %arg1: i32) -> (i32, i32) {
    %c0_i32 = arith.constant 0 : i32
    %c0_i32_0 = arith.constant 0 : i32
    %c0_i32_1 = arith.constant 0 : i32
    return %c0_i32, %c0_i32_0 : i32, i32
  }
  func.func @transform_7(%arg0: i32, %arg1: i32) -> (i32, i32) {
    %c0_i32 = arith.constant 0 : i32
    %c0_i32_0 = arith.constant 0 : i32
    %c0_i32_1 = arith.constant 0 : i32
    return %c0_i32, %c0_i32_0 : i32, i32
  }
  func.func @transform_8(%arg0: i32, %arg1: i32) -> (i32, i32, i32, i32) {
    %c0_i32 = arith.constant 0 : i32
    %c0_i32_0 = arith.constant 0 : i32
    %c0_i32_1 = arith.constant 0 : i32
    return %arg0, %arg1, %c0_i32, %c0_i32_0 : i32, i32, i32, i32
  }
  func.func @transform_9(%arg0: i32, %arg1: i32) -> (i32, i32, i32) {
    %c0_i32 = arith.constant 0 : i32
    %c0_i32_0 = arith.constant 0 : i32
    %c0_i32_1 = arith.constant 0 : i32
    return %arg0, %c0_i32, %c0_i32_0 : i32, i32, i32
  }
}

module attributes {stable_mosaic.version = 11 : i64} {
  func.func @_affine_relu_kernel(%arg0: i32, %arg1: i32, %arg2: memref<1x1x8x64xf32, #tpu.memory_space<vmem>>, %arg3: memref<1x64xf32, #tpu.memory_space<vmem>>, %arg4: memref<1x64xf32, #tpu.memory_space<vmem>>, %arg5: memref<1x1x8x64xf32, #tpu.memory_space<vmem>>) attributes {dimension_semantics = [#tpu.dimension_semantics<parallel>, #tpu.dimension_semantics<parallel>], iteration_bounds = array<i64: 2, 8>, scalar_prefetch = 0 : i64, scratch_operands = 0 : i64, tpu.core_type = #tpu.core_type<tc>, window_params = [{transform_indices = @transform_0, window_bounds = array<i64: 1, 1, 8, 64>}, {pipeline_mode = #tpu.pipeline_mode<synchronous>, transform_indices = @transform_1, window_bounds = array<i64: 1, 64>}, {pipeline_mode = #tpu.pipeline_mode<synchronous>, transform_indices = @transform_2, window_bounds = array<i64: 1, 64>}, {transform_indices = @transform_3, window_bounds = array<i64: 1, 1, 8, 64>}]} {
    %c0 = arith.constant 0 : index
    %c0_0 = arith.constant 0 : index
    %c0_1 = arith.constant 0 : index
    %c0_2 = arith.constant 0 : index
    %0 = vector.load %arg2[%c0, %c0_0, %c0_1, %c0_2] : memref<1x1x8x64xf32, #tpu.memory_space<vmem>>, vector<1x1x8x64xf32>
    %1 = vector.shape_cast %0 : vector<1x1x8x64xf32> to vector<8x64xf32>
    %c0_3 = arith.constant 0 : index
    %c0_4 = arith.constant 0 : index
    %2 = vector.load %arg3[%c0_3, %c0_4] : memref<1x64xf32, #tpu.memory_space<vmem>>, vector<1x64xf32>
    %3 = vector.broadcast %2 : vector<1x64xf32> to vector<8x64xf32>
    %4 = arith.mulf %1, %3 : vector<8x64xf32>
    %c0_5 = arith.constant 0 : index
    %c0_6 = arith.constant 0 : index
    %5 = vector.load %arg4[%c0_5, %c0_6] : memref<1x64xf32, #tpu.memory_space<vmem>>, vector<1x64xf32>
    %6 = vector.broadcast %5 : vector<1x64xf32> to vector<8x64xf32>
    %7 = arith.addf %4, %6 : vector<8x64xf32>
    %cst = arith.constant 0.000000e+00 : f32
    %8 = vector.broadcast %cst : f32 to vector<8x64xf32>
    %9 = arith.maximumf %7, %8 : vector<8x64xf32>
    %c0_7 = arith.constant 0 : index
    %c0_8 = arith.constant 0 : index
    %c0_9 = arith.constant 0 : index
    %c0_10 = arith.constant 0 : index
    %10 = vector.load %arg5[%c0_7, %c0_8, %c0_9, %c0_10] : memref<1x1x8x64xf32, #tpu.memory_space<vmem>>, vector<1x1x8x64xf32>
    %11 = vector.shape_cast %10 : vector<1x1x8x64xf32> to vector<8x64xf32>
    %12 = vector.shape_cast %9 : vector<8x64xf32> to vector<1x1x8x64xf32>
    tpu.vector_store %arg5[%c0_7, %c0_8, %c0_9, %c0_10], %12 {strides = array<i32>} : memref<1x1x8x64xf32, #tpu.memory_space<vmem>>, vector<1x1x8x64xf32>,
    return
  }
  func.func @transform_0(%arg0: i32, %arg1: i32) -> (i32, i32, i32, i32) {
    %c0_i32 = arith.constant 0 : i32
    %c0_i32_0 = arith.constant 0 : i32
    %c0_i32_1 = arith.constant 0 : i32
    return %arg0, %arg1, %c0_i32, %c0_i32_0 : i32, i32, i32, i32
  }
  func.func @transform_1(%arg0: i32, %arg1: i32) -> (i32, i32) {
    %c0_i32 = arith.constant 0 : i32
    %c0_i32_0 = arith.constant 0 : i32
    %c0_i32_1 = arith.constant 0 : i32
    return %c0_i32, %c0_i32_0 : i32, i32
  }
  func.func @transform_2(%arg0: i32, %arg1: i32) -> (i32, i32) {
    %c0_i32 = arith.constant 0 : i32
    %c0_i32_0 = arith.constant 0 : i32
    %c0_i32_1 = arith.constant 0 : i32
    return %c0_i32, %c0_i32_0 : i32, i32
  }
  func.func @transform_3(%arg0: i32, %arg1: i32) -> (i32, i32, i32, i32) {
    %c0_i32 = arith.constant 0 : i32
    %c0_i32_0 = arith.constant 0 : i32
    %c0_i32_1 = arith.constant 0 : i32
    return %arg0, %arg1, %c0_i32, %c0_i32_0 : i32, i32, i32, i32
  }
}

</mosaic_0001>

<bundles_post_ra>
// kernel: encoder_forward.4
= control target key start
LH: loop header
LB: loop body
LE: loop exit
PB: predicated region body
PF: predicated region fallthrough
CT: control target
= control target key end

     0   :  { %s726_s9 = smov 0   ;;  %s728_s10 = smov 0   ;;  %s920_s0 = inlined_call_operand.vmem [shape: f32[32,8,2,8,8], index: 0, kind: input, shape index: {}, may-alias: {0,1}]   ;;  %s921_s1 = inlined_call_operand.vmem [shape: f32[32,8,2,8,8], index: 1, kind: input, shape index: {}, may-alias: {0,1}]   ;;  %s922_s2 = inlined_call_operand.vmem [shape: f32[2,10,10,10,4], index: 2, kind: output, shape index: {}]  }
   0x1   :  { %s730_s11 = smov 0   ;;  %s732_s12 = smov 0  }
   0x2   :  { %s734_s13 = smov 0  }
   0x3 LB: > { %s21_s14 = sadd.s32 1, %s699_s11  ;;  %s24_s15 = sadd.s32 1, %s703_s12  ;;  %s707_s13 = sphi %s734_s13, %s12_s13   ;;  %s703_s12 = sphi %s732_s12, %s927_s12   ;;  %s699_s11 = sphi %s730_s11, %s926_s11   ;;  %s695_s10 = sphi %s728_s10, %s925_s10   ;;  %s691_s9 = sphi %s726_s9, %s924_s9  }
   0x4   : > { %p22_p0 = scmp.ge.s32.totalorder %s21_s14, 10  ;;  %p580_p1 = scmp.ge.s32.totalorder %s707_s13, 1 }
   0x5   : > { %p200_p2 = scmp.lt.s32.totalorder %s707_s13, 21 }
   0x6   : > { %s929_s14 = smov (%p22_p0, %s21_s14), 0  ;;  %s931_s15 = smov (!%p22_p0, %s24_s15), %s703_s12 }
   0x7   : > { %p201_p3 = pnand %p580_p1, %p200_p2  ;;  %p26_p4 = scmp.ge.s32.totalorder %s931_s15, 2 }
   0x8   : > { %s581_s16 = sshll.u32 (!%p201_p3), %s695_s10, 4  ;;  %s582_s17 = sshll.u32 (!%p201_p3), %s691_s9, 1  ;;  %vm298_vm0 = vcmask (!%p201_p3), 31744   ;;  %vm300_vm1 = vcmask (!%p201_p3), 25600   ;;  %v709_v0 = vmov (!%p201_p3), 0.0  }
   0x9   : > { %s933_s15 = smov (%p26_p4, %s931_s15), 0  ;;  %204 = sbr.rel (%p201_p3) target bundleno = 165 (0xa5), region = 28 }
   0xa   : > { %s583_s18 = sadd.s32 (!%p201_p3), 4294967294, %s582_s17  ;;  %s270_s19 = sadd.s32 (!%p201_p3), 4294967295, %s582_s17 }
   0xb   : > { %p250_p5 = scmp.gt.s32.totalorder (!%p201_p3), %s583_s18, 0  ;;  %p584_p6 = scmp.lt.s32.totalorder (!%p201_p3), %s583_s18, 15 }
   0xc   : > { %p271_p7 = scmp.gt.s32.totalorder (!%p201_p3), %s270_s19, 0  ;;  %p593_p8 = scmp.lt.s32.totalorder (!%p201_p3), %s270_s19, 15 }
   0xd   : > { %p289_p9 = scmp.lt.s32.totalorder (!%p201_p3), %s695_s10, 1  ;;  %p291_p12 = scmp.lt.s32.totalorder (!%p201_p3), %s691_s9, 9 }
   0xe   : > { %p320_p13 = scmp.ge.s32.totalorder (!%p201_p3), %s691_s9, 1  ;;  %p321_p0 = scmp.le.s32.totalorder (!%p201_p3), %s691_s9, 8 }
  0x10   : > { %s935_s18 = smov (!%p250_p5, %s583_s18), 0  ;;  %s937_s19 = smov (!%p271_p7, %s270_s19), 0 }
  0x11   : > { %s939_s18 = smov (!%p584_p6, %s935_s18), 15  ;;  %s941_s19 = smov (!%p593_p8, %s937_s19), 15 }
  0x12   : > { %s254_s20 = sadd.s32 %s939_s18, %s581_s16  ;;  %s275_s21 = sadd.s32 %s941_s19, %s581_s16 }
  0x13   : > { %p255_p10 = scmp.lt.s32.totalorder %s254_s20, 31  ;;  %p276_p11 = scmp.lt.s32.totalorder %s275_s21, 31 }
  0x14   : > { %s947_s10 = smov (!%p289_p9, %s695_s10), 1  ;;  %s949_s9 = smov (!%p291_p12, %s691_s9), 9 }
  0x15   : > { %s943_s20 = smov (!%p255_p10, %s254_s20), 31  ;;  %s945_s21 = smov (!%p276_p11, %s275_s21), 31 }
  0x16   : > { %s621_s22 = sshll.u32 %s943_s20, 7  ;;  %s624_s26 = sshll.u32 %s945_s21, 7 }
  0x17   : > { %s768_s25 = scalar_lea.vmem %s920_s0, %s621_s22  ;;  %s773_s29 = scalar_lea.vmem %s921_s1, %s624_s26 }
  0x18   : > { %s626_s30 = smul.u32 200, %s947_s10  ;;  %p778_p1 = pnand %p321_p0, %p320_p13 }
  0x19   : > { %s625_s4 = smul.u32 20, %s949_s9  ;;  %v330_v1 = vld [vmem:[%s768_s25 + $0x20] sm:$0xff] (!%p778_p1)  ;;  %v331_v2 = vld [vmem:[%s768_s25 + $0x28] sm:$0xff] (!%p778_p1)  ;;  %vm374_vm2 = vcmask (!%p778_p1), 64512   ;;  %v332_v11 = vld [vmem:[%s768_s25 + $0x30] sm:$0xff] (!%p778_p1)  ;;  %s710_s9 = smov (!%p778_p1), 124  }
  0x1a   : > { %v346_v3 = vld [vmem:[%s773_s29 + $0x20] sm:$0xff] (!%p778_p1)  ;;  %v347_v4 = vld [vmem:[%s773_s29 + $0x28] sm:$0xff] (!%p778_p1)  ;;  %v333_v15 = vld [vmem:[%s768_s25 + $0x38] sm:$0xff] (!%p778_p1) }
  0x1b   : > { %s295_s5 = sadd.s32 %s626_s30, %s625_s4  ;;  %v362_v5 = vmax.f32 (!%p778_p1), %v330_v1, %v346_v3  ;;  %v326_v6 = vld [vmem:[%s768_s25] sm:$0xff] (!%p778_p1)  ;;  %v327_v7 = vld [vmem:[%s768_s25 + $0x8] sm:$0xff] (!%p778_p1)  ;;  %v363_v8 = vmax.f32 (!%p778_p1), %v331_v2, %v347_v4  ;;  %v348_v16 = vld [vmem:[%s773_s29 + $0x30] sm:$0xff] (!%p778_p1) }
  0x1c   : > { %s600_s6 = sshll.u32 %s295_s5, 3  ;;  %v342_v9 = vld [vmem:[%s773_s29] sm:$0xff] (!%p778_p1)  ;;  %v343_v10 = vld [vmem:[%s773_s29 + $0x8] sm:$0xff] (!%p778_p1)  ;;  %v349_v17 = vld [vmem:[%s773_s29 + $0x38] sm:$0xff] (!%p778_p1)  ;;  %v364_v19 = vmax.f32 (!%p778_p1), %v332_v11, %v348_v16 }
  0x1d   : > { %s785_s16 = scalar_lea.vmem %s922_s2, %s600_s6  ;;  %v381_v12 = vsel (!%p778_p1), %vm374_vm2, %v362_v5, -inf  ;;  %v358_v13 = vmax.f32 (!%p778_p1), %v326_v6, %v342_v9  ;;  %v359_v14 = vmax.f32 (!%p778_p1), %v327_v7, %v343_v10  ;;  %v382_v18 = vsel (!%p778_p1), %vm374_vm2, %v363_v8, -inf  ;;  %v328_v21 = vld [vmem:[%s768_s25 + $0x10] sm:$0xff] (!%p778_p1)  ;;  %v329_v22 = vld [vmem:[%s768_s25 + $0x18] sm:$0xff] (!%p778_p1)  ;;  %v334_v37 = vld [vmem:[%s768_s25 + $0x40] sm:$0xff] (!%p778_p1) }
  0x1e   : > { %299 = vst.msk [vmem:[%s785_s16] sm:$0xff] %vm298_vm0, %v709_v0  ;;  %302 = vst.msk [vmem:[%s785_s16 + $0x10] sm:$0xff] %vm298_vm0, %v709_v0  ;;  %v365_v20 = vmax.f32 (!%p778_p1), %v333_v15, %v349_v17  ;;  %v344_v23 = vld [vmem:[%s773_s29 + $0x10] sm:$0xff] (!%p778_p1)  ;;  %v846_v24 = vmax.f32 (!%p778_p1), %v381_v12, %v382_v18  ;;  %v345_v27 = vld [vmem:[%s773_s29 + $0x18] sm:$0xff] (!%p778_p1)  ;;  %v384_v32 = vsel (!%p778_p1), %vm374_vm2, %v364_v19, -inf }
  0x1f   : > { %304 = vst.msk [vmem:[%s785_s16 + $0x20] sm:$0xff] %vm298_vm0, %v709_v0  ;;  %306 = vst.msk [vmem:[%s785_s16 + $0x30] sm:$0xff] %vm298_vm0, %v709_v0  ;;  %v375_v25 = vsel (!%p778_p1), %vm374_vm2, %v358_v13, -inf  ;;  %v376_v26 = vsel (!%p778_p1), %vm374_vm2, %v359_v14, -inf  ;;  %v360_v28 = vmax.f32 (!%p778_p1), %v328_v21, %v344_v23  ;;  %v336_v29 = vld [vmem:[%s768_s25 + $0x50] sm:$0xff] (!%p778_p1)  ;;  %v337_v30 = vld [vmem:[%s768_s25 + $0x58] sm:$0xff] (!%p778_p1)  ;;  %v361_v34 = vmax.f32 (!%p778_p1), %v329_v22, %v345_v27 }
  0x20   : > { %308 = vst.msk [vmem:[%s785_s16 + $0x40] sm:$0xff] %vm298_vm0, %v709_v0  ;;  %310 = vst.msk [vmem:[%s785_s16 + $0x50] sm:$0xff] %vm298_vm0, %v709_v0  ;;  %v377_v31 = vmax.f32 (!%p778_p1), %v375_v25, %v376_v26  ;;  %v385_v33 = vsel (!%p778_p1), %vm374_vm2, %v365_v20, -inf  ;;  %v352_v35 = vld [vmem:[%s773_s29 + $0x50] sm:$0xff] (!%p778_p1)  ;;  %v353_v36 = vld [vmem:[%s773_s29 + $0x58] sm:$0xff] (!%p778_p1) }
  0x21   : > { %312 = vst.msk [vmem:[%s785_s16 + $0x60] sm:$0xff] %vm298_vm0, %v709_v0  ;;  %314 = vst.msk [vmem:[%s785_s16 + $0x70] sm:$0xff] %vm298_vm0, %v709_v0  ;;  %325 = sbr.rel (%p778_p1) target bundleno = 165 (0xa5), region = 32  ;;  %411 = vrot.lane.b32.xlu1 (!%p778_p1), %v846_v24, %s710_s9  ;;  %v386_v38 = vmax.f32 (!%p778_p1), %v384_v32, %v385_v33  ;;  %v378_v39 = vsel (!%p778_p1), %vm374_vm2, %v360_v28, -inf  ;;  %v368_v40 = vmax.f32 (!%p778_p1), %v336_v29, %v352_v35  ;;  %v335_v42 = vld [vmem:[%s768_s25 + $0x48] sm:$0xff] (!%p778_p1)  ;;  %v379_v45 = vsel (!%p778_p1), %vm374_vm2, %v361_v34, -inf }
  0x22   : > { %316 = vst.msk [vmem:[%s785_s16 + $0x80] sm:$0xff] %vm298_vm0, %v709_v0  ;;  %318 = vst.msk [vmem:[%s785_s16 + $0x90] sm:$0xff] %vm298_vm0, %v709_v0  ;;  %v369_v41 = vmax.f32 (!%p778_p1), %v337_v30, %v353_v36  ;;  %v350_v43 = vld [vmem:[%s773_s29 + $0x40] sm:$0xff] (!%p778_p1)  ;;  %v351_v44 = vld [vmem:[%s773_s29 + $0x48] sm:$0xff] (!%p778_p1)  ;;  %v380_v51 = vmax.f32 (!%p778_p1), %v378_v39, %v379_v45 }
  0x23   : > { %301 = vst.msk [vmem:[%s785_s16 + $0x8] sm:$0x3] %vm300_vm1, %v709_v0  ;;  %303 = vst.msk [vmem:[%s785_s16 + $0x18] sm:$0x3] %vm300_vm1, %v709_v0  ;;  %407 = vrot.lane.b32.xlu0 (!%p778_p1), %v377_v31, %s710_s9  ;;  %v366_v46 = vmax.f32 (!%p778_p1), %v334_v37, %v350_v43  ;;  %v367_v47 = vmax.f32 (!%p778_p1), %v335_v42, %v351_v44  ;;  %v340_v48 = vld [vmem:[%s768_s25 + $0x70] sm:$0xff] (!%p778_p1)  ;;  %v390_v52 = vsel (!%p778_p1), %vm374_vm2, %v368_v40, -inf }
  0x24   : > { %305 = vst.msk [vmem:[%s785_s16 + $0x28] sm:$0x3] %vm300_vm1, %v709_v0  ;;  %307 = vst.msk [vmem:[%s785_s16 + $0x38] sm:$0x3] %vm300_vm1, %v709_v0  ;;  %v341_v49 = vld [vmem:[%s768_s25 + $0x78] sm:$0xff] (!%p778_p1)  ;;  %v356_v50 = vld [vmem:[%s773_s29 + $0x70] sm:$0xff] (!%p778_p1) }
  0x25   : > { %309 = vst.msk [vmem:[%s785_s16 + $0x48] sm:$0x3] %vm300_vm1, %v709_v0  ;;  %311 = vst.msk [vmem:[%s785_s16 + $0x58] sm:$0x3] %vm300_vm1, %v709_v0  ;;  %v391_v53 = vsel (!%p778_p1), %vm374_vm2, %v369_v41, -inf  ;;  %v357_v54 = vld [vmem:[%s773_s29 + $0x78] sm:$0xff] (!%p778_p1)  ;;  %v372_v55 = vmax.f32 (!%p778_p1), %v340_v48, %v356_v50  ;;  %413 = vrot.lane.b32.xlu1 (!%p778_p1), %v386_v38, %s710_s9 }
  0x26   : > { %313 = vst.msk [vmem:[%s785_s16 + $0x68] sm:$0x3] %vm300_vm1, %v709_v0  ;;  %315 = vst.msk [vmem:[%s785_s16 + $0x78] sm:$0x3] %vm300_vm1, %v709_v0  ;;  %v338_v56 = vld [vmem:[%s768_s25 + $0x60] sm:$0xff] (!%p778_p1)  ;;  %v339_v57 = vld [vmem:[%s768_s25 + $0x68] sm:$0xff] (!%p778_p1)  ;;  %v373_v60 = vmax.f32 (!%p778_p1), %v341_v49, %v357_v54  ;;  %v392_v63 = vmax.f32 (!%p778_p1), %v390_v52, %v391_v53 }
  0x27   : > { %317 = vst.msk [vmem:[%s785_s16 + $0x88] sm:$0x3] %vm300_vm1, %v709_v0  ;;  %319 = vst.msk [vmem:[%s785_s16 + $0x98] sm:$0x3] %vm300_vm1, %v709_v0  ;;  %v387_v58 = vsel (!%p778_p1), %vm374_vm2, %v366_v46, -inf  ;;  %v388_v59 = vsel (!%p778_p1), %vm374_vm2, %v367_v47, -inf  ;;  %409 = vrot.lane.b32.xlu0 (!%p778_p1), %v380_v51, %s710_s9 }
  0x28   : > { %v354_v61 = vld [vmem:[%s773_s29 + $0x60] sm:$0xff]  ;;  %v355_v62 = vld [vmem:[%s773_s29 + $0x68] sm:$0xff]  ;;  %v389_v2 = vmax.f32 %v387_v58, %v388_v59  ;;  %v396_v3 = vsel %vm374_vm2, %v372_v55, -inf  ;;  %v397_v4 = vsel %vm374_vm2, %v373_v60, -inf }
  0x29   : > { %v370_v0 = vmax.f32 %v338_v56, %v354_v61  ;;  %v371_v1 = vmax.f32 %v339_v57, %v355_v62  ;;  %417 = vrot.lane.b32.xlu1 %v392_v63, %s710_s9  ;;  %v398_v7 = vmax.f32 %v396_v3, %v397_v4 }
  0x2b   : > { %v393_v5 = vsel %vm374_vm2, %v370_v0, -inf  ;;  %v394_v6 = vsel %vm374_vm2, %v371_v1, -inf  ;;  %415 = vrot.lane.b32.xlu0 %v389_v2, %s710_s9 }
  0x2c   : > { %v395_v8 = vmax.f32 %v393_v5, %v394_v6 }
  0x2d   : > { %421 = vrot.lane.b32.xlu1 %v398_v7, %s710_s9 }
  0x2f   : > { %419 = vrot.lane.b32.xlu0 %v395_v8, %s710_s9 }
  0x93   : > { %v412_v9 = vpop.permute.xlu1 %411 }
  0x94   : > { %v433_v10 = vmax.f32 %v846_v24, %v412_v9 }
  0x95   : > { %v408_v11 = vpop.permute.xlu0 %407 }
  0x96   : > { %v431_v12 = vmax.f32 %v377_v31, %v408_v11  ;;  %603 = vst.msk [vmem:[%s785_s16 + $0x31] sm:$0xff] %vm298_vm0, %v433_v10 }
  0x97   : > { %v414_v13 = vpop.permute.xlu1 %413 }
  0x98   : > { %601 = vst.msk [vmem:[%s785_s16 + $0x11] sm:$0xff] %vm298_vm0, %v431_v12  ;;  %v434_v14 = vmax.f32 %v386_v38, %v414_v13 }
  0x99   : > { %v410_v15 = vpop.permute.xlu0 %409 }
  0x9a   : > { %v432_v16 = vmax.f32 %v380_v51, %v410_v15  ;;  %604 = vst.msk [vmem:[%s785_s16 + $0x41] sm:$0xff] %vm298_vm0, %v434_v14 }
  0x9b   : > { %v418_v17 = vpop.permute.xlu1 %417 }
  0x9c   : > { %602 = vst.msk [vmem:[%s785_s16 + $0x21] sm:$0xff] %vm298_vm0, %v432_v16  ;;  %v436_v18 = vmax.f32 %v392_v63, %v418_v17 }
  0x9d   : > { %v416_v19 = vpop.permute.xlu0 %415 }
  0x9e   : > { %v435_v20 = vmax.f32 %v389_v2, %v416_v19  ;;  %606 = vst.msk [vmem:[%s785_s16 + $0x61] sm:$0xff] %vm298_vm0, %v436_v18 }
  0x9f   : > { %v422_v21 = vpop.permute.xlu1 %421 }
  0xa0   : > { %605 = vst.msk [vmem:[%s785_s16 + $0x51] sm:$0xff] %vm298_vm0, %v435_v20  ;;  %v438_v22 = vmax.f32 %v398_v7, %v422_v21 }
  0xa1   : > { %v420_v23 = vpop.permute.xlu0 %419 }
  0xa2   : > { %v437_v24 = vmax.f32 %v395_v8, %v420_v23  ;;  %608 = vst.msk [vmem:[%s785_s16 + $0x81] sm:$0xff] %vm298_vm0, %v438_v22 }
  0xa4   : > { %607 = vst.msk [vmem:[%s785_s16 + $0x71] sm:$0xff] %vm298_vm0, %v437_v24 }
  0xa5 PF: > { %s12_s13 = sadd.s32 1, %s707_s13   ;;  %s924_s9 = smov %s699_s11 }
  0xa6   : > { %p9_p2 = scmp.ge.s32.totalorder %s12_s13, 22   ;;  %s925_s10 = smov %s703_s12 }
  0xa7   : > { %s926_s11 = smov %s929_s14  ;;  %s927_s12 = smov %s933_s15 }
  0xa8   :  { %11 = sbr.rel (!%p9_p2) target bundleno = 3 (0x3), region = 66 }

// kernel: tile.48
= control target key start
LH: loop header
LB: loop body
LE: loop exit
PB: predicated region body
PF: predicated region fallthrough
CT: control target
= control target key end

     0   :  { %s22_s0 = inlined_call_operand.vmem [shape: f32[4], index: 0, kind: input, shape index: {}]   ;;  %s23_s1 = inlined_call_operand.vmem [shape: f32[8,4], index: 1, kind: output, shape index: {}]  }
   0x1   :  { %v4_v0 = vld [vmem:[%s22_s0] ss:$0 sm:$0xff] }
   0x2   :  { %5 = vst [vmem:[%s23_s1] sm:$0xff] %v4_v0 }

// kernel: tile.49
= control target key start
LH: loop header
LB: loop body
LE: loop exit
PB: predicated region body
PF: predicated region fallthrough
CT: control target
= control target key end

     0   :  { %s67_s10 = smov 28   ;;  %s68_s11 = smov 20   ;;  %vm3_vm0 = vcmask 31744   ;;  %vm9_vm1 = vcmask 261344   ;;  %vm15_vm2 = vcmask 228544   ;;  %vm21_vm3 = vcmask 195744   ;;  %s111_s0 = inlined_call_operand.vmem [shape: f32[8,4], index: 0, kind: input, shape index: {}]   ;;  %s112_s1 = inlined_call_operand.vmem [shape: f32[1,32], index: 1, kind: output, shape index: {}]  }
   0x1   :  { %v53_v0 = vld [vmem:[%s111_s0 + $0x7] sm:$0x1]   ;;  %v55_v1 = vld [vmem:[%s111_s0 + $0x5] sm:$0x1]   ;;  %v54_v2 = vld [vmem:[%s111_s0 + $0x6] sm:$0x1]  }
   0x2   :  { %7 = vrot.lane.b32.xlu0 %v53_v0, %s67_s10  ;;  %19 = vrot.lane.b32.xlu1 %v55_v1, %s68_s11  ;;  %v56_v3 = vld [vmem:[%s111_s0 + $0x4] sm:$0x1]   ;;  %v2_v4 = vld [vmem:[%s111_s0] sm:$0x1]   ;;  %s69_s18 = smov 24   ;;  %s70_s19 = smov 16  }
   0x3   :  { %4 = vst.msk [vmem:[#allocation0] sm:$0x1] %vm3_vm0, %v2_v4   ;;  %v57_v5 = vld [vmem:[%s111_s0 + $0x3] sm:$0x1]   ;;  %v58_v6 = vld [vmem:[%s111_s0 + $0x2] sm:$0x1]  }
   0x4   :  { %s71_s24 = smov 12   ;;  %s72_s25 = smov 8   ;;  %v59_v7 = vld [vmem:[%s111_s0 + $0x1] sm:$0x1]   ;;  %vm27_vm4 = vcmask 162944   ;;  %vm33_vm5 = vcmask 130144  }
   0x5   :  { %s73_s0 = smov 4   ;;  %vm39_vm6 = vcmask 97344   ;;  %vm45_vm7 = vcmask 64544  }
   0x6   :  { %13 = vrot.lane.b32.xlu0 %v54_v2, %s69_s18  ;;  %25 = vrot.lane.b32.xlu1 %v56_v3, %s70_s19 }
   0xa   :  { %31 = vrot.lane.b32.xlu0 %v57_v5, %s71_s24  ;;  %37 = vrot.lane.b32.xlu1 %v58_v6, %s72_s25 }
   0xe   :  { %43 = vrot.lane.b32.xlu0 %v59_v7, %s73_s0 }
  0x74   :  { %v8_v8 = vpop.permute.xlu0 %7   ;;  %v20_v9 = vpop.permute.xlu1 %19  }
  0x75   :  { %10 = vst.msk [vmem:[#allocation0] sm:$0x1] %vm9_vm1, %v8_v8  }
  0x78   :  { %v14_v10 = vpop.permute.xlu0 %13   ;;  %v26_v11 = vpop.permute.xlu1 %25  }
  0x79   :  { %16 = vst.msk [vmem:[#allocation0] sm:$0x1] %vm15_vm2, %v14_v10  }
  0x7a   :  { %22 = vst.msk [vmem:[#allocation0] sm:$0x1] %vm21_vm3, %v20_v9  }
  0x7b   :  { %28 = vst.msk [vmem:[#allocation0] sm:$0x1] %vm27_vm4, %v26_v11  }
  0x7c   :  { %v32_v12 = vpop.permute.xlu0 %31   ;;  %v38_v13 = vpop.permute.xlu1 %37  }
  0x7d   :  { %34 = vst.msk [vmem:[#allocation0] sm:$0x1] %vm33_vm5, %v32_v12  }
  0x7e   :  { %40 = vst.msk [vmem:[#allocation0] sm:$0x1] %vm39_vm6, %v38_v13  }
  0x80   :  { %v44_v14 = vpop.permute.xlu0 %43  }
  0x81   :  { %46 = vst.msk [vmem:[#allocation0] sm:$0x1] %vm45_vm7, %v44_v14  }
  0x88   :  { %v50_v15 = vld [vmem:[#allocation0] sm:$0x1] }
  0x89   :  { %52 = vst [vmem:[%s112_s1] sm:$0x1] %v50_v15 }

// kernel: tile.63
= control target key start
LH: loop header
LB: loop body
LE: loop exit
PB: predicated region body
PF: predicated region fallthrough
CT: control target
= control target key end

     0   :  { %s28_s0 = inlined_call_operand.vmem [shape: f32[4], index: 0, kind: input, shape index: {}]   ;;  %s29_s1 = inlined_call_operand.vmem [shape: f32[10,4], index: 1, kind: output, shape index: {}]  }
   0x1   :  { %v4_v0 = vld [vmem:[%s28_s0] ss:$0 sm:$0xff] }
   0x2   :  { %5 = vst [vmem:[%s29_s1] sm:$0xff] %v4_v0  ;;  %8 = vst [vmem:[%s29_s1 + $0x8] sm:$0xff] %v4_v0 }

// kernel: mul.36
= control target key start
LH: loop header
LB: loop body
LE: loop exit
PB: predicated region body
PF: predicated region fallthrough
CT: control target
= control target key end

     0   :  { %s83_s10 = smov 36   ;;  %s84_s11 = smov 28   ;;  %vm3_vm0 = vcmask 31744   ;;  %vm9_vm1 = vcmask 326944   ;;  %vm15_vm2 = vcmask 294144   ;;  %vm21_vm3 = vcmask 261344   ;;  %s135_s0 = inlined_call_operand.vmem [shape: f32[10,4], index: 0, kind: input, shape index: {}]   ;;  %s136_s1 = inlined_call_operand.vmem [shape: f32[40], index: 1, kind: output, shape index: {}]  }
   0x1   :  { %v65_v0 = vld [vmem:[%s135_s0 + $0x9] sm:$0x1]   ;;  %v67_v1 = vld [vmem:[%s135_s0 + $0x7] sm:$0x1]   ;;  %v66_v2 = vld [vmem:[%s135_s0 + $0x8] sm:$0x1]  }
   0x2   :  { %7 = vrot.lane.b32.xlu0 %v65_v0, %s83_s10  ;;  %19 = vrot.lane.b32.xlu1 %v67_v1, %s84_s11  ;;  %v68_v3 = vld [vmem:[%s135_s0 + $0x6] sm:$0x1]   ;;  %v2_v4 = vld [vmem:[%s135_s0] sm:$0x1]   ;;  %s85_s18 = smov 32   ;;  %s86_s19 = smov 24  }
   0x3   :  { %v69_v5 = vld [vmem:[%s135_s0 + $0x5] sm:$0x1]   ;;  %v70_v6 = vld [vmem:[%s135_s0 + $0x4] sm:$0x1]   ;;  %4 = vst.msk [vmem:[#allocation0] sm:$0x1] %vm3_vm0, %v2_v4  }
   0x4   :  { %s87_s24 = smov 20   ;;  %s88_s25 = smov 16   ;;  %v71_v7 = vld [vmem:[%s135_s0 + $0x3] sm:$0x1]   ;;  %v72_v8 = vld [vmem:[%s135_s0 + $0x2] sm:$0x1]  }
   0x5   :  { %s89_s30 = smov 12   ;;  %s90_s2 = smov 8   ;;  %v73_v9 = vld [vmem:[%s135_s0 + $0x1] sm:$0x1]   ;;  %vm27_vm4 = vcmask 228544   ;;  %vm33_vm5 = vcmask 195744  }
   0x6   :  { %13 = vrot.lane.b32.xlu0 %v66_v2, %s85_s18  ;;  %25 = vrot.lane.b32.xlu1 %v68_v3, %s86_s19  ;;  %s91_s0 = smov 4   ;;  %vm39_vm6 = vcmask 162944   ;;  %vm45_vm7 = vcmask 130144   ;;  %vm51_vm8 = vcmask 97344   ;;  %vm57_vm9 = vcmask 64544  }
   0xa   :  { %31 = vrot.lane.b32.xlu0 %v69_v5, %s87_s24  ;;  %37 = vrot.lane.b32.xlu1 %v70_v6, %s88_s25 }
   0xe   :  { %43 = vrot.lane.b32.xlu0 %v71_v7, %s89_s30  ;;  %49 = vrot.lane.b32.xlu1 %v72_v8, %s90_s2 }
  0x12   :  { %55 = vrot.lane.b32.xlu0 %v73_v9, %s91_s0 }
  0x74   :  { %v8_v10 = vpop.permute.xlu0 %7   ;;  %v20_v11 = vpop.permute.xlu1 %19  }
  0x75   :  { %10 = vst.msk [vmem:[#allocation0] sm:$0x1] %vm9_vm1, %v8_v10  }
  0x78   :  { %v14_v12 = vpop.permute.xlu0 %13   ;;  %v26_v13 = vpop.permute.xlu1 %25  }
  0x79   :  { %16 = vst.msk [vmem:[#allocation0] sm:$0x1] %vm15_vm2, %v14_v12  }
  0x7a   :  { %22 = vst.msk [vmem:[#allocation0] sm:$0x1] %vm21_vm3, %v20_v11  }
  0x7b   :  { %28 = vst.msk [vmem:[#allocation0] sm:$0x1] %vm27_vm4, %v26_v13  }
  0x7c   :  { %v32_v14 = vpop.permute.xlu0 %31   ;;  %v38_v15 = vpop.permute.xlu1 %37  }
  0x7d   :  { %34 = vst.msk [vmem:[#allocation0] sm:$0x1] %vm33_vm5, %v32_v14  }
  0x7e   :  { %40 = vst.msk [vmem:[#allocation0] sm:$0x1] %vm39_vm6, %v38_v15  }
  0x80   :  { %v44_v16 = vpop.permute.xlu0 %43   ;;  %v50_v17 = vpop.permute.xlu1 %49  }
  0x81   :  { %46 = vst.msk [vmem:[#allocation0] sm:$0x1] %vm45_vm7, %v44_v16  }
  0x82   :  { %52 = vst.msk [vmem:[#allocation0] sm:$0x1] %vm51_vm8, %v50_v17  }
  0x84   :  { %v56_v18 = vpop.permute.xlu0 %55  }
  0x85   :  { %58 = vst.msk [vmem:[#allocation0] sm:$0x1] %vm57_vm9, %v56_v18  }
  0x8c   :  { %v62_v19 = vld [vmem:[#allocation0] sm:$0x1] }
  0x8d   :  { %64 = vst [vmem:[%s136_s1] sm:$0x1] %v62_v19 }

// kernel: encoder_forward.5
= control target key start
LH: loop header
LB: loop body
LE: loop exit
PB: predicated region body
PF: predicated region fallthrough
CT: control target
= control target key end

     0   :  { %s8160_s24 = smov 0   ;;  %s8162_s25 = smov 0   ;;  %s9509_s0 = inlined_call_operand.vmem [shape: f32[2,10,10,40], index: 0, kind: input, shape index: {}, may-alias: {0,1,2}]   ;;  %s9510_s1 = inlined_call_operand.vmem [shape: f32[2,10,10,40], index: 1, kind: input, shape index: {}, may-alias: {0,1,2}]   ;;  %s9511_s2 = inlined_call_operand.vmem [shape: f32[2,10,10,40], index: 2, kind: input, shape index: {}, may-alias: {0,1,2}]   ;;  %s9512_s3 = inlined_call_operand.vmem [shape: f32[9,40,32], index: 3, kind: input, shape index: {}]   ;;  %s9513_s4 = inlined_call_operand.vmem [shape: f32[1,32], index: 4, kind: input, shape index: {}]   ;;  %s9514_s5 = inlined_call_operand.vmem [shape: f32[32,4], index: 5, kind: input, shape index: {}]   ;;  %s9515_s6 = inlined_call_operand.vmem [shape: f32[2,10,10,40], index: 6, kind: output, shape index: {0}]   ;;  %s9516_s7 = inlined_call_operand.vmem [shape: f32[2,2,4], index: 7, kind: output, shape index: {1}]  }
   0x1   :  { %9517 = sst [smem:[#allocation3_spill]] %s9509_s0  ;;  %s8164_s26 = smov 0  }
   0x2   :  { %s8166_s27 = smov 0   ;;  %s8168_s28 = smov 0  }
   0x3 LB: > { %s27_s29 = sadd.s32 1, %s8104_s26  ;;  %s30_s30 = sadd.s32 1, %s8108_s27  ;;  %s8112_s28 = sphi %s8168_s28, %s18_s28   ;;  %s8108_s27 = sphi %s8166_s27, %s9524_s27   ;;  %s8104_s26 = sphi %s8164_s26, %s9523_s26   ;;  %s8100_s25 = sphi %s8162_s25, %s9522_s25   ;;  %s8096_s24 = sphi %s8160_s24, %s9521_s24  }
   0x4   : > { %p28_p0 = scmp.ge.s32.totalorder %s27_s29, 10  ;;  %p6325_p1 = scmp.ge.s32.totalorder %s8112_s28, 1 }
   0x5   : > { %p348_p2 = scmp.lt.s32.totalorder %s8112_s28, 21 }
   0x6   : > { %s9526_s29 = smov (%p28_p0, %s27_s29), 0  ;;  %s9528_s30 = smov (!%p28_p0, %s30_s30), %s8108_s27 }
   0x7   : > { %p349_p3 = pnand %p6325_p1, %p348_p2  ;;  %p32_p4 = scmp.ge.s32.totalorder %s9528_s30, 2 }
   0x8   : > { %s6326_s8 = sadd.s32 (!%p349_p3), 4294967295, %s8096_s24  ;;  %p429_p5 = scmp.lt.s32.totalorder (!%p349_p3), %s8100_s25, 1 }
   0x9   : > { %s9530_s30 = smov (%p32_p4, %s9528_s30), 0  ;;  %352 = sbr.rel (%p349_p3) target bundleno = 823 (0x337), region = 44 }
   0xa   : > { %9518 = sst [smem:[#allocation2_spill]] %s9530_s30  ;;  %p425_p6 = scmp.gt.s32.totalorder (!%p349_p3), %s6326_s8, 0 }
   0xb   : > { %p6327_p7 = scmp.lt.s32.totalorder (!%p349_p3), %s6326_s8, 9  ;;  %p443_p8 = scmp.gt.s32.totalorder (!%p349_p3), %s8096_s24, 0 }
   0xc   : > { %p6334_p10 = scmp.lt.s32.totalorder (!%p349_p3), %s8096_s24, 9  ;;  %s460_s11 = sadd.s32 (!%p349_p3), 1, %s8096_s24 }
   0xd   : > { %p461_p11 = scmp.gt.s32.totalorder (!%p349_p3), %s460_s11, 0  ;;  %s9519_s0 = sld [smem:[#allocation3_spill]] (!%p349_p3) }
   0xe   : > { %p6341_p13 = scmp.lt.s32.totalorder (!%p349_p3), %s460_s11, 9  ;;  %p6351_p1 = scmp.ne.s32.totalorder (!%p349_p3), %s8096_s24, 0 }
  0x10   : > { %s9532_s25 = smov (!%p429_p5, %s8100_s25), 1  ;;  %s9534_s8 = smov (!%p425_p6, %s6326_s8), 0 }
  0x11   : > { %s8193_s9 = smul.u32 20, %s9532_s25  ;;  %s9536_s8 = smov (!%p6327_p7, %s9534_s8), 9  ;;  %vm496_vm0 = vcmask (!%p6351_p1), 25600   ;;  %v8114_v0 = vmov (!%p6351_p1), 0.0  }
  0x12   : > { %s444_s10 = scalar_select %p443_p8, %s8096_s24, 0 }
  0x13   : > { %p431_p9 = scmp.lt.s32.totalorder %s9536_s8, 9  ;;  %s6350_s12 = sshll.u32 %s9532_s25, 1 }
  0x14   : > { %s9540_s10 = smov (!%p6334_p10, %s444_s10), 9  ;;  %s8210_s21 = scalar_lea.vmem %s9516_s7, %s6350_s12 }
  0x15   : > { %s9538_s8 = smov (!%p431_p9, %s9536_s8), 9  ;;  %p449_p12 = scmp.lt.s32.totalorder %s9540_s10, 9  ;;  %497 = vst.msk [vmem:[%s8210_s21] sm:$0x3] (!%p6351_p1), %vm496_vm0, %v8114_v0 }
  0x16   : > { %s6332_s13 = sshll.u32 %s9538_s8, 1 }
  0x17   : > { %s435_s14 = sadd.s32 %s8193_s9, %s6332_s13  ;;  %s9542_s10 = smov (!%p449_p12, %s9540_s10), 9 }
  0x18   : > { %s6333_s15 = sshll.u32 %s435_s14, 3  ;;  %s6339_s23 = sshll.u32 %s9542_s10, 1 }
  0x19   : > { %s8205_s18 = scalar_lea.vmem %s9519_s0, %s6333_s15  ;;  %s453_s25 = sadd.s32 %s8193_s9, %s6339_s23 }
  0x1a   : > { %s462_s22 = scalar_select %p461_p11, %s460_s11, 0 }
  0x1b   : > { %s6340_s8 = sshll.u32 %s453_s25, 3 }
  0x1c   : > { %s8216_s14 = scalar_lea.vmem %s9510_s1, %s6340_s8  ;;  %s9544_s22 = smov (!%p6341_p13, %s462_s22), 9 }
  0x1d   : > { %s482_s15 = scalar_select %p6334_p10, %s8096_s24, 9 }
  0x1e   : > { %p467_p0 = scmp.lt.s32.totalorder %s9544_s22, 9  ;;  %495 = sbr.rel (%p6351_p1) target bundleno = 37 (0x25), region = 48 }
  0x1f   : > { %s6348_s16 = sshll.u32 %s482_s15, 1 }
  0x20   : > { %s9546_s22 = smov (!%p467_p0, %s9544_s22), 9  ;;  %s485_s12 = sadd.s32 %s8193_s9, %s6348_s16 }
  0x21   : > { %s6346_s17 = sshll.u32 %s9546_s22, 1  ;;  %s6349_s19 = sshll.u32 %s485_s12, 3 }
  0x22   : > { %s471_s20 = sadd.s32 %s8193_s9, %s6346_s17  ;;  %s8226_s11 = scalar_lea.vmem %s9515_s6, %s6349_s19 }
  0x23   : > { %s6347_s23 = sshll.u32 %s471_s20, 3 }
  0x24   : > { %s8231_s8 = scalar_lea.vmem %s9511_s2, %s6347_s23 }
  0x25 PF: > { %vm498_vm1 = vcmask 326656   ;;  %vm500_vm2 = vcmask 320512   ;;  %p502_p2 = scmp.ge.s32.totalorder %s8096_s24, 1  ;;  %p503_p3 = scmp.le.s32.totalorder %s8096_s24, 8  ;;  %v8115_v1 = vmov 0.0  }
  0x26   : > { %499 = vst.msk [vmem:[%s8226_s11] sm:$0xff] %vm498_vm1, %v8115_v1 }
  0x27   : > { %501 = vst.msk [vmem:[%s8226_s11 + $0x8] sm:$0x3] %vm500_vm2, %v8115_v1  ;;  %p504_p4 = pnand %p503_p3, %p502_p2 }
  0x28   : > { %v6352_v2 = vld [vmem:[%s9512_s3 + $0x28] sm:$0xff] (!%p504_p4)  ;;  %v6353_v3 = vld [vmem:[%s9512_s3 + $0x30] sm:$0xff] (!%p504_p4)  ;;  %v6354_v4 = vld [vmem:[%s9512_s3 + $0x38] sm:$0xff] (!%p504_p4)  ;;  %v8116_v5 = vmov (!%p504_p4), 0.0|0.0   ;;  %vm8117_vm3 = vmmov (!%p504_p4), 0   ;;  %v8118_v14 = vmov (!%p504_p4), 0.0  }
  0x29   : > { %507 = sbr.rel (%p504_p4) target bundleno = 823 (0x337), region = 52  ;;  %7631 = vmatprep.subr.bf16.mxu0 (!%p504_p4), %v8116_v5  ;;  %v534_v6 = vand.u32 (!%p504_p4), 4294901760, %v6352_v2  ;;  %v537_v7 = vand.u32 (!%p504_p4), 4294901760, %v6353_v3  ;;  %v6355_v8 = vld [vmem:[%s9512_s3 + $0x40] sm:$0xff] (!%p504_p4)  ;;  %v540_v9 = vand.u32 (!%p504_p4), 4294901760, %v6354_v4  ;;  %7637 = vmatprep.subr.bf16.mxu1 (!%p504_p4), %v8116_v5  ;;  %v6356_v10 = vld [vmem:[%s9512_s3 + $0x48] sm:$0xff] (!%p504_p4) }
  0x2a   : > { %v8258_v11 = vld [vmem:[%s8205_s18] sm:$0xff] (!%p504_p4)  ;;  %v543_v12 = vand.u32 (!%p504_p4), 4294901760, %v6355_v8  ;;  %v8260_v13 = vand.u32 (!%p504_p4), 4294901760, %v6356_v10  ;;  %6807 = vmatprep.mubr.msk.f32.mxu0 (!%p504_p4), %vm8117_vm3, %v8118_v14  ;;  %v8265_v15 = vld [vmem:[%s8205_s18 + $0x8] sm:$0x3] (!%p504_p4)  ;;  %vm527_vm4 = vcmask (!%p504_p4), 1046528   ;;  %6820 = vmatprep.mubr.msk.f32.mxu1 (!%p504_p4), %vm8117_vm3, %v8118_v14 }
  0x2b   : > { %v528_v16 = vrot.slane (!%p504_p4), %v8258_v11, 1  ;;  %v8270_v17 = vpack.c.bf16 (!%p504_p4), %v537_v7, %v534_v6  ;;  %v8272_v18 = vsub.f32 (!%p504_p4), %v6352_v2, %v534_v6  ;;  %v8274_v19 = vsub.f32 (!%p504_p4), %v6353_v3, %v537_v7  ;;  %v514_v49 = vld [vmem:[%s9512_s3] sm:$0xff] (!%p504_p4)  ;;  %v515_v50 = vld [vmem:[%s9512_s3 + $0x8] sm:$0xff] (!%p504_p4)  ;;  %v516_v55 = vld [vmem:[%s9512_s3 + $0x10] sm:$0xff] (!%p504_p4)  ;;  %s8119_s25 = smov (!%p504_p4), 4  }
  0x2c   : > { %v8276_v20 = vsub.f32 (!%p504_p4), %v6354_v4, %v540_v9  ;;  %v8278_v21 = vsub.f32 (!%p504_p4), %v6355_v8, %v543_v12  ;;  %v529_v22 = vrot.slane (!%p504_p4), %v8265_v15, 1  ;;  %v8282_v23 = vpack.c.bf16 (!%p504_p4), %v543_v12, %v540_v9  ;;  %v517_v56 = vld [vmem:[%s9512_s3 + $0x18] sm:$0xff] (!%p504_p4)  ;;  %v518_v1 = vld [vmem:[%s9512_s3 + $0x20] sm:$0xff] (!%p504_p4) }
  0x2d   : > { %7633 = vmatpush3.bf16.msra.mxu0 (!%p504_p4), %v8270_v17  ;;  %v616_v24 = vand.u32 (!%p504_p4), 4294901760, %v8272_v18  ;;  %v623_v25 = vand.u32 (!%p504_p4), 4294901760, %v8274_v19  ;;  %v8291_v29 = vsub.f32 (!%p504_p4), %v6356_v10, %v8260_v13  ;;  %v7644_v47 = vpack.c.bf16 (!%p504_p4), %v8274_v19, %v8272_v18 }
  0x2e   : > { %v630_v26 = vand.u32 (!%p504_p4), 4294901760, %v8276_v20  ;;  %7634 = vmatprep.subr.bf16.mxu0 (!%p504_p4), %v8116_v5  ;;  %v530_v27 = vsel (!%p504_p4), %vm527_vm4, %v528_v16, %v529_v22  ;;  %v637_v28 = vand.u32 (!%p504_p4), 4294901760, %v8278_v21  ;;  %v7647_v52 = vpack.c.bf16 (!%p504_p4), %v8278_v21, %v8276_v20 }
  0x2f   : > { %v617_v30 = vsub.f32 (!%p504_p4), %v8272_v18, %v616_v24  ;;  %v624_v31 = vsub.f32 (!%p504_p4), %v8274_v19, %v623_v25  ;;  %v531_v32 = vsel (!%p504_p4), %vm498_vm1, %v530_v27, 0  ;;  %v644_v39 = vand.u32 (!%p504_p4), 4294901760, %v8291_v29 }
  0x30   : > { %v631_v33 = vsub.f32 %v8276_v20, %v630_v26  ;;  %v8299_v34 = vand.u32 4294901760, %v531_v32  ;;  %v638_v35 = vsub.f32 %v8278_v21, %v637_v28  ;;  %v1034_v53 = vand.u32 4294901760, %v514_v49 }
  0x31   : > { %7636 = vmatpush3.bf16.msra.mxu0 %v8282_v23  ;;  %v618_v36 = vand.u32 4294901760, %v617_v30  ;;  %v625_v37 = vand.u32 4294901760, %v624_v31  ;;  %v645_v45 = vsub.f32 %v8291_v29, %v644_v39  ;;  %v1037_v54 = vand.u32 4294901760, %v515_v50 }
  0x32   : > { %v632_v38 = vand.u32 4294901760, %v631_v33  ;;  %6805 = vmatprep.subr.mxu0 %v8118_v14  ;;  %v604_v40 = vsub.f32 %v531_v32, %v8299_v34  ;;  %v639_v41 = vand.u32 4294901760, %v638_v35  ;;  %v8337_v57 = vsub.f32 %v514_v49, %v1034_v53  ;;  %v6357_v33 = vld [vmem:[%s9512_s3 + $0x50] sm:$0xff] }
  0x33   : > { %v7638_v42 = vpack.c.bf16 %v625_v37, %v618_v36  ;;  %v646_v51 = vand.u32 4294901760, %v645_v45  ;;  %v8339_v58 = vsub.f32 %v515_v50, %v1037_v54  ;;  %v1040_v59 = vand.u32 4294901760, %v516_v55  ;;  %v6361_v50 = vld [vmem:[%s9512_s3 + $0x70] sm:$0xff] }
  0x34   : > { %v605_v43 = vand.u32 4294901760, %v604_v40  ;;  %v7641_v44 = vpack.c.bf16 %v639_v41, %v632_v38  ;;  %v1043_v60 = vand.u32 4294901760, %v517_v56  ;;  %v7656_v61 = vpack.c.bf16 %v623_v25, %v616_v24 }
  0x35   : > { %6806 = vmatpush3.msra.mxu0 %v8260_v13  ;;  %7639 = vmatpush3.bf16.msra.mxu1 %v7638_v42  ;;  %v1031_v62 = vsel %vm498_vm1, %v8258_v11, 0  ;;  %v8349_v63 = vsub.f32 %v516_v55, %v1040_v59  ;;  %v1116_v2 = vand.u32 4294901760, %v8337_v57  ;;  %v1123_v3 = vand.u32 4294901760, %v8339_v58 }
  0x36   : > { %7643 = vmatprep.subr.bf16.mxu0 %v8116_v5  ;;  %v606_v46 = vsub.f32 %v604_v40, %v605_v43  ;;  %7640 = vmatprep.subr.bf16.mxu1 %v8116_v5  ;;  %v8351_v0 = vsub.f32 %v517_v56, %v1043_v60  ;;  %v8359_v4 = vand.u32 4294901760, %v1031_v62  ;;  %v7659_v6 = vpack.c.bf16 %v637_v28, %v630_v26 }
  0x37   : > { %v8369_v7 = vand.u32 4294901760, %v518_v1  ;;  %v1117_v8 = vsub.f32 %v8337_v57, %v1116_v2  ;;  %v1124_v9 = vsub.f32 %v8339_v58, %v1123_v3  ;;  %v1130_v10 = vand.u32 4294901760, %v8349_v63 }
  0x38   : > { %v607_v48 = vand.u32 4294901760, %v606_v46  ;;  %v1137_v12 = vand.u32 4294901760, %v8351_v0  ;;  %v8382_v16 = vsub.f32 %v1031_v62, %v8359_v4  ;;  %v8386_v18 = vpack.c.bf16 %v1037_v54, %v1034_v53 }
  0x39   : > { %7642 = vmatpush3.bf16.msra.mxu1 %v7641_v44  ;;  %v8390_v19 = vsub.f32 %v518_v1, %v8369_v7  ;;  %v1118_v20 = vand.u32 4294901760, %v1117_v8  ;;  %v1125_v21 = vand.u32 4294901760, %v1124_v9  ;;  %v1131_v22 = vsub.f32 %v8349_v63, %v1130_v10 }
  0x3a   : > { %6808 = vmatmul.mubr.f32.vlgmr.msra.gmra.mrb[0].mxu0 %v607_v48  ;;  %6818 = vmatprep.subr.mxu1 %v8118_v14  ;;  %v1105_v24 = vand.u32 4294901760, %v8382_v16  ;;  %v8406_v25 = vpack.c.bf16 %v1043_v60, %v1040_v59  ;;  %v1539_v36 = vrot.slane %v8265_v15, 2  ;;  %v1538_v37 = vrot.slane %v8258_v11, 2  ;;  %v6359_v15 = vld [vmem:[%s9512_s3 + $0x60] sm:$0xff]  ;;  %v6360_v11 = vld [vmem:[%s9512_s3 + $0x68] sm:$0xff] }
  0x3b   : > { %7645 = vmatpush3.bf16.msra.mxu0 %v7644_v47  ;;  %6833 = vmatprep.mubr.msk.f32.mxu0 %vm8117_vm3, %v8118_v14  ;;  %v7674_v26 = vpack.c.bf16 %v1125_v21, %v1118_v20  ;;  %v1132_v27 = vand.u32 4294901760, %v1131_v22  ;;  %v1144_v30 = vand.u32 4294901760, %v8390_v19  ;;  %v7683_v38 = vpack.c.bf16 %v8351_v0, %v8349_v63  ;;  %v6363_v21 = vld [vmem:[%s9512_s3 + $0x80] sm:$0xff] }
  0x3c   : > { %7646 = vmatprep.subr.bf16.mxu0 %v8116_v5  ;;  %vm1537_vm5 = vcmask 1045504   ;;  %v1550_v44 = vand.u32 4294901760, %v6359_v15  ;;  %v1553_v45 = vand.u32 4294901760, %v6360_v11  ;;  %v7692_v46 = vpack.c.bf16 %v1123_v3, %v1116_v2 }
  0x3d   : > { %6819 = vmatpush3.msra.mxu1 %v646_v51  ;;  %v1145_v31 = vsub.f32 %v8390_v19, %v1144_v30  ;;  %v1540_v41 = vsel %vm1537_vm5, %v1538_v37, %v1539_v36  ;;  %v7695_v54 = vpack.c.bf16 %v1137_v12, %v1130_v10  ;;  %v8492_v55 = vand.u32 4294901760, %v6361_v50 }
  0x3e   : > { %6821 = vmatmul.mubr.f32.vlgmr.msra.gmra.mrb[0].mxu1 %v8299_v34  ;;  %7649 = vmatprep.subr.bf16.mxu1 %v8116_v5  ;;  %v1541_v47 = vsel %vm498_vm1, %v1540_v41, 0  ;;  %v8471_v48 = vsub.f32 %v6359_v15, %v1550_v44  ;;  %v8473_v49 = vsub.f32 %v6360_v11, %v1553_v45  ;;  %vm5114_vm6 = vcmask 261120  }
  0x3f   : > { %7648 = vmatpush3.bf16.msra.mxu0 %v7647_v52  ;;  %7651 = vmatpush3.bf16.msra.mxu1 %v8270_v17  ;;  %v1146_v35 = vand.u32 4294901760, %v1145_v31  ;;  %v8482_v53 = vand.u32 4294901760, %v1541_v47  ;;  %v8515_v62 = vsub.f32 %v6361_v50, %v8492_v55  ;;  %vm5112_vm7 = vcmask 293920  }
  0x40   : > { %6831 = vmatprep.subr.mxu0 %v8118_v14  ;;  %7652 = vmatprep.subr.bf16.mxu1 %v8116_v5  ;;  %v1647_v59 = vand.u32 4294901760, %v8473_v49  ;;  %vm5624_vm8 = vcmask 24576  }
  0x41   : > { %6846 = vmatprep.mubr.msk.f32.mxu1 %vm8117_vm3, %v8118_v14  ;;  %v8507_v60 = vsub.f32 %v1541_v47, %v8482_v53 }
  0x42   : > { %v1648_v2 = vsub.f32 %v8473_v49, %v1647_v59 }
  0x43   : > { %6832 = vmatpush3.msra.mxu0 %v8291_v29  ;;  %7654 = vmatpush3.bf16.msra.mxu1 %v8282_v23  ;;  %v1615_v3 = vand.u32 4294901760, %v8507_v60 }
  0x44   : > { %6834 = vmatmul.mubr.f32.vlgmr.msra.gmra.mrb[2].mxu0 %v604_v40  ;;  %7655 = vmatprep.subr.bf16.mxu0 %v8116_v5  ;;  %v1649_v10 = vand.u32 4294901760, %v1648_v2 }
  0x45   : > { %7657 = vmatpush3.bf16.msra.mxu0 %v7656_v61  ;;  %6844 = vmatprep.subr.mxu1 %v8118_v14 }
  0x46   : > { %7658 = vmatprep.subr.bf16.mxu0 %v8116_v5  ;;  %6859 = vmatprep.mubr.msk.f32.mxu0 %vm8117_vm3, %v8118_v14 }
  0x47   : > { %6845 = vmatpush3.msra.mxu1 %v8260_v13 }
  0x48   : > { %6847 = vmatmul.mubr.f32.vlgmr.msra.gmra.mrb[2].mxu1 %v605_v43  ;;  %7661 = vmatprep.subr.bf16.mxu1 %v8116_v5 }
  0x49   : > { %7660 = vmatpush3.bf16.msra.mxu0 %v7659_v6  ;;  %7663 = vmatpush3.bf16.msra.mxu1 %v8270_v17  ;;  %v1138_v17 = vsub.f32 %v8351_v0, %v1137_v12  ;;  %v8531_v6 = vpack.c.bf16 %v1553_v45, %v1550_v44  ;;  %v1654_v12 = vand.u32 4294901760, %v8515_v62 }
  0x4a   : > { %6857 = vmatprep.subr.mxu0 %v8118_v14  ;;  %7664 = vmatprep.subr.bf16.mxu1 %v8116_v5 }
  0x4b   : > { %6872 = vmatprep.mubr.msk.f32.mxu1 %vm8117_vm3, %v8118_v14  ;;  %v1139_v28 = vand.u32 4294901760, %v1138_v17  ;;  %v7719_v17 = vpack.c.bf16 %v8473_v49, %v8471_v48 }
  0x4d   : > { %6858 = vmatpush3.msra.mxu0 %v644_v39  ;;  %7666 = vmatpush3.bf16.msra.mxu1 %v8282_v23  ;;  %v1106_v23 = vsub.f32 %v8382_v16, %v1105_v24  ;;  %v7677_v29 = vpack.c.bf16 %v1139_v28, %v1132_v27  ;;  %v1544_v39 = vand.u32 4294901760, %v6357_v33  ;;  %v6365_v27 = vld [vmem:[%s9512_s3 + $0x90] sm:$0xff]  ;;  %v8578_v28 = vld [vmem:[%s8216_s14] sm:$0xff] }
  0x4e   : > { %6860 = vmatmul.mubr.f32.vlgmr.msra.gmra.mrb[4].mxu0 %v8299_v34  ;;  %7667 = vmatprep.subr.bf16.mxu0 %v8116_v5  ;;  %v2061_v31 = vand.u32 4294901760, %v6365_v27 }
  0x4f   : > { %7669 = vmatpush3.bf16.msra.mxu0 %v8386_v18  ;;  %6870 = vmatprep.subr.mxu1 %v8118_v14  ;;  %v1107_v32 = vand.u32 4294901760, %v1106_v23  ;;  %v8456_v42 = vsub.f32 %v6357_v33, %v1544_v39 }
  0x50   : > { %7670 = vmatprep.subr.bf16.mxu0 %v8116_v5  ;;  %6885 = vmatprep.mubr.msk.f32.mxu0 %vm8117_vm3, %v8118_v14 }
  0x51   : > { %6871 = vmatpush3.msra.mxu1 %v8260_v13  ;;  %v7680_v13 = vpack.c.bf16 %v8339_v58, %v8337_v57  ;;  %v1626_v51 = vand.u32 4294901760, %v8456_v42  ;;  %v1640_v58 = vand.u32 4294901760, %v8471_v48 }
  0x52   : > { %6873 = vmatmul.mubr.f32.vlgmr.msra.gmra.mrb[4].mxu1 %v8299_v34  ;;  %7673 = vmatprep.subr.bf16.mxu1 %v8116_v5  ;;  %v6358_v34 = vld [vmem:[%s9512_s3 + $0x58] sm:$0xff] }
  0x53   : > { %7672 = vmatpush3.bf16.msra.mxu0 %v8406_v25  ;;  %7675 = vmatpush3.bf16.msra.mxu1 %v7674_v26  ;;  %v1547_v40 = vand.u32 4294901760, %v6358_v34  ;;  %v1627_v56 = vsub.f32 %v8456_v42, %v1626_v51  ;;  %v1641_v1 = vsub.f32 %v8471_v48, %v1640_v58  ;;  %v6364_v26 = vld [vmem:[%s9512_s3 + $0x88] sm:$0xff] }
  0x54   : > { %6883 = vmatprep.subr.mxu0 %v8118_v14  ;;  %7676 = vmatprep.subr.bf16.mxu1 %v8116_v5 }
  0x55   : > { %6898 = vmatprep.mubr.msk.f32.mxu1 %vm8117_vm3, %v8118_v14  ;;  %v8458_v43 = vsub.f32 %v6358_v34, %v1547_v40  ;;  %v8511_v61 = vpack.c.bf16 %v1547_v40, %v1544_v39  ;;  %v1628_v63 = vand.u32 4294901760, %v1627_v56  ;;  %v1642_v9 = vand.u32 4294901760, %v1641_v1 }
  0x56   : > { %v8599_v34 = vsub.f32 %v6365_v27, %v2061_v31  ;;  %v7731_v39 = vpack.c.bf16 %v1647_v59, %v1640_v58  ;;  %v2557_v1 = vrot.slane %v8578_v28, 1 }
  0x57   : > { %6884 = vmatpush3.msra.mxu0 %v8369_v7  ;;  %7678 = vmatpush3.bf16.msra.mxu1 %v7677_v29  ;;  %v1633_v52 = vand.u32 4294901760, %v8458_v43  ;;  %v2058_v29 = vand.u32 4294901760, %v6364_v26 }
  0x58   : > { %6886 = vmatmul.mubr.f32.vlgmr.msra.gmra.mrb[6].mxu0 %v1107_v32  ;;  %7679 = vmatprep.subr.bf16.mxu0 %v8116_v5 }
  0x59   : > { %7681 = vmatpush3.bf16.msra.mxu0 %v7680_v13  ;;  %6896 = vmatprep.subr.mxu1 %v8118_v14  ;;  %v1634_v57 = vsub.f32 %v8458_v43, %v1633_v52  ;;  %v7728_v32 = vpack.c.bf16 %v1633_v52, %v1626_v51  ;;  %v2049_v13 = vsel %vm498_vm1, %v8578_v28, 0  ;;  %v8597_v33 = vsub.f32 %v6364_v26, %v2058_v29 }
  0x5a   : > { %7682 = vmatprep.subr.bf16.mxu0 %v8116_v5  ;;  %6911 = vmatprep.mubr.msk.f32.mxu0 %vm8117_vm3, %v8118_v14  ;;  %v8657_v51 = vpack.c.bf16 %v2061_v31, %v2058_v29 }
  0x5b   : > { %6897 = vmatpush3.msra.mxu1 %v1146_v35  ;;  %v1635_v0 = vand.u32 4294901760, %v1634_v57  ;;  %v6366_v35 = vld [vmem:[%s9512_s3 + $0x98] sm:$0xff]  ;;  %v2148_v41 = vand.u32 4294901760, %v8597_v33 }
  0x5c   : > { %6899 = vmatmul.mubr.f32.vlgmr.msra.gmra.mrb[6].mxu1 %v8359_v4  ;;  %7685 = vmatprep.subr.bf16.mxu1 %v8116_v5  ;;  %v8618_v40 = vand.u32 4294901760, %v6366_v35 }
  0x5d   : > { %7684 = vmatpush3.bf16.msra.mxu0 %v7683_v38  ;;  %7687 = vmatpush3.bf16.msra.mxu1 %v8386_v18  ;;  %v7710_v8 = vpack.c.bf16 %v1635_v0, %v1628_v63  ;;  %v8608_v38 = vand.u32 4294901760, %v2049_v13  ;;  %v2149_v48 = vsub.f32 %v8597_v33, %v2148_v41  ;;  %v6368_v63 = vld [vmem:[%s9512_s3 + $0xa8] sm:$0xff] }
  0x5e   : > { %6909 = vmatprep.subr.mxu0 %v8118_v14  ;;  %7688 = vmatprep.subr.bf16.mxu1 %v8116_v5  ;;  %v8641_v45 = vsub.f32 %v6366_v35, %v8618_v40 }
  0x5f   : > { %6924 = vmatprep.mubr.msk.f32.mxu1 %vm8117_vm3, %v8118_v14 }
  0x60   : > { %v2162_v57 = vand.u32 4294901760, %v8641_v45 }
  0x61   : > { %6910 = vmatpush3.msra.mxu0 %v8390_v19  ;;  %7690 = vmatpush3.bf16.msra.mxu1 %v8406_v25  ;;  %v1655_v19 = vsub.f32 %v8515_v62, %v1654_v12 }
  0x62   : > { %6912 = vmatmul.mubr.f32.vlgmr.msra.gmra.mrb[8].mxu0 %v8382_v16  ;;  %7691 = vmatprep.subr.bf16.mxu0 %v8116_v5  ;;  %v1616_v16 = vsub.f32 %v8507_v60, %v1615_v3 }
  0x63   : > { %7693 = vmatpush3.bf16.msra.mxu0 %v7692_v46  ;;  %6922 = vmatprep.subr.mxu1 %v8118_v14  ;;  %v1656_v22 = vand.u32 4294901760, %v1655_v19 }
  0x64   : > { %7694 = vmatprep.subr.bf16.mxu0 %v8116_v5  ;;  %6937 = vmatprep.mubr.msk.f32.mxu0 %vm8117_vm3, %v8118_v14  ;;  %v1617_v20 = vand.u32 4294901760, %v1616_v16 }
  0x65   : > { %6923 = vmatpush3.msra.mxu1 %v8369_v7 }
  0x66   : > { %6925 = vmatmul.mubr.f32.vlgmr.msra.gmra.mrb[8].mxu1 %v1105_v24  ;;  %7697 = vmatprep.subr.bf16.mxu1 %v8116_v5 }
  0x67   : > { %7696 = vmatpush3.bf16.msra.mxu0 %v7695_v54  ;;  %7699 = vmatpush3.bf16.msra.mxu1 %v8386_v18  ;;  %v7713_v18 = vpack.c.bf16 %v1649_v10, %v1642_v9  ;;  %v2150_v54 = vand.u32 4294901760, %v2149_v48  ;;  %v6369_v9 = vld [vmem:[%s9512_s3 + $0xb0] sm:$0xff]  ;;  %v6370_v10 = vld [vmem:[%s9512_s3 + $0xb8] sm:$0xff] }
  0x68   : > { %6935 = vmatprep.subr.mxu0 %v8118_v14  ;;  %7700 = vmatprep.subr.bf16.mxu1 %v8116_v5  ;;  %v2569_v19 = vand.u32 4294901760, %v6369_v9 }
  0x69   : > { %6950 = vmatprep.mubr.msk.f32.mxu1 %vm8117_vm3, %v8118_v14 }
  0x6b   : > { %6936 = vmatpush3.msra.mxu0 %v1144_v30  ;;  %7702 = vmatpush3.bf16.msra.mxu1 %v8406_v25  ;;  %v2055_v25 = vand.u32 4294901760, %v6363_v21 }
  0x6c   : > { %6938 = vmatmul.mubr.f32.vlgmr.msra.gmra.mrb[10].mxu0 %v8359_v4  ;;  %7703 = vmatprep.subr.bf16.mxu0 %v8116_v5 }
  0x6d   : > { %7705 = vmatpush3.bf16.msra.mxu0 %v8511_v61  ;;  %6948 = vmatprep.subr.mxu1 %v8118_v14  ;;  %v8583_v23 = vsub.f32 %v6363_v21, %v2055_v25  ;;  %v8725_v21 = vsub.f32 %v6369_v9, %v2569_v19 }
  0x6e   : > { %7706 = vmatprep.subr.bf16.mxu0 %v8116_v5  ;;  %6963 = vmatprep.mubr.msk.f32.mxu0 %vm8117_vm3, %v8118_v14 }
  0x6f   : > { %6949 = vmatpush3.msra.mxu1 %v8369_v7  ;;  %v7716_v7 = vpack.c.bf16 %v8458_v43, %v8456_v42  ;;  %v2141_v37 = vand.u32 4294901760, %v8583_v23  ;;  %v2155_v42 = vand.u32 4294901760, %v8599_v34  ;;  %v8633_v43 = vsub.f32 %v2049_v13, %v8608_v38 }
  0x70   : > { %6951 = vmatmul.mubr.f32.vlgmr.msra.gmra.mrb[10].mxu1 %v8359_v4  ;;  %7709 = vmatprep.subr.bf16.mxu1 %v8116_v5  ;;  %v6362_v4 = vld [vmem:[%s9512_s3 + $0x78] sm:$0xff]  ;;  %v2659_v31 = vand.u32 4294901760, %v8725_v21 }
  0x71   : > { %7708 = vmatpush3.bf16.msra.mxu0 %v8531_v6  ;;  %7711 = vmatpush3.bf16.msra.mxu1 %v7710_v8  ;;  %v2052_v24 = vand.u32 4294901760, %v6362_v4  ;;  %v2142_v11 = vsub.f32 %v8583_v23, %v2141_v37  ;;  %v2156_v49 = vsub.f32 %v8599_v34, %v2155_v42  ;;  %v2123_v50 = vand.u32 4294901760, %v8633_v43 }
  0x72   : > { %6961 = vmatprep.subr.mxu0 %v8118_v14  ;;  %7712 = vmatprep.subr.bf16.mxu1 %v8116_v5  ;;  %v2566_v8 = vand.u32 4294901760, %v6368_v63  ;;  %v7767_v27 = vpack.c.bf16 %v2155_v42, %v2148_v41 }
  0x73   : > { %6976 = vmatprep.mubr.msk.f32.mxu1 %vm8117_vm3, %v8118_v14  ;;  %v8581_v30 = vsub.f32 %v6362_v4, %v2052_v24  ;;  %v8637_v44 = vpack.c.bf16 %v2055_v25, %v2052_v24  ;;  %v2143_v47 = vand.u32 4294901760, %v2142_v11  ;;  %v2157_v56 = vand.u32 4294901760, %v2156_v49  ;;  %v6373_v49 = vld [vmem:[%s9512_s3 + $0xd0] sm:$0xff] }
  0x74   : > { %v2124_v58 = vsub.f32 %v8633_v43, %v2123_v50 }
  0x75   : > { %6962 = vmatpush3.msra.mxu0 %v8492_v55  ;;  %7714 = vmatpush3.bf16.msra.mxu1 %v7713_v18  ;;  %v2134_v36 = vand.u32 4294901760, %v8581_v30  ;;  %v7749_v59 = vpack.c.bf16 %v2157_v56, %v2150_v54  ;;  %v8712_v18 = vsub.f32 %v6368_v63, %v2566_v8 }
  0x76   : > { %7715 = vmatprep.subr.bf16.mxu0 %v8116_v5  ;;  %6964 = vmatmul.mubr.f32.vlgmr.msra.gmra.mrb[12].mxu0 %v1617_v20  ;;  %v2572_v20 = vand.u32 4294901760, %v6370_v10 }
  0x77   : > { %7717 = vmatpush3.bf16.msra.mxu0 %v7716_v7  ;;  %6974 = vmatprep.subr.mxu1 %v8118_v14  ;;  %v2135_v15 = vsub.f32 %v8581_v30, %v2134_v36  ;;  %v7764_v7 = vpack.c.bf16 %v2141_v37, %v2134_v36  ;;  %v2652_v25 = vand.u32 4294901760, %v8712_v18  ;;  %v2660_v37 = vsub.f32 %v8725_v21, %v2659_v31 }
  0x78   : > { %7718 = vmatprep.subr.bf16.mxu0 %v8116_v5  ;;  %6989 = vmatprep.mubr.msk.f32.mxu0 %vm8117_vm3, %v8118_v14  ;;  %v8785_v11 = vpack.c.bf16 %v2572_v20, %v2569_v19 }
  0x79   : > { %6975 = vmatpush3.msra.mxu1 %v1656_v22  ;;  %v2136_v46 = vand.u32 4294901760, %v2135_v15  ;;  %v8727_v22 = vsub.f32 %v6370_v10, %v2572_v20  ;;  %v2653_v29 = vsub.f32 %v8712_v18, %v2652_v25  ;;  %v2661_v42 = vand.u32 4294901760, %v2660_v37 }
  0x7a   : > { %6977 = vmatmul.mubr.f32.vlgmr.msra.gmra.mrb[12].mxu1 %v8482_v53  ;;  %7721 = vmatprep.subr.bf16.mxu1 %v8116_v5 }
  0x7b   : > { %7720 = vmatpush3.bf16.msra.mxu0 %v7719_v17  ;;  %7723 = vmatpush3.bf16.msra.mxu1 %v8511_v61  ;;  %v7746_v52 = vpack.c.bf16 %v2143_v47, %v2136_v46  ;;  %v6371_v17 = vld [vmem:[%s9512_s3 + $0xc0] sm:$0xff]  ;;  %v2654_v36 = vand.u32 4294901760, %v2653_v29  ;;  %v7791_v54 = vpack.c.bf16 %v8727_v22, %v8725_v21 }
  0x7c   : > { %6987 = vmatprep.subr.mxu0 %v8118_v14  ;;  %7724 = vmatprep.subr.bf16.mxu1 %v8116_v5 }
  0x7d   : > { %7002 = vmatprep.mubr.msk.f32.mxu1 %vm8117_vm3, %v8118_v14 }
  0x7f   : > { %6988 = vmatpush3.msra.mxu0 %v8515_v62  ;;  %7726 = vmatpush3.bf16.msra.mxu1 %v8531_v6  ;;  %v6367_v62 = vld [vmem:[%s9512_s3 + $0xa0] sm:$0xff] }
  0x80   : > { %6990 = vmatmul.mubr.f32.vlgmr.msra.gmra.mrb[14].mxu0 %v8507_v60  ;;  %7727 = vmatprep.subr.bf16.mxu0 %v8116_v5  ;;  %v2163_v60 = vsub.f32 %v8641_v45, %v2162_v57 }
  0x81   : > { %7729 = vmatpush3.bf16.msra.mxu0 %v7728_v32  ;;  %7000 = vmatprep.subr.mxu1 %v8118_v14  ;;  %v2666_v32 = vand.u32 4294901760, %v8727_v22 }
  0x82   : > { %7730 = vmatprep.subr.bf16.mxu0 %v8116_v5  ;;  %7015 = vmatprep.mubr.msk.f32.mxu0 %vm8117_vm3, %v8118_v14  ;;  %v2164_v0 = vand.u32 4294901760, %v2163_v60 }
  0x83   : > { %7001 = vmatpush3.msra.mxu1 %v8492_v55  ;;  %v7803_v9 = vpack.c.bf16 %v2666_v32, %v2659_v31 }
  0x84   : > { %7003 = vmatmul.mubr.f32.vlgmr.msra.gmra.mrb[14].mxu1 %v1615_v3  ;;  %7733 = vmatprep.subr.bf16.mxu1 %v8116_v5  ;;  %v7755_v3 = vpack.c.bf16 %v8599_v34, %v8597_v33 }
  0x85   : > { %7732 = vmatpush3.bf16.msra.mxu0 %v7731_v39  ;;  %7735 = vmatpush3.bf16.msra.mxu1 %v8511_v61  ;;  %v2125_v61 = vand.u32 4294901760, %v2124_v58  ;;  %v2667_v39 = vsub.f32 %v8727_v22, %v2666_v32  ;;  %v6375_v58 = vld [vmem:[%s9512_s3 + $0xe0] sm:$0xff] }
  0x86   : > { %7013 = vmatprep.subr.mxu0 %v8118_v14  ;;  %7736 = vmatprep.subr.bf16.mxu1 %v8116_v5 }
  0x87   : > { %7028 = vmatprep.mubr.msk.f32.mxu1 %vm8117_vm3, %v8118_v14 }
  0x89   : > { %7014 = vmatpush3.msra.mxu0 %v1654_v12  ;;  %7738 = vmatpush3.bf16.msra.mxu1 %v8531_v6  ;;  %v2563_v6 = vand.u32 4294901760, %v6367_v62 }
  0x8a   : > { %7016 = vmatmul.mubr.f32.vlgmr.msra.gmra.mrb[16].mxu0 %v8482_v53  ;;  %7739 = vmatprep.subr.bf16.mxu0 %v8116_v5 }
  0x8b   : > { %7741 = vmatpush3.bf16.msra.mxu0 %v8637_v44  ;;  %7026 = vmatprep.subr.mxu1 %v8118_v14  ;;  %v8710_v16 = vsub.f32 %v6367_v62, %v2563_v6  ;;  %v8765_v33 = vpack.c.bf16 %v2566_v8, %v2563_v6 }
  0x8c   : > { %7742 = vmatprep.subr.bf16.mxu0 %v8116_v5  ;;  %7041 = vmatprep.mubr.msk.f32.mxu0 %vm8117_vm3, %v8118_v14 }
  0x8d   : > { %7027 = vmatpush3.msra.mxu1 %v8492_v55  ;;  %v7752_v55 = vpack.c.bf16 %v8583_v23, %v8581_v30  ;;  %v2645_v24 = vand.u32 4294901760, %v8710_v16  ;;  %v8746_v30 = vand.u32 4294901760, %v6371_v17 }
  0x8e   : > { %7029 = vmatmul.mubr.f32.vlgmr.msra.gmra.mrb[16].mxu1 %v8482_v53  ;;  %7745 = vmatprep.subr.bf16.mxu1 %v8116_v5  ;;  %v8682_v53 = vld [vmem:[%s8216_s14 + $0x8] sm:$0x3] }
  0x8f   : > { %7744 = vmatpush3.bf16.msra.mxu0 %v8657_v51  ;;  %7747 = vmatpush3.bf16.msra.mxu1 %v7746_v52  ;;  %v2558_v2 = vrot.slane %v8682_v53, 1  ;;  %v2646_v23 = vsub.f32 %v8710_v16, %v2645_v24  ;;  %v8769_v34 = vsub.f32 %v6371_v17, %v8746_v30  ;;  %v3068_v52 = vrot.slane %v8682_v53, 2 }
  0x90   : > { %7039 = vmatprep.subr.mxu0 %v8118_v14  ;;  %7748 = vmatprep.subr.bf16.mxu1 %v8116_v5  ;;  %v3082_v53 = vand.u32 4294901760, %v6375_v58  ;;  %v7800_v62 = vpack.c.bf16 %v2652_v25, %v2645_v24 }
  0x91   : > { %7054 = vmatprep.mubr.msk.f32.mxu1 %vm8117_vm3, %v8118_v14  ;;  %v2559_v12 = vsel %vm527_vm4, %v2557_v1, %v2558_v2  ;;  %v2647_v35 = vand.u32 4294901760, %v2646_v23  ;;  %v6376_v2 = vld [vmem:[%s9512_s3 + $0xe8] sm:$0xff] }
  0x92   : > { %v2560_v4 = vsel %vm498_vm1, %v2559_v12, 0  ;;  %v8852_v1 = vsub.f32 %v6375_v58, %v3082_v53  ;;  %v8871_v10 = vand.u32 4294901760, %v6376_v2 }
  0x93   : > { %7040 = vmatpush3.msra.mxu0 %v8618_v40  ;;  %7750 = vmatpush3.bf16.msra.mxu1 %v7749_v59  ;;  %v8736_v26 = vand.u32 4294901760, %v2560_v4  ;;  %v7782_v41 = vpack.c.bf16 %v2654_v36, %v2647_v35  ;;  %v6378_v36 = vld [vmem:[%s9512_s3 + $0xf8] sm:$0xff] }
  0x94   : > { %7751 = vmatprep.subr.bf16.mxu0 %v8116_v5  ;;  %7042 = vmatmul.mubr.f32.vlgmr.msra.gmra.mrb[18].mxu0 %v2125_v61  ;;  %v3176_v19 = vand.u32 4294901760, %v8852_v1 }
  0x95   : > { %7753 = vmatpush3.bf16.msra.mxu0 %v7752_v55  ;;  %7052 = vmatprep.subr.mxu1 %v8118_v14  ;;  %v8761_v13 = vsub.f32 %v2560_v4, %v8736_v26  ;;  %v8894_v4 = vsub.f32 %v6376_v2, %v8871_v10 }
  0x96   : > { %7754 = vmatprep.subr.bf16.mxu0 %v8116_v5  ;;  %7067 = vmatprep.mubr.msk.f32.mxu0 %vm8117_vm3, %v8118_v14  ;;  %v3177_v24 = vsub.f32 %v8852_v1, %v3176_v19 }
  0x97   : > { %7053 = vmatpush3.msra.mxu1 %v2164_v0  ;;  %v2634_v15 = vand.u32 4294901760, %v8761_v13  ;;  %v3183_v32 = vand.u32 4294901760, %v8894_v4 }
  0x98   : > { %7055 = vmatmul.mubr.f32.vlgmr.msra.gmra.mrb[18].mxu1 %v8608_v38  ;;  %7757 = vmatprep.subr.bf16.mxu1 %v8116_v5  ;;  %v3178_v31 = vand.u32 4294901760, %v3177_v24 }
  0x99   : > { %7756 = vmatpush3.bf16.msra.mxu0 %v7755_v3  ;;  %7759 = vmatpush3.bf16.msra.mxu1 %v8637_v44 }
  0x9a   : > { %7065 = vmatprep.subr.mxu0 %v8118_v14  ;;  %7760 = vmatprep.subr.bf16.mxu1 %v8116_v5 }
  0x9b   : > { %7080 = vmatprep.mubr.msk.f32.mxu1 %vm8117_vm3, %v8118_v14 }
  0x9d   : > { %7066 = vmatpush3.msra.mxu0 %v8641_v45  ;;  %7762 = vmatpush3.bf16.msra.mxu1 %v8657_v51  ;;  %v2635_v45 = vsub.f32 %v8761_v13, %v2634_v15 }
  0x9e   : > { %7068 = vmatmul.mubr.f32.vlgmr.msra.gmra.mrb[20].mxu0 %v8633_v43  ;;  %7763 = vmatprep.subr.bf16.mxu0 %v8116_v5  ;;  %v2668_v43 = vand.u32 4294901760, %v2667_v39 }
  0x9f   : > { %7765 = vmatpush3.bf16.msra.mxu0 %v7764_v7  ;;  %7078 = vmatprep.subr.mxu1 %v8118_v14  ;;  %v2636_v48 = vand.u32 4294901760, %v2635_v45 }
  0xa0   : > { %7766 = vmatprep.subr.bf16.mxu0 %v8116_v5  ;;  %7093 = vmatprep.mubr.msk.f32.mxu0 %vm8117_vm3, %v8118_v14  ;;  %v7785_v46 = vpack.c.bf16 %v2668_v43, %v2661_v42  ;;  %v6380_v42 = vld [vmem:[%s9512_s3 + $0x108] sm:$0xff]  ;;  %v8957_v43 = vld [vmem:[%s8231_s8] sm:$0xff] }
  0xa1   : > { %7079 = vmatpush3.msra.mxu1 %v8618_v40 }
  0xa2   : > { %7081 = vmatmul.mubr.f32.vlgmr.msra.gmra.mrb[20].mxu1 %v2123_v50  ;;  %7769 = vmatprep.subr.bf16.mxu1 %v8116_v5 }
  0xa3   : > { %7768 = vmatpush3.bf16.msra.mxu0 %v7767_v27  ;;  %7771 = vmatpush3.bf16.msra.mxu1 %v8637_v44  ;;  %v2673_v44 = vand.u32 4294901760, %v8769_v34 }
  0xa4   : > { %7091 = vmatprep.subr.mxu0 %v8118_v14  ;;  %7772 = vmatprep.subr.bf16.mxu1 %v8116_v5 }
  0xa5   : > { %7106 = vmatprep.mubr.msk.f32.mxu1 %vm8117_vm3, %v8118_v14  ;;  %v2674_v47 = vsub.f32 %v8769_v34, %v2673_v44 }
  0xa7   : > { %7092 = vmatpush3.msra.mxu0 %v2162_v57  ;;  %7774 = vmatpush3.bf16.msra.mxu1 %v8657_v51  ;;  %v2675_v50 = vand.u32 4294901760, %v2674_v47  ;;  %v3067_v51 = vrot.slane %v8578_v28, 2  ;;  %v3076_v57 = vand.u32 4294901760, %v6373_v49  ;;  %v6374_v28 = vld [vmem:[%s9512_s3 + $0xd8] sm:$0xff]  ;;  %v3590_v47 = vand.u32 4294901760, %v6380_v42 }
  0xa8   : > { %7094 = vmatmul.mubr.f32.vlgmr.msra.gmra.mrb[22].mxu0 %v8608_v38  ;;  %7775 = vmatprep.subr.bf16.mxu0 %v8116_v5  ;;  %v3079_v55 = vand.u32 4294901760, %v6374_v28 }
  0xa9   : > { %7777 = vmatpush3.bf16.msra.mxu0 %v8765_v33  ;;  %7104 = vmatprep.subr.mxu1 %v8118_v14  ;;  %v3069_v59 = vsel %vm1537_vm5, %v3067_v51, %v3068_v52  ;;  %v8837_v61 = vsub.f32 %v6373_v49, %v3076_v57  ;;  %v8978_v49 = vsub.f32 %v6380_v42, %v3590_v47 }
  0xaa   : > { %7778 = vmatprep.subr.bf16.mxu0 %v8116_v5  ;;  %7119 = vmatprep.mubr.msk.f32.mxu0 %vm8117_vm3, %v8118_v14  ;;  %v3070_v63 = vsel %vm498_vm1, %v3069_v59, 0  ;;  %v8850_v0 = vsub.f32 %v6374_v28, %v3079_v55  ;;  %v8910_v27 = vpack.c.bf16 %v3082_v53, %v3079_v55 }
  0xab   : > { %7105 = vmatpush3.msra.mxu1 %v8618_v40  ;;  %v7788_v40 = vpack.c.bf16 %v8712_v18, %v8710_v16  ;;  %v3162_v6 = vand.u32 4294901760, %v8837_v61  ;;  %v8861_v8 = vand.u32 4294901760, %v3070_v63 }
  0xac   : > { %7107 = vmatmul.mubr.f32.vlgmr.msra.gmra.mrb[22].mxu1 %v8608_v38  ;;  %7781 = vmatprep.subr.bf16.mxu1 %v8116_v5  ;;  %v6372_v38 = vld [vmem:[%s9512_s3 + $0xc8] sm:$0xff]  ;;  %v3169_v18 = vand.u32 4294901760, %v8850_v0  ;;  %v7827_v39 = vpack.c.bf16 %v8852_v1, %v8850_v0 }
  0xad   : > { %7780 = vmatpush3.bf16.msra.mxu0 %v8785_v11  ;;  %7783 = vmatpush3.bf16.msra.mxu1 %v7782_v41  ;;  %v3073_v56 = vand.u32 4294901760, %v6372_v38  ;;  %v3163_v16 = vsub.f32 %v8837_v61, %v3162_v6  ;;  %v8886_v20 = vsub.f32 %v3070_v63, %v8861_v8  ;;  %v6379_v41 = vld [vmem:[%s9512_s3 + $0x100] sm:$0xff] }
  0xae   : > { %7117 = vmatprep.subr.mxu0 %v8118_v14  ;;  %7784 = vmatprep.subr.bf16.mxu1 %v8116_v5  ;;  %v3170_v17 = vsub.f32 %v8850_v0, %v3169_v18 }
  0xaf   : > { %7132 = vmatprep.mubr.msk.f32.mxu1 %vm8117_vm3, %v8118_v14  ;;  %v8835_v60 = vsub.f32 %v6372_v38, %v3073_v56  ;;  %v8890_v7 = vpack.c.bf16 %v3076_v57, %v3073_v56  ;;  %v3164_v22 = vand.u32 4294901760, %v3163_v16  ;;  %v3144_v25 = vand.u32 4294901760, %v8886_v20 }
  0xb0   : > { %v3171_v29 = vand.u32 4294901760, %v3170_v17  ;;  %v7839_v56 = vpack.c.bf16 %v3176_v19, %v3169_v18  ;;  %v4086_v17 = vrot.slane %v8957_v43, 1 }
  0xb1   : > { %7118 = vmatpush3.msra.mxu0 %v8746_v30  ;;  %7786 = vmatpush3.bf16.msra.mxu1 %v7785_v46  ;;  %v3155_v3 = vand.u32 4294901760, %v8835_v60  ;;  %v3587_v46 = vand.u32 4294901760, %v6379_v41 }
  0xb2   : > { %7787 = vmatprep.subr.bf16.mxu0 %v8116_v5  ;;  %7120 = vmatmul.mubr.f32.vlgmr.msra.gmra.mrb[24].mxu0 %v2636_v48 }
  0xb3   : > { %7789 = vmatpush3.bf16.msra.mxu0 %v7788_v40  ;;  %7130 = vmatprep.subr.mxu1 %v8118_v14  ;;  %v3156_v12 = vsub.f32 %v8835_v60, %v3155_v3  ;;  %v7836_v48 = vpack.c.bf16 %v3162_v6, %v3155_v3  ;;  %v3578_v40 = vsel %vm498_vm1, %v8957_v43, 0  ;;  %v8976_v38 = vsub.f32 %v6379_v41, %v3587_v46 }
  0xb4   : > { %7790 = vmatprep.subr.bf16.mxu0 %v8116_v5  ;;  %7145 = vmatprep.mubr.msk.f32.mxu0 %vm8117_vm3, %v8118_v14  ;;  %v9036_v3 = vpack.c.bf16 %v3590_v47, %v3587_v46 }
  0xb5   : > { %7131 = vmatpush3.msra.mxu1 %v2675_v50  ;;  %v3157_v21 = vand.u32 4294901760, %v3156_v12  ;;  %v6381_v50 = vld [vmem:[%s9512_s3 + $0x110] sm:$0xff]  ;;  %v3677_v59 = vand.u32 4294901760, %v8976_v38 }
  0xb6   : > { %7133 = vmatmul.mubr.f32.vlgmr.msra.gmra.mrb[24].mxu1 %v8736_v26  ;;  %7793 = vmatprep.subr.bf16.mxu1 %v8116_v5  ;;  %v8997_v57 = vand.u32 4294901760, %v6381_v50 }
  0xb7   : > { %7792 = vmatpush3.bf16.msra.mxu0 %v7791_v54  ;;  %7795 = vmatpush3.bf16.msra.mxu1 %v8765_v33  ;;  %v7818_v23 = vpack.c.bf16 %v3164_v22, %v3157_v21  ;;  %v8987_v54 = vand.u32 4294901760, %v3578_v40  ;;  %v3678_v0 = vsub.f32 %v8976_v38, %v3677_v59  ;;  %v6383_v21 = vld [vmem:[%s9512_s3 + $0x120] sm:$0xff] }
  0xb8   : > { %7143 = vmatprep.subr.mxu0 %v8118_v14  ;;  %7796 = vmatprep.subr.bf16.mxu1 %v8116_v5  ;;  %v9020_v53 = vsub.f32 %v6381_v50, %v8997_v57 }
  0xb9   : > { %7158 = vmatprep.mubr.msk.f32.mxu1 %vm8117_vm3, %v8118_v14 }
  0xba   : > { %v3691_v16 = vand.u32 4294901760, %v9020_v53 }
  0xbb   : > { %7144 = vmatpush3.msra.mxu0 %v8769_v34  ;;  %7798 = vmatpush3.bf16.msra.mxu1 %v8785_v11  ;;  %v3184_v34 = vsub.f32 %v8894_v4, %v3183_v32 }
  0xbc   : > { %7146 = vmatmul.mubr.f32.vlgmr.msra.gmra.mrb[26].mxu0 %v8761_v13  ;;  %7799 = vmatprep.subr.bf16.mxu0 %v8116_v5  ;;  %v3145_v13 = vsub.f32 %v8886_v20, %v3144_v25 }
  0xbd   : > { %7801 = vmatpush3.bf16.msra.mxu0 %v7800_v62  ;;  %7156 = vmatprep.subr.mxu1 %v8118_v14  ;;  %v3185_v37 = vand.u32 4294901760, %v3184_v34 }
  0xbe   : > { %7802 = vmatprep.subr.bf16.mxu0 %v8116_v5  ;;  %7171 = vmatprep.mubr.msk.f32.mxu0 %vm8117_vm3, %v8118_v14  ;;  %v3146_v35 = vand.u32 4294901760, %v3145_v13 }
  0xbf   : > { %7157 = vmatpush3.msra.mxu1 %v8746_v30 }
  0xc0   : > { %7159 = vmatmul.mubr.f32.vlgmr.msra.gmra.mrb[26].mxu1 %v2634_v15  ;;  %7805 = vmatprep.subr.bf16.mxu1 %v8116_v5 }
  0xc1   : > { %7804 = vmatpush3.bf16.msra.mxu0 %v7803_v9  ;;  %7807 = vmatpush3.bf16.msra.mxu1 %v8765_v33  ;;  %v7821_v33 = vpack.c.bf16 %v3178_v31, %v3171_v29  ;;  %v3679_v9 = vand.u32 4294901760, %v3678_v0  ;;  %v6384_v29 = vld [vmem:[%s9512_s3 + $0x128] sm:$0xff]  ;;  %v6385_v31 = vld [vmem:[%s9512_s3 + $0x130] sm:$0xff] }
  0xc2   : > { %7169 = vmatprep.subr.mxu0 %v8118_v14  ;;  %7808 = vmatprep.subr.bf16.mxu1 %v8116_v5  ;;  %v4098_v34 = vand.u32 4294901760, %v6384_v29 }
  0xc3   : > { %7184 = vmatprep.mubr.msk.f32.mxu1 %vm8117_vm3, %v8118_v14 }
  0xc5   : > { %7170 = vmatpush3.msra.mxu0 %v2673_v44  ;;  %7810 = vmatpush3.bf16.msra.mxu1 %v8785_v11  ;;  %v3584_v11 = vand.u32 4294901760, %v6378_v36 }
  0xc6   : > { %7172 = vmatmul.mubr.f32.vlgmr.msra.gmra.mrb[28].mxu0 %v8736_v26  ;;  %7811 = vmatprep.subr.bf16.mxu0 %v8116_v5 }
  0xc7   : > { %7813 = vmatpush3.bf16.msra.mxu0 %v8890_v7  ;;  %7182 = vmatprep.subr.mxu1 %v8118_v14  ;;  %v8962_v45 = vsub.f32 %v6378_v36, %v3584_v11 }
  0xc8   : > { %7814 = vmatprep.subr.bf16.mxu0 %v8116_v5  ;;  %7197 = vmatprep.mubr.msk.f32.mxu0 %vm8117_vm3, %v8118_v14 }
  0xc9   : > { %7183 = vmatpush3.msra.mxu1 %v8746_v30  ;;  %v7824_v30 = vpack.c.bf16 %v8837_v61, %v8835_v60  ;;  %v3670_v52 = vand.u32 4294901760, %v8962_v45  ;;  %v3684_v60 = vand.u32 4294901760, %v8978_v49  ;;  %v9012_v61 = vsub.f32 %v3578_v40, %v8987_v54 }
  0xca   : > { %7185 = vmatmul.mubr.f32.vlgmr.msra.gmra.mrb[28].mxu1 %v8736_v26  ;;  %7817 = vmatprep.subr.bf16.mxu1 %v8116_v5  ;;  %v6377_v26 = vld [vmem:[%s9512_s3 + $0xf0] sm:$0xff] }
  0xcb   : > { %7816 = vmatpush3.bf16.msra.mxu0 %v8910_v27  ;;  %7819 = vmatpush3.bf16.msra.mxu1 %v7818_v23  ;;  %v3581_v15 = vand.u32 4294901760, %v6377_v26  ;;  %v3671_v58 = vsub.f32 %v8962_v45, %v3670_v52  ;;  %v3685_v1 = vsub.f32 %v8978_v49, %v3684_v60  ;;  %v3652_v2 = vand.u32 4294901760, %v9012_v61 }
  0xcc   : > { %7195 = vmatprep.subr.mxu0 %v8118_v14  ;;  %7820 = vmatprep.subr.bf16.mxu1 %v8116_v5  ;;  %v4095_v23 = vand.u32 4294901760, %v6383_v21  ;;  %v7875_v42 = vpack.c.bf16 %v3684_v60, %v3677_v59 }
  0xcd   : > { %7210 = vmatprep.mubr.msk.f32.mxu1 %vm8117_vm3, %v8118_v14  ;;  %v8960_v44 = vsub.f32 %v6377_v26, %v3581_v15  ;;  %v9016_v55 = vpack.c.bf16 %v3584_v11, %v3581_v15  ;;  %v3672_v63 = vand.u32 4294901760, %v3671_v58  ;;  %v3686_v12 = vand.u32 4294901760, %v3685_v1  ;;  %v6386_v11 = vld [vmem:[%s9512_s3 + $0x138] sm:$0xff]  ;;  %v9196_v1 = vld [vmem:[%s9512_s3 + $0x148] sm:$0xff] }
  0xce   : > { %v3653_v18 = vsub.f32 %v9012_v61, %v3652_v2 }
  0xcf   : > { %7196 = vmatpush3.msra.mxu0 %v8871_v10  ;;  %7822 = vmatpush3.bf16.msra.mxu1 %v7821_v33  ;;  %v3663_v51 = vand.u32 4294901760, %v8960_v44  ;;  %v7857_v19 = vpack.c.bf16 %v3686_v12, %v3679_v9  ;;  %v9091_v33 = vsub.f32 %v6383_v21, %v4095_v23 }
  0xd0   : > { %7823 = vmatprep.subr.bf16.mxu0 %v8116_v5  ;;  %7198 = vmatmul.mubr.f32.vlgmr.msra.gmra.mrb[30].mxu0 %v3146_v35  ;;  %v4101_v35 = vand.u32 4294901760, %v6385_v31 }
  0xd1   : > { %7825 = vmatpush3.bf16.msra.mxu0 %v7824_v30  ;;  %7208 = vmatprep.subr.mxu1 %v8118_v14  ;;  %v3664_v28 = vsub.f32 %v8960_v44, %v3663_v51  ;;  %v7872_v30 = vpack.c.bf16 %v3670_v52, %v3663_v51  ;;  %v4181_v15 = vand.u32 4294901760, %v9091_v33 }
  0xd2   : > { %7826 = vmatprep.subr.bf16.mxu0 %v8116_v5  ;;  %7223 = vmatprep.mubr.msk.f32.mxu0 %vm8117_vm3, %v8118_v14  ;;  %v9164_v58 = vpack.c.bf16 %v4101_v35, %v4098_v34 }
  0xd3   : > { %7209 = vmatpush3.msra.mxu1 %v3185_v37  ;;  %v3665_v62 = vand.u32 4294901760, %v3664_v28  ;;  %v9105_v37 = vsub.f32 %v6384_v29, %v4098_v34  ;;  %v4182_v46 = vsub.f32 %v9091_v33, %v4181_v15 }
  0xd4   : > { %7211 = vmatmul.mubr.f32.vlgmr.msra.gmra.mrb[30].mxu1 %v8861_v8  ;;  %7829 = vmatprep.subr.bf16.mxu1 %v8116_v5 }
  0xd5   : > { %7828 = vmatpush3.bf16.msra.mxu0 %v7827_v39  ;;  %7831 = vmatpush3.bf16.msra.mxu1 %v8890_v7  ;;  %v7854_v6 = vpack.c.bf16 %v3672_v63, %v3665_v62  ;;  %v9107_v39 = vsub.f32 %v6385_v31, %v4101_v35  ;;  %v4188_v47 = vand.u32 4294901760, %v9105_v37  ;;  %v4183_v51 = vand.u32 4294901760, %v4182_v46 }
  0xd6   : > { %7221 = vmatprep.subr.mxu0 %v8118_v14  ;;  %7832 = vmatprep.subr.bf16.mxu1 %v8116_v5 }
  0xd7   : > { %7236 = vmatprep.mubr.msk.f32.mxu1 %vm8117_vm3, %v8118_v14  ;;  %v4189_v52 = vsub.f32 %v9105_v37, %v4188_v47  ;;  %v7899_v12 = vpack.c.bf16 %v9107_v39, %v9105_v37 }
  0xd9   : > { %7222 = vmatpush3.msra.mxu0 %v8894_v4  ;;  %7834 = vmatpush3.bf16.msra.mxu1 %v8910_v27  ;;  %v9064_v4 = vld [vmem:[%s8231_s8 + $0x8] sm:$0x3]  ;;  %v4190_v60 = vand.u32 4294901760, %v4189_v52 }
  0xda   : > { %7224 = vmatmul.mubr.f32.vlgmr.msra.gmra.mrb[32].mxu0 %v8886_v20  ;;  %7835 = vmatprep.subr.bf16.mxu0 %v8116_v5  ;;  %v3692_v20 = vsub.f32 %v9020_v53, %v3691_v16  ;;  %v4597_v9 = vrot.slane %v9064_v4, 2 }
  0xdb   : > { %7837 = vmatpush3.bf16.msra.mxu0 %v7836_v48  ;;  %7234 = vmatprep.subr.mxu1 %v8118_v14  ;;  %v4195_v48 = vand.u32 4294901760, %v9107_v39 }
  0xdc   : > { %7838 = vmatprep.subr.bf16.mxu0 %v8116_v5  ;;  %7249 = vmatprep.mubr.msk.f32.mxu0 %vm8117_vm3, %v8118_v14  ;;  %v3693_v22 = vand.u32 4294901760, %v3692_v20  ;;  %v9218_v20 = vld [vmem:[%s9512_s3 + $0x158] sm:$0xff] }
  0xdd   : > { %7235 = vmatpush3.msra.mxu1 %v8871_v10  ;;  %v7911_v35 = vpack.c.bf16 %v4195_v48, %v4188_v47 }
  0xde   : > { %7237 = vmatmul.mubr.f32.vlgmr.msra.gmra.mrb[32].mxu1 %v3144_v25  ;;  %7841 = vmatprep.subr.bf16.mxu1 %v8116_v5  ;;  %v4087_v25 = vrot.slane %v9064_v4, 1 }
  0xdf   : > { %7840 = vmatpush3.bf16.msra.mxu0 %v7839_v56  ;;  %7843 = vmatpush3.bf16.msra.mxu1 %v8890_v7  ;;  %v3654_v7 = vand.u32 4294901760, %v3653_v18  ;;  %v4196_v56 = vsub.f32 %v9107_v39, %v4195_v48  ;;  %v4605_v18 = vand.u32 4294901760, %v9196_v1 }
  0xe0   : > { %7247 = vmatprep.subr.mxu0 %v8118_v14  ;;  %7844 = vmatprep.subr.bf16.mxu1 %v8116_v5  ;;  %v4088_v13 = vsel %vm527_vm4, %v4086_v17, %v4087_v25 }
  0xe1   : > { %7262 = vmatprep.mubr.msk.f32.mxu1 %vm8117_vm3, %v8118_v14  ;;  %v4089_v26 = vsel %vm498_vm1, %v4088_v13, 0  ;;  %v9230_v4 = vsub.f32 %v9196_v1, %v4605_v18  ;;  %v6391_v13 = vld [vmem:[%s9512_s3 + $0x160] sm:$0xff] }
  0xe2   : > { %v9115_v41 = vand.u32 4294901760, %v4089_v26 }
  0xe3   : > { %7248 = vmatpush3.msra.mxu0 %v3183_v32  ;;  %7846 = vmatpush3.bf16.msra.mxu1 %v8910_v27  ;;  %v7863_v27 = vpack.c.bf16 %v8978_v49, %v8976_v38 }
  0xe4   : > { %7250 = vmatmul.mubr.f32.vlgmr.msra.gmra.mrb[34].mxu0 %v8861_v8  ;;  %7847 = vmatprep.subr.bf16.mxu0 %v8116_v5  ;;  %v9140_v40 = vsub.f32 %v4089_v26, %v9115_v41 }
  0xe5   : > { %7849 = vmatpush3.bf16.msra.mxu0 %v9016_v55  ;;  %7260 = vmatprep.subr.mxu1 %v8118_v14 }
  0xe6   : > { %7850 = vmatprep.subr.bf16.mxu0 %v8116_v5  ;;  %7275 = vmatprep.mubr.msk.f32.mxu0 %vm8117_vm3, %v8118_v14  ;;  %v4163_v28 = vand.u32 4294901760, %v9140_v40 }
  0xe7   : > { %7261 = vmatpush3.msra.mxu1 %v8871_v10  ;;  %v7860_v10 = vpack.c.bf16 %v8962_v45, %v8960_v44  ;;  %v9129_v45 = vand.u32 4294901760, %v6386_v11 }
  0xe8   : > { %7263 = vmatmul.mubr.f32.vlgmr.msra.gmra.mrb[34].mxu1 %v8861_v8  ;;  %7853 = vmatprep.subr.bf16.mxu1 %v8116_v5  ;;  %v6382_v8 = vld [vmem:[%s9512_s3 + $0x118] sm:$0xff] }
  0xe9   : > { %7852 = vmatpush3.bf16.msra.mxu0 %v9036_v3  ;;  %7855 = vmatpush3.bf16.msra.mxu1 %v7854_v6  ;;  %v4092_v24 = vand.u32 4294901760, %v6382_v8  ;;  %v9150_v50 = vsub.f32 %v6386_v11, %v9129_v45 }
  0xea   : > { %7273 = vmatprep.subr.mxu0 %v8118_v14  ;;  %7856 = vmatprep.subr.bf16.mxu1 %v8116_v5 }
  0xeb   : > { %7288 = vmatprep.mubr.msk.f32.mxu1 %vm8117_vm3, %v8118_v14  ;;  %v9087_v32 = vsub.f32 %v6382_v8, %v4092_v24  ;;  %v9144_v38 = vpack.c.bf16 %v4095_v23, %v4092_v24 }
  0xed   : > { %7274 = vmatpush3.msra.mxu0 %v8997_v57  ;;  %7858 = vmatpush3.bf16.msra.mxu1 %v7857_v19  ;;  %v4174_v36 = vand.u32 4294901760, %v9087_v32 }
  0xee   : > { %7859 = vmatprep.subr.bf16.mxu0 %v8116_v5  ;;  %7276 = vmatmul.mubr.f32.vlgmr.msra.gmra.mrb[36].mxu0 %v3654_v7 }
  0xef   : > { %7861 = vmatpush3.bf16.msra.mxu0 %v7860_v10  ;;  %7286 = vmatprep.subr.mxu1 %v8118_v14  ;;  %v4175_v44 = vsub.f32 %v9087_v32, %v4174_v36  ;;  %v7908_v25 = vpack.c.bf16 %v4181_v15, %v4174_v36  ;;  %v9272_v15 = vand.u32 4294901760, %v6391_v13 }
  0xf0   : > { %7862 = vmatprep.subr.bf16.mxu0 %v8116_v5  ;;  %7301 = vmatprep.mubr.msk.f32.mxu0 %vm8117_vm3, %v8118_v14 }
  0xf1   : > { %7287 = vmatpush3.msra.mxu1 %v3693_v22  ;;  %v4176_v49 = vand.u32 4294901760, %v4175_v44  ;;  %v4611_v22 = vand.u32 4294901760, %v9218_v20 }
  0xf2   : > { %7289 = vmatmul.mubr.f32.vlgmr.msra.gmra.mrb[36].mxu1 %v8987_v54  ;;  %7865 = vmatprep.subr.bf16.mxu1 %v8116_v5 }
  0xf3   : > { %7864 = vmatpush3.bf16.msra.mxu0 %v7863_v27  ;;  %7867 = vmatpush3.bf16.msra.mxu1 %v9016_v55  ;;  %v7890_v59 = vpack.c.bf16 %v4183_v51, %v4176_v49  ;;  %v9250_v31 = vsub.f32 %v9218_v20, %v4611_v22  ;;  %v9295_v49 = vsub.f32 %v6391_v13, %v9272_v15 }
  0xf4   : > { %7299 = vmatprep.subr.mxu0 %v8118_v14  ;;  %7868 = vmatprep.subr.bf16.mxu1 %v8116_v5 }
  0xf5   : > { %7314 = vmatprep.mubr.msk.f32.mxu1 %vm8117_vm3, %v8118_v14  ;;  %v4705_v11 = vand.u32 4294901760, %v9250_v31 }
  0xf7   : > { %7300 = vmatpush3.msra.mxu0 %v9020_v53  ;;  %7870 = vmatpush3.bf16.msra.mxu1 %v9036_v3  ;;  %v4164_v53 = vsub.f32 %v9140_v40, %v4163_v28  ;;  %v4706_v52 = vsub.f32 %v9250_v31, %v4705_v11 }
  0xf8   : > { %7302 = vmatmul.mubr.f32.vlgmr.msra.gmra.mrb[38].mxu0 %v9012_v61  ;;  %7871 = vmatprep.subr.bf16.mxu0 %v8116_v5  ;;  %v4197_v61 = vand.u32 4294901760, %v4196_v56 }
  0xf9   : > { %7873 = vmatpush3.bf16.msra.mxu0 %v7872_v30  ;;  %7312 = vmatprep.subr.mxu1 %v8118_v14  ;;  %v4165_v0 = vand.u32 4294901760, %v4164_v53  ;;  %v4707_v53 = vand.u32 4294901760, %v4706_v52 }
  0xfa   : > { %7874 = vmatprep.subr.bf16.mxu0 %v8116_v5  ;;  %7327 = vmatprep.mubr.msk.f32.mxu0 %vm8117_vm3, %v8118_v14  ;;  %v7893_v62 = vpack.c.bf16 %v4197_v61, %v4190_v60 }
  0xfb   : > { %7313 = vmatpush3.msra.mxu1 %v8997_v57 }
  0xfc   : > { %7315 = vmatmul.mubr.f32.vlgmr.msra.gmra.mrb[38].mxu1 %v3652_v2  ;;  %7877 = vmatprep.subr.bf16.mxu1 %v8116_v5 }
  0xfd   : > { %7876 = vmatpush3.bf16.msra.mxu0 %v7875_v42  ;;  %7879 = vmatpush3.bf16.msra.mxu1 %v9016_v55  ;;  %v4202_v55 = vand.u32 4294901760, %v9150_v50 }
  0xfe   : > { %7325 = vmatprep.subr.mxu0 %v8118_v14  ;;  %7880 = vmatprep.subr.bf16.mxu1 %v8116_v5 }
  0xff   : > { %7340 = vmatprep.mubr.msk.f32.mxu1 %vm8117_vm3, %v8118_v14  ;;  %v4203_v63 = vsub.f32 %v9150_v50, %v4202_v55 }
 0x101   : > { %7326 = vmatpush3.msra.mxu0 %v3691_v16  ;;  %7882 = vmatpush3.bf16.msra.mxu1 %v9036_v3  ;;  %v4204_v2 = vand.u32 4294901760, %v4203_v63  ;;  %v4596_v3 = vrot.slane %v8957_v43, 2  ;;  %v9213_v43 = vld [vmem:[%s9512_s3 + $0x150] sm:$0xff] }
 0x102   : > { %7328 = vmatmul.mubr.f32.vlgmr.msra.gmra.mrb[40].mxu0 %v8987_v54  ;;  %7883 = vmatprep.subr.bf16.mxu0 %v8116_v5  ;;  %v4608_v21 = vand.u32 4294901760, %v9213_v43 }
 0x103   : > { %7885 = vmatpush3.bf16.msra.mxu0 %v9144_v38  ;;  %7338 = vmatprep.subr.mxu1 %v8118_v14  ;;  %v4598_v10 = vsel %vm1537_vm5, %v4596_v3, %v4597_v9 }
 0x104   : > { %7886 = vmatprep.subr.bf16.mxu0 %v8116_v5  ;;  %7353 = vmatprep.mubr.msk.f32.mxu0 %vm8117_vm3, %v8118_v14  ;;  %v4599_v27 = vsel %vm498_vm1, %v4598_v10, 0  ;;  %v9247_v29 = vsub.f32 %v9213_v43, %v4608_v21 }
 0x105   : > { %7339 = vmatpush3.msra.mxu1 %v8997_v57  ;;  %v7896_v57 = vpack.c.bf16 %v9091_v33, %v9087_v32  ;;  %v4691_v32 = vand.u32 4294901760, %v9230_v4  ;;  %v9258_v33 = vand.u32 4294901760, %v4599_v27 }
 0x106   : > { %7341 = vmatmul.mubr.f32.vlgmr.msra.gmra.mrb[40].mxu1 %v8987_v54  ;;  %7889 = vmatprep.subr.bf16.mxu1 %v8116_v5  ;;  %v9191_v54 = vld [vmem:[%s9512_s3 + $0x140] sm:$0xff]  ;;  %v4698_v39 = vand.u32 4294901760, %v9247_v29 }
 0x107   : > { %7888 = vmatpush3.bf16.msra.mxu0 %v9164_v58  ;;  %7891 = vmatpush3.bf16.msra.mxu1 %v7890_v59  ;;  %v4602_v6 = vand.u32 4294901760, %v9191_v54  ;;  %v4692_v37 = vsub.f32 %v9230_v4, %v4691_v32  ;;  %v9283_v42 = vsub.f32 %v4599_v27, %v9258_v33 }
 0x108   : > { %7351 = vmatprep.subr.mxu0 %v8118_v14  ;;  %7892 = vmatprep.subr.bf16.mxu1 %v8116_v5 }
 0x109   : > { %7366 = vmatprep.mubr.msk.f32.mxu1 %vm8117_vm3, %v8118_v14  ;;  %v9225_v7 = vsub.f32 %v9191_v54, %v4602_v6  ;;  %v9289_v48 = vpack.c.bf16 %v4605_v18, %v4602_v6  ;;  %v4693_v51 = vand.u32 4294901760, %v4692_v37  ;;  %v4673_v56 = vand.u32 4294901760, %v9283_v42 }
 0x10a   : > { %v7935_v6 = vpack.c.bf16 %v9250_v31, %v9247_v29 }
 0x10b   : > { %7352 = vmatpush3.msra.mxu0 %v9129_v45  ;;  %7894 = vmatpush3.bf16.msra.mxu1 %v7893_v62  ;;  %v4684_v23 = vand.u32 4294901760, %v9225_v7  ;;  %v4712_v62 = vand.u32 4294901760, %v9295_v49 }
 0x10c   : > { %7895 = vmatprep.subr.bf16.mxu0 %v8116_v5  ;;  %7354 = vmatmul.mubr.f32.vlgmr.msra.gmra.mrb[42].mxu0 %v4165_v0 }
 0x10d   : > { %7897 = vmatpush3.bf16.msra.mxu0 %v7896_v57  ;;  %7364 = vmatprep.subr.mxu1 %v8118_v14  ;;  %v609_v16 = vpop.f32.mrb[0].mxu0  ;;  %v4685_v36 = vsub.f32 %v9225_v7, %v4684_v23  ;;  %v4713_v57 = vsub.f32 %v9295_v49, %v4712_v62  ;;  %v7944_v43 = vpack.c.bf16 %v4691_v32, %v4684_v23 }
 0x10e   : > { %7898 = vmatprep.subr.bf16.mxu0 %v8116_v5  ;;  %v6809_v19 = vpop.f32.mrb[1].mxu0  ;;  %7379 = vmatprep.mubr.msk.f32.mxu0 %vm8117_vm3, %v8118_v14 }
 0x10f   : > { %7365 = vmatpush3.msra.mxu1 %v4204_v2 }
 0x110   : > { %7367 = vmatmul.mubr.f32.vlgmr.msra.gmra.mrb[42].mxu1 %v9115_v41  ;;  %7901 = vmatprep.subr.bf16.mxu1 %v8116_v5 }
 0x111   : > { %7900 = vmatpush3.bf16.msra.mxu0 %v7899_v12  ;;  %v705_v8 = vpop.f32.mrb[0].mxu1  ;;  %7903 = vmatpush3.bf16.msra.mxu1 %v9144_v38 }
 0x112   : > { %7377 = vmatprep.subr.mxu0 %v8118_v14  ;;  %v706_v17 = vadd.f32 %v705_v8, %v609_v16  ;;  %v6822_v24 = vpop.f32.mrb[1].mxu1  ;;  %7904 = vmatprep.subr.bf16.mxu1 %v8116_v5 }
 0x113   : > { %7392 = vmatprep.mubr.msk.f32.mxu1 %vm8117_vm3, %v8118_v14 }
 0x115   : > { %7378 = vmatpush3.msra.mxu0 %v9150_v50  ;;  %7906 = vmatpush3.bf16.msra.mxu1 %v9164_v58 }
 0x116   : > { %7380 = vmatmul.mubr.f32.vlgmr.msra.gmra.mrb[44].mxu0 %v9140_v40  ;;  %7907 = vmatprep.subr.bf16.mxu0 %v8116_v5  ;;  %v4686_v40 = vand.u32 4294901760, %v4685_v36 }
 0x117   : > { %v787_v34 = vpop.f32.mrb[2].mxu0  ;;  %7909 = vmatpush3.bf16.msra.mxu0 %v7908_v25  ;;  %7390 = vmatprep.subr.mxu1 %v8118_v14 }
 0x118   : > { %v788_v30 = vadd.f32 %v787_v34, %v706_v17  ;;  %7910 = vmatprep.subr.bf16.mxu0 %v8116_v5  ;;  %v6835_v26 = vpop.f32.mrb[3].mxu0  ;;  %7405 = vmatprep.mubr.msk.f32.mxu0 %vm8117_vm3, %v8118_v14  ;;  %v7926_v60 = vpack.c.bf16 %v4693_v51, %v4686_v40 }
 0x119   : > { %7391 = vmatpush3.msra.mxu1 %v9129_v45 }
 0x11a   : > { %7393 = vmatmul.mubr.f32.vlgmr.msra.gmra.mrb[44].mxu1 %v4163_v28  ;;  %7913 = vmatprep.subr.bf16.mxu1 %v8116_v5  ;;  %v9309_v28 = vpack.c.bf16 %v4611_v22, %v4608_v21 }
 0x11b   : > { %7912 = vmatpush3.bf16.msra.mxu0 %v7911_v35  ;;  %v865_v44 = vpop.f32.mrb[2].mxu1  ;;  %7915 = vmatpush3.bf16.msra.mxu1 %v9144_v38  ;;  %v4699_v38 = vsub.f32 %v9247_v29, %v4698_v39 }
 0x11c   : > { %7403 = vmatprep.subr.mxu0 %v8118_v14  ;;  %v866_v46 = vadd.f32 %v865_v44, %v788_v30  ;;  %v6848_v47 = vpop.f32.mrb[3].mxu1  ;;  %7916 = vmatprep.subr.bf16.mxu1 %v8116_v5 }
 0x11d   : > { %7418 = vmatprep.mubr.msk.f32.mxu1 %vm8117_vm3, %v8118_v14  ;;  %v4700_v61 = vand.u32 4294901760, %v4699_v38 }
 0x11f   : > { %7404 = vmatpush3.msra.mxu0 %v4202_v55  ;;  %7918 = vmatpush3.bf16.msra.mxu1 %v9164_v58  ;;  %v4674_v55 = vsub.f32 %v9283_v42, %v4673_v56  ;;  %v7929_v0 = vpack.c.bf16 %v4707_v53, %v4700_v61 }
 0x120   : > { %7406 = vmatmul.mubr.f32.vlgmr.msra.gmra.mrb[46].mxu0 %v9115_v41  ;;  %7919 = vmatprep.subr.bf16.mxu0 %v8116_v5 }
 0x121   : > { %v951_v59 = vpop.f32.mrb[4].mxu0  ;;  %7921 = vmatpush3.bf16.msra.mxu0 %v9289_v48  ;;  %7416 = vmatprep.subr.mxu1 %v8118_v14  ;;  %v4675_v2 = vand.u32 4294901760, %v4674_v55 }
 0x122   : > { %v952_v50 = vadd.f32 %v951_v59, %v866_v46  ;;  %7922 = vmatprep.subr.bf16.mxu0 %v8116_v5  ;;  %v6861_v58 = vpop.f32.mrb[5].mxu0  ;;  %7431 = vmatprep.mubr.msk.f32.mxu0 %vm8117_vm3, %v8118_v14 }
 0x123   : > { %7417 = vmatpush3.msra.mxu1 %v9129_v45  ;;  %v4714_v45 = vand.u32 4294901760, %v4713_v57 }
 0x124   : > { %7419 = vmatmul.mubr.f32.vlgmr.msra.gmra.mrb[46].mxu1 %v9115_v41  ;;  %7925 = vmatprep.subr.bf16.mxu1 %v8116_v5  ;;  %v7932_v41 = vpack.c.bf16 %v9230_v4, %v9225_v7  ;;  %v7947_v7 = vpack.c.bf16 %v4705_v11, %v4698_v39 }
 0x125   : > { %7924 = vmatpush3.bf16.msra.mxu0 %v9309_v28  ;;  %v1027_v63 = vpop.f32.mrb[4].mxu1  ;;  %7927 = vmatpush3.bf16.msra.mxu1 %v7926_v60 }
 0x126   : > { %7429 = vmatprep.subr.mxu0 %v8118_v14  ;;  %v1028_v54 = vadd.f32 %v1027_v63, %v952_v50  ;;  %v6874_v1 = vpop.f32.mrb[5].mxu1  ;;  %7928 = vmatprep.subr.bf16.mxu1 %v8116_v5 }
 0x127   : > { %7444 = vmatprep.mubr.msk.f32.mxu1 %vm8117_vm3, %v8118_v14 }
 0x129   : > { %7430 = vmatpush3.msra.mxu0 %v9272_v15  ;;  %7930 = vmatpush3.bf16.msra.mxu1 %v7929_v0 }
 0x12a   : > { %7931 = vmatprep.subr.bf16.mxu0 %v8116_v5  ;;  %7432 = vmatmul.mubr.f32.vlgmr.msra.gmra.mrb[48].mxu0 %v4675_v2 }
 0x12b   : > { %v1109_v3 = vpop.f32.mrb[6].mxu0  ;;  %7933 = vmatpush3.bf16.msra.mxu0 %v7932_v41  ;;  %7442 = vmatprep.subr.mxu1 %v8118_v14 }
 0x12c   : > { %v1110_v9 = vadd.f32 %v1109_v3, %v1028_v54  ;;  %7934 = vmatprep.subr.bf16.mxu0 %v8116_v5  ;;  %v6887_v12 = vpop.f32.mrb[7].mxu0  ;;  %7457 = vmatprep.mubr.msk.f32.mxu0 %vm8117_vm3, %v8118_v14 }
 0x12d   : > { %7443 = vmatpush3.msra.mxu1 %v4714_v45 }
 0x12e   : > { %7445 = vmatmul.mubr.f32.vlgmr.msra.gmra.mrb[48].mxu1 %v9258_v33  ;;  %7937 = vmatprep.subr.bf16.mxu1 %v8116_v5 }
 0x12f   : > { %7936 = vmatpush3.bf16.msra.mxu0 %v7935_v6  ;;  %v1205_v16 = vpop.f32.mrb[6].mxu1  ;;  %7939 = vmatpush3.bf16.msra.mxu1 %v9289_v48 }
 0x130   : > { %7455 = vmatprep.subr.mxu0 %v8118_v14  ;;  %v1206_v18 = vadd.f32 %v1205_v16, %v1110_v9  ;;  %v6900_v19 = vpop.f32.mrb[7].mxu1  ;;  %7940 = vmatprep.subr.bf16.mxu1 %v8116_v5 }
 0x131   : > { %7470 = vmatprep.mubr.msk.f32.mxu1 %vm8117_vm3, %v8118_v14 }
 0x133   : > { %7456 = vmatpush3.msra.mxu0 %v9295_v49  ;;  %7942 = vmatpush3.bf16.msra.mxu1 %v9309_v28 }
 0x134   : > { %7458 = vmatmul.mubr.f32.vlgmr.msra.gmra.mrb[50].mxu0 %v9283_v42  ;;  %7943 = vmatprep.subr.bf16.mxu0 %v8116_v5 }
 0x135   : > { %v1287_v20 = vpop.f32.mrb[8].mxu0  ;;  %7945 = vmatpush3.bf16.msra.mxu0 %v7944_v43  ;;  %7468 = vmatprep.subr.mxu1 %v8118_v14 }
 0x136   : > { %v1288_v10 = vadd.f32 %v1287_v20, %v1206_v18  ;;  %7946 = vmatprep.subr.bf16.mxu0 %v8116_v5  ;;  %v6913_v8 = vpop.f32.mrb[9].mxu0  ;;  %7483 = vmatprep.mubr.msk.f32.mxu0 %vm8117_vm3, %v8118_v14 }
 0x137   : > { %7469 = vmatpush3.msra.mxu1 %v9272_v15 }
 0x138   : > { %7471 = vmatmul.mubr.f32.vlgmr.msra.gmra.mrb[50].mxu1 %v4673_v56  ;;  %7949 = vmatprep.subr.bf16.mxu1 %v8116_v5 }
 0x139   : > { %7948 = vmatpush3.bf16.msra.mxu0 %v7947_v7  ;;  %v1365_v4 = vpop.f32.mrb[8].mxu1  ;;  %7951 = vmatpush3.bf16.msra.mxu1 %v9289_v48  ;;  %v5131_v7 = vld [vmem:[%s9514_s5] sm:$0xff] }
 0x13a   : > { %7481 = vmatprep.subr.mxu0 %v8118_v14  ;;  %v1366_v21 = vadd.f32 %v1365_v4, %v1288_v10  ;;  %v6926_v22 = vpop.f32.mrb[9].mxu1  ;;  %7952 = vmatprep.subr.bf16.mxu1 %v8116_v5  ;;  %v5132_v10 = vld [vmem:[%s9514_s5 + $0x8] sm:$0xff]  ;;  %v5139_v8 = vand.u32 4294901760, %v5131_v7 }
 0x13b   : > { %7496 = vmatprep.mubr.msk.f32.mxu1 %vm8117_vm3, %v8118_v14  ;;  %v5142_v4 = vand.u32 4294901760, %v5132_v10 }
 0x13d   : > { %7482 = vmatpush3.msra.mxu0 %v4712_v62  ;;  %7954 = vmatpush3.bf16.msra.mxu1 %v9309_v28 }
 0x13e   : > { %7484 = vmatmul.mubr.f32.vlgmr.msra.gmra.mrb[52].mxu0 %v9258_v33  ;;  %7494 = vmatprep.subr.mxu1 %v8118_v14 }
 0x13f   : > { %v1451_v17 = vpop.f32.mrb[10].mxu0  ;;  %7955 = vmatprep.subr.bf16.mxu0 %v8116_v5  ;;  %7507 = vmatprep.mubr.msk.f32.mxu0 %vm8117_vm3, %v8118_v14 }
 0x140   : > { %v1452_v24 = vadd.f32 %v1451_v17, %v1366_v21  ;;  %v6939_v25 = vpop.f32.mrb[11].mxu0 }
 0x141   : > { %7495 = vmatpush3.msra.mxu1 %v9272_v15  ;;  %v5226_v25 = vsub.f32 %v5132_v10, %v5142_v4 }
 0x142   : > { %7497 = vmatmul.mubr.f32.vlgmr.msra.gmra.mrb[52].mxu1 %v9258_v33  ;;  %7961 = vmatprep.subr.bf16.mxu1 %v8116_v5 }
 0x143   : > { %v1527_v27 = vpop.f32.mrb[10].mxu1  ;;  %7518 = vmatprep.mubr.msk.f32.mxu1 %vm8117_vm3, %v8118_v14 }
 0x144   : > { %v1528_v23 = vadd.f32 %v1527_v27, %v1452_v24  ;;  %v6952_v29 = vpop.f32.mrb[11].mxu1  ;;  %v5219_v24 = vsub.f32 %v5131_v7, %v5139_v8  ;;  %v5133_v27 = vld [vmem:[%s9514_s5 + $0x10] sm:$0xff] }
 0x149   : > { %v1619_v31 = vpop.f32.mrb[12].mxu0 }
 0x14a   : > { %v6965_v32 = vpop.f32.mrb[13].mxu0 }
 0x14b   : > { %v5227_v32 = vand.u32 4294901760, %v5226_v25 }
 0x14d   : > { %v1715_v13 = vpop.f32.mrb[12].mxu1 }
 0x14e   : > { %v1716_v34 = vadd.f32 %v1715_v13, %v1619_v31  ;;  %v6978_v35 = vpop.f32.mrb[13].mxu1  ;;  %v5220_v31 = vand.u32 4294901760, %v5219_v24  ;;  %v5145_v13 = vand.u32 4294901760, %v5133_v27 }
 0x150   : > { %v5221_v35 = vsub.f32 %v5219_v24, %v5220_v31 }
 0x153   : > { %v1797_v30 = vpop.f32.mrb[14].mxu0 }
 0x154   : > { %v1798_v26 = vadd.f32 %v1797_v30, %v1716_v34  ;;  %v6991_v36 = vpop.f32.mrb[15].mxu0  ;;  %v5228_v30 = vsub.f32 %v5226_v25, %v5227_v32 }
 0x157   : > { %v1875_v37 = vpop.f32.mrb[14].mxu1 }
 0x158   : > { %v1876_v15 = vadd.f32 %v1875_v37, %v1798_v26  ;;  %v7004_v39 = vpop.f32.mrb[15].mxu1  ;;  %v5233_v26 = vsub.f32 %v5133_v27, %v5145_v13 }
 0x15d   : > { %v1961_v33 = vpop.f32.mrb[16].mxu0 }
 0x15e   : > { %v1962_v11 = vadd.f32 %v1961_v33, %v1876_v15  ;;  %v7017_v42 = vpop.f32.mrb[17].mxu0  ;;  %v9398_v15 = vpack.c.bf16 %v5142_v4, %v5139_v8  ;;  %v5222_v33 = vand.u32 4294901760, %v5221_v35 }
 0x15f   : > { %v5234_v42 = vand.u32 4294901760, %v5233_v26 }
 0x160   : > { %7957 = vmatpush3.bf16.msra.mxu0 %v9398_v15 }
 0x161   : > { %v2037_v44 = vpop.f32.mrb[16].mxu1  ;;  %7958 = vmatprep.subr.bf16.mxu0 %v8116_v5 }
 0x162   : > { %v2038_v46 = vadd.f32 %v2037_v44, %v1962_v11  ;;  %v7030_v47 = vpop.f32.mrb[17].mxu1  ;;  %v5229_v11 = vand.u32 4294901760, %v5228_v30 }
 0x163   : > { %v5235_v47 = vsub.f32 %v5233_v26, %v5234_v42 }
 0x164   : > { %v2041_v48 = vadd.f32 %v2038_v46, %v1528_v23  ;;  %v5134_v23 = vld [vmem:[%s9514_s5 + $0x18] sm:$0xff]  ;;  %v9401_v46 = vpack.c.bf16 %v5229_v11, %v5222_v33 }
 0x165   : > { %v5148_v34 = vand.u32 4294901760, %v5134_v23 }
 0x166   : > { %7963 = vmatpush3.bf16.msra.mxu1 %v9401_v46 }
 0x167   : > { %v2127_v40 = vpop.f32.mrb[18].mxu0  ;;  %v5240_v37 = vsub.f32 %v5134_v23, %v5148_v34  ;;  %7964 = vmatprep.subr.bf16.mxu1 %v8116_v5 }
 0x168   : > { %v7043_v49 = vpop.f32.mrb[19].mxu0 }
 0x169   : > { %v5241_v44 = vand.u32 4294901760, %v5240_v37 }
 0x16b   : > { %v2223_v51 = vpop.f32.mrb[18].mxu1 }
 0x16c   : > { %v2224_v38 = vadd.f32 %v2223_v51, %v2127_v40  ;;  %v7056_v52 = vpop.f32.mrb[19].mxu1  ;;  %v5242_v40 = vsub.f32 %v5240_v37, %v5241_v44 }
 0x16e   : > { %v5243_v52 = vand.u32 4294901760, %v5242_v40 }
 0x171   : > { %v2305_v56 = vpop.f32.mrb[20].mxu0 }
 0x172   : > { %v2306_v28 = vadd.f32 %v2305_v56, %v2224_v38  ;;  %v7069_v59 = vpop.f32.mrb[21].mxu0  ;;  %v5236_v38 = vand.u32 4294901760, %v5235_v47 }
 0x174   : > { %v9406_v56 = vpack.c.bf16 %v5243_v52, %v5236_v38 }
 0x175   : > { %v2383_v60 = vpop.f32.mrb[20].mxu1 }
 0x176   : > { %v2384_v61 = vadd.f32 %v2383_v60, %v2306_v28  ;;  %v7082_v53 = vpop.f32.mrb[21].mxu1  ;;  %7966 = vmatpush3.bf16.msra.mxu1 %v9406_v56 }
 0x177   : > { %7973 = vmatprep.subr.bf16.mxu1 %v8116_v5 }
 0x17b   : > { %v2469_v62 = vpop.f32.mrb[22].mxu0 }
 0x17c   : > { %v2470_v50 = vadd.f32 %v2469_v62, %v2384_v61  ;;  %v7095_v58 = vpop.f32.mrb[23].mxu0  ;;  %v9410_v61 = vpack.c.bf16 %v5148_v34, %v5145_v13 }
 0x17d   : > { %v9414_v58 = vpack.c.bf16 %v5226_v25, %v5219_v24 }
 0x17e   : > { %7960 = vmatpush3.bf16.msra.mxu0 %v9410_v61 }
 0x17f   : > { %v2545_v55 = vpop.f32.mrb[22].mxu1  ;;  %7967 = vmatprep.subr.bf16.mxu0 %v8116_v5 }
 0x180   : > { %v2546_v63 = vadd.f32 %v2545_v55, %v2470_v50  ;;  %v7108_v0 = vpop.f32.mrb[23].mxu1  ;;  %v9416_v55 = vpack.c.bf16 %v5240_v37, %v5233_v26 }
 0x182   : > { %v2549_v57 = vadd.f32 %v2546_v63, %v2041_v48 }
 0x185   : > { %v2638_v54 = vpop.f32.mrb[24].mxu0 }
 0x186   : > { %v7121_v1 = vpop.f32.mrb[25].mxu0 }
 0x189   : > { %v2734_v2 = vpop.f32.mrb[24].mxu1 }
 0x18a   : > { %v2735_v41 = vadd.f32 %v2734_v2, %v2638_v54  ;;  %v7134_v45 = vpop.f32.mrb[25].mxu1 }
 0x18f   : > { %v2816_v3 = vpop.f32.mrb[26].mxu0 }
 0x190   : > { %v2817_v6 = vadd.f32 %v2816_v3, %v2735_v41  ;;  %v7147_v9 = vpop.f32.mrb[27].mxu0  ;;  %v9418_v41 = vpack.c.bf16 %v5227_v32, %v5220_v31  ;;  %v9420_v3 = vpack.c.bf16 %v5241_v44, %v5234_v42 }
 0x193   : > { %v2894_v12 = vpop.f32.mrb[26].mxu1 }
 0x194   : > { %v2895_v16 = vadd.f32 %v2894_v12, %v2817_v6  ;;  %v7160_v18 = vpop.f32.mrb[27].mxu1 }
 0x199   : > { %v2980_v19 = vpop.f32.mrb[28].mxu0 }
 0x19a   : > { %v2981_v43 = vadd.f32 %v2980_v19, %v2895_v16  ;;  %v7173_v20 = vpop.f32.mrb[29].mxu0 }
 0x19d   : > { %v3056_v21 = vpop.f32.mrb[28].mxu1 }
 0x19e   : > { %v3057_v22 = vadd.f32 %v3056_v21, %v2981_v43  ;;  %v7186_v17 = vpop.f32.mrb[29].mxu1 }
 0x1a0   : > { %v3060_v29 = vadd.f32 %v3057_v22, %v2549_v57 }
 0x1a3   : > { %v3148_v36 = vpop.f32.mrb[30].mxu0 }
 0x1a4   : > { %v7199_v39 = vpop.f32.mrb[31].mxu0 }
 0x1a7   : > { %v3244_v48 = vpop.f32.mrb[30].mxu1 }
 0x1a8   : > { %v3245_v49 = vadd.f32 %v3244_v48, %v3148_v36  ;;  %v7212_v51 = vpop.f32.mrb[31].mxu1 }
 0x1ad   : > { %v3326_v28 = vpop.f32.mrb[32].mxu0 }
 0x1ae   : > { %v3327_v59 = vadd.f32 %v3326_v28, %v3245_v49  ;;  %v7225_v60 = vpop.f32.mrb[33].mxu0 }
 0x1b1   : > { %v3404_v53 = vpop.f32.mrb[32].mxu1 }
 0x1b2   : > { %v3405_v62 = vadd.f32 %v3404_v53, %v3327_v59  ;;  %v7238_v50 = vpop.f32.mrb[33].mxu1 }
 0x1b7   : > { %v3490_v63 = vpop.f32.mrb[34].mxu0 }
 0x1b8   : > { %v3491_v0 = vadd.f32 %v3490_v63, %v3405_v62  ;;  %v7251_v57 = vpop.f32.mrb[35].mxu0 }
 0x1bb   : > { %v3566_v54 = vpop.f32.mrb[34].mxu1 }
 0x1bc   : > { %v3567_v1 = vadd.f32 %v3566_v54, %v3491_v0  ;;  %v7264_v2 = vpop.f32.mrb[35].mxu1 }
 0x1be   : > { %v3570_v45 = vadd.f32 %v3567_v1, %v3060_v29 }
 0x1c1   : > { %v3656_v6 = vpop.f32.mrb[36].mxu0 }
 0x1c2   : > { %v7277_v9 = vpop.f32.mrb[37].mxu0 }
 0x1c5   : > { %v3752_v12 = vpop.f32.mrb[36].mxu1 }
 0x1c6   : > { %v3753_v16 = vadd.f32 %v3752_v12, %v3656_v6  ;;  %v7290_v18 = vpop.f32.mrb[37].mxu1 }
 0x1cb   : > { %v3834_v19 = vpop.f32.mrb[38].mxu0 }
 0x1cc   : > { %v3835_v43 = vadd.f32 %v3834_v19, %v3753_v16  ;;  %v7303_v20 = vpop.f32.mrb[39].mxu0 }
 0x1cf   : > { %v3912_v7 = vpop.f32.mrb[38].mxu1 }
 0x1d0   : > { %v3913_v10 = vadd.f32 %v3912_v7, %v3835_v43  ;;  %v7316_v8 = vpop.f32.mrb[39].mxu1 }
 0x1d5   : > { %v3998_v4 = vpop.f32.mrb[40].mxu0 }
 0x1d6   : > { %v3999_v21 = vadd.f32 %v3998_v4, %v3913_v10  ;;  %v7329_v22 = vpop.f32.mrb[41].mxu0 }
 0x1d9   : > { %v4074_v17 = vpop.f32.mrb[40].mxu1 }
 0x1da   : > { %v4075_v24 = vadd.f32 %v4074_v17, %v3999_v21  ;;  %v7342_v25 = vpop.f32.mrb[41].mxu1 }
 0x1dc   : > { %v4078_v27 = vadd.f32 %v4075_v24, %v3570_v45  ;;  %v6392_v45 = vld [vmem:[%s9513_s4] ss:$0 sm:$0xff] }
 0x1df   : > { %v4167_v23 = vpop.f32.mrb[42].mxu0 }
 0x1e0   : > { %v7355_v29 = vpop.f32.mrb[43].mxu0 }
 0x1e3   : > { %v4263_v31 = vpop.f32.mrb[42].mxu1 }
 0x1e4   : > { %v4264_v32 = vadd.f32 %v4263_v31, %v4167_v23  ;;  %v7368_v13 = vpop.f32.mrb[43].mxu1 }
 0x1e9   : > { %v4345_v34 = vpop.f32.mrb[44].mxu0 }
 0x1ea   : > { %v4346_v35 = vadd.f32 %v4345_v34, %v4264_v32  ;;  %v7381_v30 = vpop.f32.mrb[45].mxu0 }
 0x1ed   : > { %v4423_v26 = vpop.f32.mrb[44].mxu1 }
 0x1ee   : > { %v4424_v36 = vadd.f32 %v4423_v26, %v4346_v35  ;;  %v7394_v37 = vpop.f32.mrb[45].mxu1 }
 0x1f3   : > { %v4509_v39 = vpop.f32.mrb[46].mxu0 }
 0x1f4   : > { %v4510_v33 = vadd.f32 %v4509_v39, %v4424_v36  ;;  %v7407_v11 = vpop.f32.mrb[47].mxu0 }
 0x1f7   : > { %v4585_v42 = vpop.f32.mrb[46].mxu1 }
 0x1f8   : > { %v4586_v44 = vadd.f32 %v4585_v42, %v4510_v33  ;;  %v7420_v47 = vpop.f32.mrb[47].mxu1 }
 0x1fa   : > { %v4589_v48 = vadd.f32 %v4586_v44, %v4078_v27 }
 0x1fd   : > { %v4677_v40 = vpop.f32.mrb[48].mxu0 }
 0x1fe   : > { %v7433_v49 = vpop.f32.mrb[49].mxu0 }
 0x201   : > { %v4773_v51 = vpop.f32.mrb[48].mxu1 }
 0x202   : > { %v4774_v38 = vadd.f32 %v4773_v51, %v4677_v40  ;;  %v7446_v52 = vpop.f32.mrb[49].mxu1  ;;  %v5130_v51 = vld [vmem:[%s8210_s21] sm:$0x1] }
 0x207   : > { %v4855_v28 = vpop.f32.mrb[50].mxu0 }
 0x208   : > { %v4856_v59 = vadd.f32 %v4855_v28, %v4774_v38  ;;  %v7459_v60 = vpop.f32.mrb[51].mxu0 }
 0x20b   : > { %v4933_v53 = vpop.f32.mrb[50].mxu1 }
 0x20c   : > { %v4934_v62 = vadd.f32 %v4933_v53, %v4856_v59  ;;  %v7472_v50 = vpop.f32.mrb[51].mxu1 }
 0x211   : > { %v5019_v63 = vpop.f32.mrb[52].mxu0 }
 0x212   : > { %v5020_v0 = vadd.f32 %v5019_v63, %v4934_v62  ;;  %v7485_v57 = vpop.f32.mrb[53].mxu0 }
 0x215   : > { %v5095_v54 = vpop.f32.mrb[52].mxu1 }
 0x216   : > { %v5096_v1 = vadd.f32 %v5095_v54, %v5020_v0  ;;  %v7498_v2 = vpop.f32.mrb[53].mxu1 }
 0x218   : > { %v5099_v6 = vadd.f32 %v5096_v1, %v4589_v48 }
 0x21a   : > { %v5107_v9 = vadd.f32 %v6392_v45, %v5099_v6 }
 0x21c   : > { %5109 = vrot.lane.b32.xlu0 %v5107_v9, %s8119_s25  ;;  %v5115_v12 = vsel %vm5114_vm6, %v5107_v9, 0.0  ;;  %v5122_v16 = vmul.f32 %v5107_v9, %v5107_v9  ;;  %v5626_v9 = vld [vmem:[%s8210_s21 + $0x1] sm:$0x1] }
 0x21d   : > { %v5116_v18 = vrot.slane %v5115_v12, 4 }
 0x21e   : > { %v5123_v19 = vsel %vm5114_vm6, %v5122_v16, 0.0 }
 0x21f   : > { %v5117_v43 = vadd.f32 %v5116_v18, %v5115_v12  ;;  %v5124_v20 = vrot.slane %v5123_v19, 4 }
 0x221   : > { %v5118_v7 = vrot.slane %v5117_v43, 2  ;;  %v5125_v8 = vadd.f32 %v5124_v20, %v5123_v19 }
 0x223   : > { %v5119_v10 = vadd.f32 %v5118_v7, %v5117_v43  ;;  %v5126_v21 = vrot.slane %v5125_v8, 2 }
 0x225   : > { %v5120_v4 = vrot.slane %v5119_v10, 1  ;;  %v5127_v25 = vadd.f32 %v5126_v21, %v5125_v8 }
 0x227   : > { %v5121_v22 = vadd.f32 %v5120_v4, %v5119_v10  ;;  %v5128_v29 = vrot.slane %v5127_v25, 1 }
 0x229   : > { %v5136_v17 = vsel %vm5114_vm6, %v5121_v22, 0  ;;  %v5129_v13 = vadd.f32 %v5128_v29, %v5127_v25 }
 0x22a   : > { %v5207_v24 = vand.u32 4294901760, %v5136_v17 }
 0x22b   : > { %v5632_v34 = vsel %vm5114_vm6, %v5129_v13, 0 }
 0x22c   : > { %v5208_v27 = vsub.f32 %v5136_v17, %v5207_v24  ;;  %7519 = vmatmul.mubr.f32.vlgmr.msra.gmra.mrb[54].mxu1 %v5207_v24  ;;  %v5703_v35 = vand.u32 4294901760, %v5632_v34 }
 0x22d   : > { %7975 = vmatpush3.bf16.msra.mxu1 %v9398_v15  ;;  %7540 = vmatprep.mubr.msk.f32.mxu1 %vm8117_vm3, %v8118_v14 }
 0x22e   : > { %7976 = vmatprep.subr.bf16.mxu1 %v8116_v5  ;;  %v5209_v23 = vand.u32 4294901760, %v5208_v27  ;;  %v5704_v30 = vsub.f32 %v5632_v34, %v5703_v35 }
 0x230   : > { %v5210_v31 = vsub.f32 %v5208_v27, %v5209_v23 }
 0x231   : > { %7978 = vmatpush3.bf16.msra.mxu1 %v9410_v61 }
 0x232   : > { %7985 = vmatprep.subr.bf16.mxu1 %v8116_v5  ;;  %v5211_v32 = vand.u32 4294901760, %v5210_v31 }
 0x234   : > { %7541 = vmatmul.mubr.f32.vlgmr.msra.gmra.mrb[56].mxu1 %v5209_v23  ;;  %7508 = vmatmul.mubr.f32.vlgmr.msra.gmra.mrb[54].mxu0 %v5211_v32 }
 0x235   : > { %7969 = vmatpush3.bf16.msra.mxu0 %v9414_v58  ;;  %7987 = vmatpush3.bf16.msra.mxu1 %v9398_v15 }
 0x236   : > { %7970 = vmatprep.subr.bf16.mxu0 %v8116_v5  ;;  %7988 = vmatprep.subr.bf16.mxu1 %v8116_v5 }
 0x237   : > { %7529 = vmatprep.mubr.msk.f32.mxu0 %vm8117_vm3, %v8118_v14  ;;  %7562 = vmatprep.mubr.msk.f32.mxu1 %vm8117_vm3, %v8118_v14 }
 0x239   : > { %7972 = vmatpush3.bf16.msra.mxu0 %v9416_v55  ;;  %7990 = vmatpush3.bf16.msra.mxu1 %v9410_v61 }
 0x23a   : > { %7979 = vmatprep.subr.bf16.mxu0 %v8116_v5  ;;  %7997 = vmatprep.subr.bf16.mxu1 %v8116_v5 }
 0x23c   : > { %7530 = vmatmul.mubr.f32.vlgmr.msra.gmra.mrb[56].mxu0 %v5208_v27  ;;  %7563 = vmatmul.mubr.f32.vlgmr.msra.gmra.mrb[58].mxu1 %v5207_v24 }
 0x23d   : > { %7981 = vmatpush3.bf16.msra.mxu0 %v9418_v41  ;;  %7999 = vmatpush3.bf16.msra.mxu1 %v9401_v46  ;;  %v5705_v46 = vand.u32 4294901760, %v5704_v30 }
 0x23e   : > { %7982 = vmatprep.subr.bf16.mxu0 %v8116_v5  ;;  %8000 = vmatprep.subr.bf16.mxu1 %v8116_v5 }
 0x23f   : > { %7551 = vmatprep.mubr.msk.f32.mxu0 %vm8117_vm3, %v8118_v14  ;;  %7584 = vmatprep.mubr.msk.f32.mxu1 %vm8117_vm3, %v8118_v14  ;;  %v5706_v26 = vsub.f32 %v5704_v30, %v5705_v46 }
 0x241   : > { %7984 = vmatpush3.bf16.msra.mxu0 %v9420_v3  ;;  %8002 = vmatpush3.bf16.msra.mxu1 %v9406_v56  ;;  %v5707_v56 = vand.u32 4294901760, %v5706_v26 }
 0x242   : > { %7991 = vmatprep.subr.bf16.mxu0 %v8116_v5  ;;  %8009 = vmatprep.subr.bf16.mxu1 %v8116_v5 }
 0x244   : > { %7552 = vmatmul.mubr.f32.vlgmr.msra.gmra.mrb[58].mxu0 %v5207_v24  ;;  %7585 = vmatmul.mubr.f32.vlgmr.msra.gmra.mrb[60].mxu1 %v5703_v35 }
 0x245   : > { %7993 = vmatpush3.bf16.msra.mxu0 %v9398_v15  ;;  %8011 = vmatpush3.bf16.msra.mxu1 %v9398_v15 }
 0x246   : > { %7994 = vmatprep.subr.bf16.mxu0 %v8116_v5  ;;  %8012 = vmatprep.subr.bf16.mxu1 %v8116_v5 }
 0x247   : > { %7573 = vmatprep.mubr.msk.f32.mxu0 %vm8117_vm3, %v8118_v14  ;;  %7606 = vmatprep.mubr.msk.f32.mxu1 %vm8117_vm3, %v8118_v14 }
 0x249   : > { %7996 = vmatpush3.bf16.msra.mxu0 %v9410_v61  ;;  %8014 = vmatpush3.bf16.msra.mxu1 %v9410_v61 }
 0x24a   : > { %8003 = vmatprep.subr.bf16.mxu0 %v8116_v5  ;;  %8021 = vmatprep.subr.bf16.mxu1 %v8116_v5 }
 0x24c   : > { %7574 = vmatmul.mubr.f32.vlgmr.msra.gmra.mrb[60].mxu0 %v5707_v56  ;;  %7607 = vmatmul.mubr.f32.vlgmr.msra.gmra.mrb[62].mxu1 %v5705_v46 }
 0x24d   : > { %8005 = vmatpush3.bf16.msra.mxu0 %v9414_v58  ;;  %8023 = vmatpush3.bf16.msra.mxu1 %v9398_v15 }
 0x24e   : > { %8006 = vmatprep.subr.bf16.mxu0 %v8116_v5  ;;  %8024 = vmatprep.subr.bf16.mxu1 %v8116_v5 }
 0x24f   : > { %7595 = vmatprep.mubr.msk.f32.mxu0 %vm8117_vm3, %v8118_v14  ;;  %7628 = vmatprep.mubr.msk.f32.mxu1 %vm8117_vm3, %v8118_v14 }
 0x251   : > { %8008 = vmatpush3.bf16.msra.mxu0 %v9416_v55  ;;  %8026 = vmatpush3.bf16.msra.mxu1 %v9410_v61 }
 0x252   : > { %8015 = vmatprep.subr.bf16.mxu0 %v8116_v5 }
 0x254   : > { %7596 = vmatmul.mubr.f32.vlgmr.msra.gmra.mrb[62].mxu0 %v5704_v30  ;;  %7629 = vmatmul.mubr.f32.vlgmr.msra.gmra.mrb[64].mxu1 %v5703_v35 }
 0x255   : > { %8017 = vmatpush3.bf16.msra.mxu0 %v9418_v41  ;;  %7617 = vmatprep.mubr.msk.f32.mxu0 %vm8117_vm3, %v8118_v14 }
 0x256   : > { %8018 = vmatprep.subr.bf16.mxu0 %v8116_v5 }
 0x259   : > { %8020 = vmatpush3.bf16.msra.mxu0 %v9420_v3 }
 0x25c   : > { %7618 = vmatmul.mubr.f32.vlgmr.msra.gmra.mrb[64].mxu0 %v5703_v35 }
 0x28e   : > { %v5110_v15 = vpop.permute.xlu0 %5109 }
 0x28f   : > { %5113 = vst.msk [vmem:[%s8226_s11 + $0x1] sm:$0xff] %vm5112_vm7, %v5110_v15 }
 0x2ff   : > { %v5304_v58 = vpop.f32.mrb[54].mxu1 }
 0x300   : > { %v7520_v55 = vpop.f32.mrb[55].mxu1 }
 0x307   : > { %v5461_v61 = vpop.f32.mrb[56].mxu1  ;;  %v5213_v36 = vpop.f32.mrb[54].mxu0 }
 0x308   : > { %v5305_v37 = vadd.f32 %v5304_v58, %v5213_v36  ;;  %v7542_v39 = vpop.f32.mrb[57].mxu1  ;;  %v7509_v33 = vpop.f32.mrb[55].mxu0 }
 0x30f   : > { %v5384_v41 = vpop.f32.mrb[56].mxu0  ;;  %v5619_v11 = vpop.f32.mrb[58].mxu1 }
 0x310   : > { %v5385_v14 = vadd.f32 %v5384_v41, %v5305_v37  ;;  %v7531_v42 = vpop.f32.mrb[57].mxu0  ;;  %v7564_v5 = vpop.f32.mrb[59].mxu1 }
 0x312   : > { %v5462_v44 = vadd.f32 %v5461_v61, %v5385_v14 }
 0x317   : > { %v5544_v3 = vpop.f32.mrb[58].mxu0  ;;  %v5800_v47 = vpop.f32.mrb[60].mxu1 }
 0x318   : > { %v5545_v48 = vadd.f32 %v5544_v3, %v5462_v44  ;;  %v7553_v40 = vpop.f32.mrb[59].mxu0  ;;  %v7586_v49 = vpop.f32.mrb[61].mxu1 }
 0x31a   : > { %v5620_v38 = vadd.f32 %v5619_v11, %v5545_v48 }
 0x31c   : > { %v5623_v52 = vadd.f32 %v5620_v38, %v5130_v51 }
 0x31e   : > { %5625 = vst.msk [vmem:[%s8210_s21] sm:$0x1] %vm5624_vm8, %v5623_v52 }
 0x31f   : > { %v5709_v28 = vpop.f32.mrb[60].mxu0  ;;  %v5957_v59 = vpop.f32.mrb[62].mxu1 }
 0x320   : > { %v5801_v60 = vadd.f32 %v5800_v47, %v5709_v28  ;;  %v7575_v53 = vpop.f32.mrb[61].mxu0  ;;  %v7608_v62 = vpop.f32.mrb[63].mxu1 }
 0x327   : > { %v5880_v50 = vpop.f32.mrb[62].mxu0  ;;  %v6115_v63 = vpop.f32.mrb[64].mxu1 }
 0x328   : > { %v5881_v0 = vadd.f32 %v5880_v50, %v5801_v60  ;;  %v7597_v57 = vpop.f32.mrb[63].mxu0  ;;  %v7630_v54 = vpop.f32.mrb[65].mxu1 }
 0x32a   : > { %v5958_v1 = vadd.f32 %v5957_v59, %v5881_v0 }
 0x32f   : > { %v6040_v2 = vpop.f32.mrb[64].mxu0 }
 0x330   : > { %v6041_v45 = vadd.f32 %v6040_v2, %v5958_v1  ;;  %v7619_v6 = vpop.f32.mrb[65].mxu0 }
 0x332   : > { %v6116_v12 = vadd.f32 %v6115_v63, %v6041_v45 }
 0x334   : > { %v6119_v16 = vadd.f32 %v6116_v12, %v5626_v9 }
 0x336   : > { %6120 = vst.msk [vmem:[%s8210_s21 + $0x1] sm:$0x1] %vm5624_vm8, %v6119_v16 }
 0x337 PF: > { %s18_s28 = sadd.s32 1, %s8112_s28   ;;  %s9520_s11 = sld [smem:[#allocation2_spill]] }
 0x338   : > { %p15_p5 = scmp.ge.s32.totalorder %s18_s28, 22   ;;  %s9521_s24 = smov %s8104_s26 }
 0x339   : > { %s9522_s25 = smov %s8108_s27  ;;  %s9523_s26 = smov %s9526_s29 }
 0x33a   :  { %17 = sbr.rel (!%p15_p5) target bundleno = 3 (0x3), region = 108 }
 0x33d   : > { %s9524_s27 = smov %s9520_s11 }

// kernel: tile.68
= control target key start
LH: loop header
LB: loop body
LE: loop exit
PB: predicated region body
PF: predicated region fallthrough
CT: control target
= control target key end

     0   :  { %s22_s0 = inlined_call_operand.vmem [shape: f32[8], index: 0, kind: input, shape index: {}]   ;;  %s23_s1 = inlined_call_operand.vmem [shape: f32[8,8], index: 1, kind: output, shape index: {}]  }
   0x1   :  { %v4_v0 = vld [vmem:[%s22_s0] ss:$0 sm:$0xff] }
   0x2   :  { %5 = vst [vmem:[%s23_s1] sm:$0xff] %v4_v0 }

// kernel: tile.69
= control target key start
LH: loop header
LB: loop body
LE: loop exit
PB: predicated region body
PF: predicated region fallthrough
CT: control target
= control target key end

     0   :  { %s67_s10 = smov 56   ;;  %s68_s11 = smov 40   ;;  %vm3_vm0 = vcmask 64512   ;;  %vm9_vm1 = vcmask 523712   ;;  %vm15_vm2 = vcmask 458112   ;;  %vm21_vm3 = vcmask 392512   ;;  %s111_s0 = inlined_call_operand.vmem [shape: f32[8,8], index: 0, kind: input, shape index: {}]   ;;  %s112_s1 = inlined_call_operand.vmem [shape: f32[1,64], index: 1, kind: output, shape index: {}]  }
   0x1   :  { %v53_v0 = vld [vmem:[%s111_s0 + $0x7] sm:$0x1]   ;;  %v55_v1 = vld [vmem:[%s111_s0 + $0x5] sm:$0x1]   ;;  %v54_v2 = vld [vmem:[%s111_s0 + $0x6] sm:$0x1]  }
   0x2   :  { %7 = vrot.lane.b32.xlu0 %v53_v0, %s67_s10  ;;  %19 = vrot.lane.b32.xlu1 %v55_v1, %s68_s11  ;;  %v56_v3 = vld [vmem:[%s111_s0 + $0x4] sm:$0x1]   ;;  %v2_v4 = vld [vmem:[%s111_s0] sm:$0x1]   ;;  %s69_s18 = smov 48   ;;  %s70_s19 = smov 32  }
   0x3   :  { %4 = vst.msk [vmem:[#allocation0] sm:$0x1] %vm3_vm0, %v2_v4   ;;  %v57_v5 = vld [vmem:[%s111_s0 + $0x3] sm:$0x1]   ;;  %v58_v6 = vld [vmem:[%s111_s0 + $0x2] sm:$0x1]  }
   0x4   :  { %s71_s24 = smov 24   ;;  %s72_s25 = smov 16   ;;  %v59_v7 = vld [vmem:[%s111_s0 + $0x1] sm:$0x1]   ;;  %vm27_vm4 = vcmask 326912   ;;  %vm33_vm5 = vcmask 261312  }
   0x5   :  { %s73_s0 = smov 8   ;;  %vm39_vm6 = vcmask 195712   ;;  %vm45_vm7 = vcmask 130112  }
   0x6   :  { %13 = vrot.lane.b32.xlu0 %v54_v2, %s69_s18  ;;  %25 = vrot.lane.b32.xlu1 %v56_v3, %s70_s19 }
   0xa   :  { %31 = vrot.lane.b32.xlu0 %v57_v5, %s71_s24  ;;  %37 = vrot.lane.b32.xlu1 %v58_v6, %s72_s25 }
   0xe   :  { %43 = vrot.lane.b32.xlu0 %v59_v7, %s73_s0 }
  0x74   :  { %v8_v8 = vpop.permute.xlu0 %7   ;;  %v20_v9 = vpop.permute.xlu1 %19  }
  0x75   :  { %10 = vst.msk [vmem:[#allocation0] sm:$0x1] %vm9_vm1, %v8_v8  }
  0x78   :  { %v14_v10 = vpop.permute.xlu0 %13   ;;  %v26_v11 = vpop.permute.xlu1 %25  }
  0x79   :  { %16 = vst.msk [vmem:[#allocation0] sm:$0x1] %vm15_vm2, %v14_v10  }
  0x7a   :  { %22 = vst.msk [vmem:[#allocation0] sm:$0x1] %vm21_vm3, %v20_v9  }
  0x7b   :  { %28 = vst.msk [vmem:[#allocation0] sm:$0x1] %vm27_vm4, %v26_v11  }
  0x7c   :  { %v32_v12 = vpop.permute.xlu0 %31   ;;  %v38_v13 = vpop.permute.xlu1 %37  }
  0x7d   :  { %34 = vst.msk [vmem:[#allocation0] sm:$0x1] %vm33_vm5, %v32_v12  }
  0x7e   :  { %40 = vst.msk [vmem:[#allocation0] sm:$0x1] %vm39_vm6, %v38_v13  }
  0x80   :  { %v44_v14 = vpop.permute.xlu0 %43  }
  0x81   :  { %46 = vst.msk [vmem:[#allocation0] sm:$0x1] %vm45_vm7, %v44_v14  }
  0x88   :  { %v50_v15 = vld [vmem:[#allocation0] sm:$0x1] }
  0x89   :  { %52 = vst [vmem:[%s112_s1] sm:$0x1] %v50_v15 }

// kernel: encoder_forward.7
= control target key start
LH: loop header
LB: loop body
LE: loop exit
PB: predicated region body
PF: predicated region fallthrough
CT: control target
= control target key end

     0   :  { %s421_s12 = smov 0   ;;  %s423_s13 = smov 0   ;;  %s472_s0 = inlined_call_operand.vmem [shape: f32[2,8,8,64], index: 0, kind: input, shape index: {}]   ;;  %s473_s1 = inlined_call_operand.vmem [shape: f32[1,64], index: 1, kind: input, shape index: {}]   ;;  %s474_s2 = inlined_call_operand.vmem [shape: f32[1,64], index: 2, kind: input, shape index: {}]   ;;  %s475_s3 = inlined_call_operand.vmem [shape: f32[2,8,8,64], index: 3, kind: output, shape index: {}]  }
   0x1   :  { %s425_s14 = smov 0   ;;  %s427_s15 = smov 0  }
   0x2   :  { %s429_s16 = smov 0  }
   0x3 LB: > { %s22_s17 = sadd.s32 1, %s391_s14  ;;  %s25_s18 = sadd.s32 1, %s395_s15  ;;  %s399_s16 = sphi %s429_s16, %s13_s16   ;;  %s395_s15 = sphi %s427_s15, %s479_s15   ;;  %s391_s14 = sphi %s425_s14, %s478_s14   ;;  %s387_s13 = sphi %s423_s13, %s477_s13   ;;  %s383_s12 = sphi %s421_s12, %s476_s12  }
   0x4   : > { %p23_p0 = scmp.ge.s32.totalorder %s22_s17, 8  ;;  %p312_p1 = scmp.ge.s32.totalorder %s399_s16, 1 }
   0x5   : > { %p156_p2 = scmp.lt.s32.totalorder %s399_s16, 17 }
   0x6   : > { %s481_s17 = smov (%p23_p0, %s22_s17), 0  ;;  %s483_s18 = smov (!%p23_p0, %s25_s18), %s395_s15 }
   0x7   : > { %p157_p3 = pnand %p312_p1, %p156_p2  ;;  %p27_p4 = scmp.ge.s32.totalorder %s483_s18, 2 }
   0x8   : > { %p186_p5 = scmp.lt.s32.totalorder (!%p157_p3), %s387_s13, 1  ;;  %p188_p6 = scmp.lt.s32.totalorder (!%p157_p3), %s383_s12, 7  ;;  %v317_v0 = vld [vmem:[%s473_s1] ss:$0 sm:$0xff] (!%p157_p3)  ;;  %vm220_vm0 = vcmask (!%p157_p3), 523264  }
   0x9   : > { %s485_s18 = smov (%p27_p4, %s483_s18), 0  ;;  %160 = sbr.rel (%p157_p3) target bundleno = 29 (0x1d), region = 32 }
   0xa   : > { %v318_v2 = vld [vmem:[%s474_s2] ss:$0 sm:$0xff] (!%p157_p3) }
  0x10   : > { %s487_s13 = smov (!%p186_p5, %s387_s13), 1  ;;  %s489_s12 = smov (!%p188_p6, %s383_s12), 7 }
  0x11   : > { %s313_s19 = sshll.u32 %s487_s13, 3 }
  0x12   : > { %s191_s20 = sadd.s32 %s313_s19, %s489_s12 }
  0x13   : > { %s314_s21 = sshll.u32 %s191_s20, 3 }
  0x14   : > { %s193_s26 = scalar_lea.vmem %s472_s0, %s314_s21  ;;  %s201_s4 = scalar_lea.vmem %s475_s3, %s314_s21 }
  0x15   : > { %v202_v1 = vld [vmem:[%s193_s26] sm:$0xff] }
  0x16   : > { %v210_v3 = vmul.f32 %v317_v0, %v202_v1 }
  0x18   : > { %v218_v4 = vadd.f32 %v318_v2, %v210_v3 }
  0x1a   : > { %v219_v5 = vmax.f32 %v218_v4, 0.0 }
  0x1c   : > { %221 = vst.msk [vmem:[%s201_s4] sm:$0xff] %vm220_vm0, %v219_v5 }
  0x1d PF: > { %s13_s16 = sadd.s32 1, %s399_s16   ;;  %s476_s12 = smov %s391_s14 }
  0x1e   : > { %p10_p7 = scmp.ge.s32.totalorder %s13_s16, 18   ;;  %s477_s13 = smov %s395_s15 }
  0x1f   : > { %s478_s14 = smov %s481_s17  ;;  %s479_s15 = smov %s485_s18 }
  0x20   :  { %12 = sbr.rel (!%p10_p7) target bundleno = 3 (0x3), region = 62 }

// kernel: encoder_forward.6
= control target key start
LH: loop header
LB: loop body
LE: loop exit
PB: predicated region body
PF: predicated region fallthrough
CT: control target
= control target key end

     0   :  { %s8412_s30 = smov 0   ;;  %s8414_s10 = smov 0   ;;  %s10168_s0 = inlined_call_operand.vmem [shape: f32[2,10,10,40], index: 0, kind: input, shape index: {}, may-alias: {0,1,2}]   ;;  %s10169_s1 = inlined_call_operand.vmem [shape: f32[2,10,10,40], index: 1, kind: input, shape index: {}, may-alias: {0,1,2}]   ;;  %s10170_s2 = inlined_call_operand.vmem [shape: f32[2,10,10,40], index: 2, kind: input, shape index: {}, may-alias: {0,1,2}]   ;;  %s10171_s3 = inlined_call_operand.vmem [shape: f32[10,40], index: 3, kind: input, shape index: {}]   ;;  %s10172_s4 = inlined_call_operand.vmem [shape: f32[10,40], index: 4, kind: input, shape index: {}]   ;;  %s10173_s5 = inlined_call_operand.vmem [shape: f32[9,40,64], index: 5, kind: input, shape index: {}]   ;;  %s10174_s6 = inlined_call_operand.vmem [shape: f32[1,64], index: 6, kind: input, shape index: {}]   ;;  %s10175_s7 = inlined_call_operand.vmem [shape: f32[64,8], index: 7, kind: input, shape index: {}]   ;;  %s10176_s8 = inlined_call_operand.vmem [shape: f32[2,8,8,64], index: 8, kind: output, shape index: {0}]   ;;  %s10177_s9 = inlined_call_operand.vmem [shape: f32[2,2,8], index: 9, kind: output, shape index: {1}]  }
   0x1   :  { %10181 = sst [smem:[#allocation7_spill]] %s10168_s0  ;;  %s8416_s11 = smov 0  }
   0x2   :  { %s8418_s12 = smov 0   ;;  %s8420_s13 = smov 0  }
   0x3 LB: > { %10182 = sst [smem:[#allocation2_spill]] %s8348_s11  ;;  %s29_s14 = sadd.s32 1, %s8348_s11  ;;  %s8356_s13 = sphi %s8420_s13, %s20_s13   ;;  %s8352_s12 = sphi %s8418_s12, %s10192_s12   ;;  %s8348_s11 = sphi %s8416_s11, %s10191_s11   ;;  %s8344_s10 = sphi %s8414_s10, %s10190_s10   ;;  %s8340_s30 = sphi %s8412_s30, %s10189_s30  }
   0x4   : > { %10183 = sst [smem:[#allocation3_spill]] %s8352_s12  ;;  %s32_s15 = sadd.s32 1, %s8352_s12 }
   0x5   : > { %10184 = sst [smem:[#allocation4_spill]] %s8356_s13  ;;  %p30_p0 = scmp.ge.s32.totalorder %s29_s14, 8 }
   0x6   : > { %p6387_p1 = scmp.ge.s32.totalorder %s8356_s13, 1  ;;  %p350_p2 = scmp.lt.s32.totalorder %s8356_s13, 17 }
   0x7   : > { %s10194_s14 = smov (%p30_p0, %s29_s14), 0  ;;  %s10196_s15 = smov (!%p30_p0, %s32_s15), %s8352_s12 }
   0x8   : > { %10185 = sst [smem:[#allocation5_spill]] %s10194_s14  ;;  %p351_p3 = pnand %p6387_p1, %p350_p2 }
   0x9   : > { %p34_p4 = scmp.ge.s32.totalorder %s10196_s15, 2  ;;  %p417_p5 = scmp.lt.s32.totalorder (!%p351_p3), %s8344_s10, 1 }
   0xa   : > { %354 = sbr.rel (%p351_p3) target bundleno = 864 (0x360), region = 52  ;;  %p419_p6 = scmp.lt.s32.totalorder (!%p351_p3), %s8340_s30, 9 }
   0xb   : > { %s10198_s15 = smov (%p34_p4, %s10196_s15), 0  ;;  %s426_s16 = sadd.s32 (!%p351_p3), 1, %s8340_s30 }
   0xc   : > { %10186 = sst [smem:[#allocation6_spill]] %s10198_s15  ;;  %s437_s17 = sadd.s32 (!%p351_p3), 2, %s8340_s30 }
   0xd   : > { %p429_p7 = scmp.lt.s32.totalorder (!%p351_p3), %s426_s16, 9  ;;  %p440_p8 = scmp.lt.s32.totalorder (!%p351_p3), %s437_s17, 9 }
   0xe   : > { %p450_p9 = scmp.lt.s32.totalorder (!%p351_p3), %s8340_s30, 7  ;;  %s10187_s0 = sld [smem:[#allocation7_spill]] (!%p351_p3) }
   0xf   : > { %p6397_p10 = scmp.ne.s32.totalorder (!%p351_p3), %s8340_s30, 0 }
  0x11   : > { %s10200_s10 = smov (!%p417_p5, %s8344_s10), 1  ;;  %s10202_s16 = smov (!%p429_p7, %s426_s16), 9 }
  0x12   : > { %s420_s18 = scalar_select %p419_p6, %s8340_s30, 9 }
  0x13   : > { %s8271_s19 = smul.u32 20, %s10200_s10  ;;  %s6396_s26 = sshll.u32 %s10200_s10, 1  ;;  %vm464_vm0 = vcmask (!%p6397_p10), 58368   ;;  %v8358_v0 = vmov (!%p6397_p10), 0.0  }
  0x14   : > { %s6388_s20 = sshll.u32 %s420_s18, 1  ;;  %s10204_s17 = smov (!%p440_p8, %s437_s17), 9 }
  0x15   : > { %s423_s21 = sadd.s32 %s8271_s19, %s6388_s20  ;;  %s6390_s27 = sshll.u32 %s10202_s16, 1 }
  0x16   : > { %s6389_s22 = sshll.u32 %s423_s21, 3  ;;  %s8457_s18 = scalar_lea.vmem %s10177_s9, %s6396_s26 }
  0x17   : > { %s8452_s25 = scalar_lea.vmem %s10187_s0, %s6389_s22  ;;  %s433_s20 = sadd.s32 %s8271_s19, %s6390_s27  ;;  %465 = vst.msk [vmem:[%s8457_s18] sm:$0x3] (!%p6397_p10), %vm464_vm0, %v8358_v0 }
  0x18   : > { %s6392_s15 = sshll.u32 %s10204_s17, 1  ;;  %s6391_s21 = sshll.u32 %s433_s20, 3 }
  0x19   : > { %s444_s14 = sadd.s32 %s8271_s19, %s6392_s15  ;;  %s8462_s13 = scalar_lea.vmem %s10169_s1, %s6391_s21 }
  0x1a   : > { %s6393_s22 = sshll.u32 %s444_s14, 3  ;;  %s6394_s16 = sshll.u32 %s10200_s10, 3 }
  0x1b   : > { %s8467_s0 = scalar_lea.vmem %s10170_s2, %s6393_s22  ;;  %463 = sbr.rel (%p6397_p10) target bundleno = 34 (0x22), region = 56 }
  0x1c   : > { %s451_s28 = scalar_select %p450_p9, %s8340_s30, 7 }
  0x1e   : > { %s453_s26 = sadd.s32 %s6394_s16, %s451_s28 }
  0x1f   : > { %s6395_s29 = sshll.u32 %s453_s26, 3 }
  0x20   : > { %s8475_s15 = scalar_lea.vmem %s10176_s8, %s6395_s29 }
  0x22 PF: > { %v6398_v1 = vld [vmem:[%s10173_s5 + $0x28] sm:$0xff]  ;;  %v6399_v2 = vld [vmem:[%s10173_s5 + $0x30] sm:$0xff]  ;;  %v6400_v3 = vld [vmem:[%s10173_s5 + $0x38] sm:$0xff]  ;;  %v8359_v4 = vmov 0.0|0.0   ;;  %vm8360_vm1 = vmmov 0   ;;  %v8361_v13 = vmov 0.0  }
  0x23   : > { %7803 = vmatprep.subr.bf16.mxu0 %v8359_v4  ;;  %v505_v5 = vand.u32 4294901760, %v6398_v1  ;;  %v508_v6 = vand.u32 4294901760, %v6399_v2  ;;  %7809 = vmatprep.subr.bf16.mxu1 %v8359_v4  ;;  %v6401_v7 = vld [vmem:[%s10173_s5 + $0x40] sm:$0xff]  ;;  %v511_v8 = vand.u32 4294901760, %v6400_v3  ;;  %v6402_v9 = vld [vmem:[%s10173_s5 + $0x48] sm:$0xff]  ;;  %p478_p11 = scmp.ge.s32.totalorder %s8340_s30, 1 }
  0x24   : > { %v8499_v10 = vld [vmem:[%s10171_s3] sm:$0xff]  ;;  %v514_v11 = vand.u32 4294901760, %v6401_v7  ;;  %v8501_v12 = vand.u32 4294901760, %v6402_v9  ;;  %6883 = vmatprep.mubr.msk.f32.mxu0 %vm8360_vm1, %v8361_v13  ;;  %6896 = vmatprep.mubr.msk.f32.mxu1 %vm8360_vm1, %v8361_v13  ;;  %v8510_v14 = vld [vmem:[%s10171_s3 + $0x8] sm:$0x3]  ;;  %vm497_vm2 = vcmask 1046528  }
  0x25   : > { %v470_v15 = vld [vmem:[%s8452_s25] sm:$0xff]  ;;  %v8513_v16 = vpack.c.bf16 %v508_v6, %v505_v5  ;;  %v8515_v17 = vsub.f32 %v6398_v1, %v505_v5  ;;  %v8517_v18 = vsub.f32 %v6399_v2, %v508_v6  ;;  %v8519_v19 = vsub.f32 %v6400_v3, %v511_v8  ;;  %v471_v21 = vld [vmem:[%s8452_s25 + $0x8] sm:$0x3]  ;;  %s479_s25 = scalar_select %p478_p11, 1, 0  ;;  %v8598_v63 = vld [vmem:[%s10173_s5 + $0x10] sm:$0xff] }
  0x26   : > { %v8524_v20 = vld [vmem:[%s10172_s4] sm:$0xff]  ;;  %v8528_v22 = vpack.c.bf16 %v514_v11, %v511_v8  ;;  %v8530_v23 = vsub.f32 %v6401_v7, %v514_v11  ;;  %v8533_v24 = vsub.f32 %v6402_v9, %v8501_v12  ;;  %v8538_v25 = vld [vmem:[%s10172_s4 + $0x8] sm:$0x3]  ;;  %v472_v26 = vmul.f32 %v470_v15, %v8499_v10  ;;  %v8605_v0 = vld [vmem:[%s10173_s5 + $0x18] sm:$0xff]  ;;  %p3558_p12 = scmp.le.s32.totalorder %s8340_s30, 6 }
  0x27   : > { %7805 = vmatpush3.bf16.msra.mxu0 %v8513_v16  ;;  %v587_v27 = vand.u32 4294901760, %v8515_v17  ;;  %v594_v28 = vand.u32 4294901760, %v8517_v18  ;;  %v601_v29 = vand.u32 4294901760, %v8519_v19  ;;  %v473_v30 = vmul.f32 %v471_v21, %v8510_v14  ;;  %s480_s10 = scvt.s32.f32 %s479_s25  ;;  %v8585_v57 = vld [vmem:[%s10173_s5] sm:$0xff]  ;;  %v8590_v58 = vld [vmem:[%s10173_s5 + $0x8] sm:$0xff] }
  0x28   : > { %7806 = vmatprep.subr.bf16.mxu0 %v8359_v4  ;;  %v608_v31 = vand.u32 4294901760, %v8530_v23  ;;  %v474_v32 = vadd.f32 %v472_v26, %v8524_v20  ;;  %v615_v38 = vand.u32 4294901760, %v8533_v24  ;;  %vm501_vm3 = vcmask 326656   ;;  %s3559_s19 = scalar_select %p3558_p12, 1, 0 }
  0x29   : > { %v588_v33 = vsub.f32 %v8515_v17, %v587_v27  ;;  %v595_v34 = vsub.f32 %v8517_v18, %v594_v28  ;;  %v602_v35 = vsub.f32 %v8519_v19, %v601_v29  ;;  %v475_v36 = vadd.f32 %v473_v30, %v8538_v25  ;;  %v488_v30 = vld [vmem:[%s10173_s5 + $0x20] sm:$0xff] }
  0x2a   : > { %v609_v37 = vsub.f32 %v8530_v23, %v608_v31  ;;  %v476_v39 = vmax.f32 %v474_v32, 0.0  ;;  %v481_v45 = vstv %s480_s10  ;;  %v616_v49 = vsub.f32 %v8533_v24, %v615_v38  ;;  %s3560_s30 = scvt.s32.f32 %s3559_s19 }
  0x2b   : > { %v589_v40 = vand.u32 4294901760, %v588_v33  ;;  %v596_v41 = vand.u32 4294901760, %v595_v34  ;;  %7808 = vmatpush3.bf16.msra.mxu0 %v8528_v22  ;;  %v603_v42 = vand.u32 4294901760, %v602_v35  ;;  %v477_v43 = vmax.f32 %v475_v36, 0.0 }
  0x2c   : > { %v610_v44 = vand.u32 4294901760, %v609_v37  ;;  %6881 = vmatprep.subr.mxu0 %v8361_v13  ;;  %v8565_v47 = vmul.f32 %v481_v45, %v476_v39  ;;  %v617_v55 = vand.u32 4294901760, %v616_v49  ;;  %v1005_v61 = vand.u32 4294901760, %v8585_v57 }
  0x2d   : > { %v7810_v46 = vpack.c.bf16 %v596_v41, %v589_v40  ;;  %v8567_v48 = vmul.f32 %v481_v45, %v477_v43  ;;  %v1008_v62 = vand.u32 4294901760, %v8590_v58  ;;  %v7816_v2 = vpack.c.bf16 %v8517_v18, %v8515_v17  ;;  %v2013_v40 = vld [vmem:[%s8462_s13] sm:$0xff] }
  0x2e   : > { %v7813_v50 = vpack.c.bf16 %v610_v44, %v603_v42  ;;  %v498_v51 = vrot.slane %v8565_v47, 1  ;;  %v1011_v3 = vand.u32 4294901760, %v8598_v63  ;;  %v8617_v6 = vsub.f32 %v8585_v57, %v1005_v61 }
  0x2f   : > { %7811 = vmatpush3.bf16.msra.mxu1 %v7810_v46  ;;  %6882 = vmatpush3.msra.mxu0 %v8501_v12  ;;  %v499_v52 = vrot.slane %v8567_v48, 1  ;;  %v8622_v7 = vsub.f32 %v8590_v58, %v1008_v62  ;;  %v1014_v8 = vand.u32 4294901760, %v8605_v0  ;;  %v7819_v9 = vpack.c.bf16 %v8530_v23, %v8519_v19 }
  0x30   : > { %7812 = vmatprep.subr.bf16.mxu1 %v8359_v4  ;;  %7815 = vmatprep.subr.bf16.mxu0 %v8359_v4  ;;  %v1087_v11 = vand.u32 4294901760, %v8617_v6  ;;  %v8637_v21 = vsub.f32 %v8598_v63, %v1011_v3  ;;  %v8649_v32 = vand.u32 4294901760, %v488_v30  ;;  %v1002_v33 = vsel %vm501_vm3, %v8565_v47, 0 }
  0x31   : > { %v500_v53 = vsel %vm497_vm2, %v498_v51, %v499_v52  ;;  %v1094_v15 = vand.u32 4294901760, %v8622_v7  ;;  %v8642_v26 = vsub.f32 %v8605_v0, %v1014_v8  ;;  %v7828_v39 = vpack.c.bf16 %v594_v28, %v587_v27 }
  0x32   : > { %v502_v54 = vsel %vm501_vm3, %v500_v53, 0  ;;  %v1088_v34 = vsub.f32 %v8617_v6, %v1087_v11  ;;  %v1101_v36 = vand.u32 4294901760, %v8637_v21  ;;  %v8673_v41 = vsub.f32 %v488_v30, %v8649_v32 }
  0x33   : > { %7814 = vmatpush3.bf16.msra.mxu1 %v7813_v50  ;;  %v8579_v56 = vand.u32 4294901760, %v502_v54  ;;  %v1095_v35 = vsub.f32 %v8622_v7, %v1094_v15  ;;  %v1108_v37 = vand.u32 4294901760, %v8642_v26  ;;  %v8675_v42 = vand.u32 4294901760, %v1002_v33 }
  0x34   : > { %6894 = vmatprep.subr.mxu1 %v8361_v13  ;;  %v1089_v17 = vand.u32 4294901760, %v1088_v34  ;;  %v7831_v28 = vpack.c.bf16 %v608_v31, %v601_v29  ;;  %v2015_v43 = vmul.f32 %v2013_v40, %v8499_v10  ;;  %v1115_v44 = vand.u32 4294901760, %v8673_v41 }
  0x35   : > { %v575_v59 = vsub.f32 %v502_v54, %v8579_v56  ;;  %v1096_v18 = vand.u32 4294901760, %v1095_v35  ;;  %v1109_v27 = vsub.f32 %v8642_v26, %v1108_v37  ;;  %v8699_v29 = vsub.f32 %v1002_v33, %v8675_v42 }
  0x36   : > { %v8696_v45 = vadd.f32 %v2015_v43, %v8524_v20  ;;  %v8727_v50 = vpack.c.bf16 %v1014_v8, %v1011_v3  ;;  %v7852_v58 = vpack.c.bf16 %v8622_v7, %v8617_v6  ;;  %v1509_v63 = vrot.slane %v8565_v47, 2 }
  0x37   : > { %6895 = vmatpush3.msra.mxu1 %v617_v55  ;;  %v576_v60 = vand.u32 4294901760, %v575_v59  ;;  %v7846_v19 = vpack.c.bf16 %v1096_v18, %v1089_v17  ;;  %v1110_v23 = vand.u32 4294901760, %v1109_v27  ;;  %v1076_v49 = vand.u32 4294901760, %v8699_v29  ;;  %v8749_v55 = vld [vmem:[%s10173_s5 + $0x60] sm:$0xff] }
  0x38   : > { %6897 = vmatmul.mubr.f32.vlgmr.msra.gmra.mrb[0].mxu1 %v8579_v56  ;;  %7821 = vmatprep.subr.bf16.mxu1 %v8359_v4  ;;  %v1510_v0 = vrot.slane %v8567_v48, 2  ;;  %vm1508_vm4 = vcmask 1045504   ;;  %v3550_v17 = vld [vmem:[%s8467_s0] sm:$0xff]  ;;  %v7867_v27 = vpack.c.bf16 %v1108_v37, %v1101_v36  ;;  %vm5101_vm5 = vcmask 523264  }
  0x39   : > { %v577_v1 = vsub.f32 %v575_v59, %v576_v60  ;;  %7823 = vmatpush3.bf16.msra.mxu1 %v8513_v16  ;;  %6922 = vmatprep.mubr.msk.f32.mxu1 %vm8360_vm1, %v8361_v13  ;;  %v1077_v51 = vsub.f32 %v8699_v29, %v1076_v49  ;;  %vm5668_vm6 = vcmask 57344  }
  0x3a   : > { %7824 = vmatprep.subr.bf16.mxu1 %v8359_v4  ;;  %v1511_v8 = vsel %vm1508_vm4, %v1509_v63, %v1510_v0 }
  0x3b   : > { %v578_v5 = vand.u32 4294901760, %v577_v1  ;;  %v1078_v57 = vand.u32 4294901760, %v1077_v51  ;;  %v7855_v1 = vpack.c.bf16 %v8642_v26, %v8637_v21  ;;  %v1512_v40 = vsel %vm501_vm3, %v1511_v8, 0 }
  0x3d   : > { %6884 = vmatmul.mubr.f32.vlgmr.msra.gmra.mrb[0].mxu0 %v578_v5  ;;  %7826 = vmatpush3.bf16.msra.mxu1 %v8528_v22  ;;  %v6407_v5 = vld [vmem:[%s10173_s5 + $0x70] sm:$0xff] }
  0x3e   : > { %7817 = vmatpush3.bf16.msra.mxu0 %v7816_v2  ;;  %6909 = vmatprep.mubr.msk.f32.mxu0 %vm8360_vm1, %v8361_v13  ;;  %v8806_v30 = vand.u32 4294901760, %v6407_v5 }
  0x3f   : > { %7818 = vmatprep.subr.bf16.mxu0 %v8359_v4  ;;  %6920 = vmatprep.subr.mxu1 %v8361_v13 }
  0x40   : > { %v8833_v7 = vsub.f32 %v6407_v5, %v8806_v30 }
  0x41   : > { %6921 = vmatpush3.msra.mxu1 %v8501_v12 }
  0x42   : > { %7820 = vmatpush3.bf16.msra.mxu0 %v7819_v9  ;;  %7833 = vmatprep.subr.bf16.mxu1 %v8359_v4  ;;  %v1625_v43 = vand.u32 4294901760, %v8833_v7 }
  0x43   : > { %6907 = vmatprep.subr.mxu0 %v8361_v13  ;;  %6923 = vmatmul.mubr.f32.vlgmr.msra.gmra.mrb[2].mxu1 %v576_v60 }
  0x44   : > { %7835 = vmatpush3.bf16.msra.mxu1 %v8513_v16  ;;  %6948 = vmatprep.mubr.msk.f32.mxu1 %vm8360_vm1, %v8361_v13  ;;  %v1102_v16 = vsub.f32 %v8637_v21, %v1101_v36 }
  0x45   : > { %7836 = vmatprep.subr.bf16.mxu1 %v8359_v4 }
  0x46   : > { %6908 = vmatpush3.msra.mxu0 %v8533_v24  ;;  %v1103_v46 = vand.u32 4294901760, %v1102_v16  ;;  %v8734_v24 = vld [vmem:[%s10173_s5 + $0x50] sm:$0xff]  ;;  %v8840_v16 = vand.u32 4294901760, %v1512_v40 }
  0x47   : > { %6910 = vmatmul.mubr.f32.vlgmr.msra.gmra.mrb[2].mxu0 %v575_v59  ;;  %7827 = vmatprep.subr.bf16.mxu0 %v8359_v4  ;;  %v1515_v53 = vand.u32 4294901760, %v8734_v24  ;;  %v1521_v59 = vand.u32 4294901760, %v8749_v55 }
  0x48   : > { %7829 = vmatpush3.bf16.msra.mxu0 %v7828_v39  ;;  %7838 = vmatpush3.bf16.msra.mxu1 %v8528_v22  ;;  %v8708_v22 = vpack.c.bf16 %v1008_v62, %v1005_v61  ;;  %v7849_v31 = vpack.c.bf16 %v1110_v23, %v1103_v46  ;;  %v7864_v39 = vpack.c.bf16 %v1094_v15, %v1087_v11 }
  0x49   : > { %7830 = vmatprep.subr.bf16.mxu0 %v8359_v4  ;;  %6935 = vmatprep.mubr.msk.f32.mxu0 %vm8360_vm1, %v8361_v13  ;;  %v8769_v60 = vsub.f32 %v8734_v24, %v1515_v53  ;;  %v8789_v2 = vsub.f32 %v8749_v55, %v1521_v59  ;;  %v8857_v36 = vsub.f32 %v1512_v40, %v8840_v16 }
  0x4a   : > { %6946 = vmatprep.subr.mxu1 %v8361_v13  ;;  %v1626_v23 = vsub.f32 %v8833_v7, %v1625_v43 }
  0x4b   : > { %v1597_v47 = vand.u32 4294901760, %v8769_v60  ;;  %v1611_v9 = vand.u32 4294901760, %v8789_v2  ;;  %v1586_v37 = vand.u32 4294901760, %v8857_v36 }
  0x4c   : > { %7832 = vmatpush3.bf16.msra.mxu0 %v7831_v28  ;;  %6947 = vmatpush3.msra.mxu1 %v8501_v12  ;;  %v1116_v12 = vsub.f32 %v8673_v41, %v1115_v44  ;;  %v3552_v28 = vmul.f32 %v3550_v17, %v8499_v10 }
  0x4d   : > { %6933 = vmatprep.subr.mxu0 %v8361_v13  ;;  %7845 = vmatprep.subr.bf16.mxu1 %v8359_v4  ;;  %v1598_v33 = vsub.f32 %v8769_v60, %v1597_v47  ;;  %v1612_v6 = vsub.f32 %v8789_v2, %v1611_v9 }
  0x4e   : > { %6949 = vmatmul.mubr.f32.vlgmr.msra.gmra.mrb[4].mxu1 %v8579_v56  ;;  %v1117_v52 = vand.u32 4294901760, %v1116_v12  ;;  %v8913_v12 = vld [vmem:[%s10173_s5 + $0x90] sm:$0xff] }
  0x4f   : > { %7847 = vmatpush3.bf16.msra.mxu1 %v7846_v19  ;;  %6974 = vmatprep.mubr.msk.f32.mxu1 %vm8360_vm1, %v8361_v13  ;;  %v1599_v11 = vand.u32 4294901760, %v1598_v33  ;;  %v8854_v19 = vadd.f32 %v3552_v28, %v8524_v20  ;;  %v1613_v46 = vand.u32 4294901760, %v1612_v6 }
  0x50   : > { %6934 = vmatpush3.msra.mxu0 %v615_v38  ;;  %7848 = vmatprep.subr.bf16.mxu1 %v8359_v4  ;;  %v8739_v38 = vld [vmem:[%s10173_s5 + $0x58] sm:$0xff] }
  0x51   : > { %6936 = vmatmul.mubr.f32.vlgmr.msra.gmra.mrb[4].mxu0 %v8579_v56  ;;  %7839 = vmatprep.subr.bf16.mxu0 %v8359_v4  ;;  %v1518_v54 = vand.u32 4294901760, %v8739_v38  ;;  %v8755_v56 = vld [vmem:[%s10173_s5 + $0x68] sm:$0xff] }
  0x52   : > { %7841 = vmatpush3.bf16.msra.mxu0 %v8708_v22  ;;  %6961 = vmatprep.mubr.msk.f32.mxu0 %vm8360_vm1, %v8361_v13  ;;  %v1524_v62 = vand.u32 4294901760, %v8755_v56 }
  0x53   : > { %7842 = vmatprep.subr.bf16.mxu0 %v8359_v4  ;;  %7850 = vmatpush3.bf16.msra.mxu1 %v7849_v31  ;;  %v8774_v61 = vsub.f32 %v8739_v38, %v1518_v54  ;;  %v8865_v10 = vpack.c.bf16 %v1518_v54, %v1515_v53  ;;  %v2040_v53 = vand.u32 4294901760, %v8913_v12 }
  0x54   : > { %6972 = vmatprep.subr.mxu1 %v8361_v13  ;;  %v8798_v3 = vsub.f32 %v8755_v56, %v1524_v62 }
  0x55   : > { %v1604_v48 = vand.u32 4294901760, %v8774_v61  ;;  %v7888_v24 = vpack.c.bf16 %v8774_v61, %v8769_v60 }
  0x56   : > { %7844 = vmatpush3.bf16.msra.mxu0 %v8727_v50  ;;  %v1618_v35 = vand.u32 4294901760, %v8798_v3  ;;  %v7891_v54 = vpack.c.bf16 %v8798_v3, %v8789_v2  ;;  %v2014_v2 = vld [vmem:[%s8462_s13 + $0x8] sm:$0x3] }
  0x57   : > { %6959 = vmatprep.subr.mxu0 %v8361_v13  ;;  %6973 = vmatpush3.msra.mxu1 %v1117_v52  ;;  %v1605_v34 = vsub.f32 %v8774_v61, %v1604_v48  ;;  %v7900_v8 = vpack.c.bf16 %v1604_v48, %v1597_v47 }
  0x58   : > { %7857 = vmatprep.subr.bf16.mxu1 %v8359_v4  ;;  %6975 = vmatmul.mubr.f32.vlgmr.msra.gmra.mrb[6].mxu1 %v8675_v42  ;;  %v1619_v18 = vsub.f32 %v8798_v3, %v1618_v35  ;;  %v7903_v40 = vpack.c.bf16 %v1618_v35, %v1611_v9 }
  0x59   : > { %7859 = vmatpush3.bf16.msra.mxu1 %v8708_v22  ;;  %7000 = vmatprep.mubr.msk.f32.mxu1 %vm8360_vm1, %v8361_v13  ;;  %v1606_v15 = vand.u32 4294901760, %v1605_v34 }
  0x5a   : > { %6960 = vmatpush3.msra.mxu0 %v8649_v32  ;;  %7860 = vmatprep.subr.bf16.mxu1 %v8359_v4  ;;  %v1620_v26 = vand.u32 4294901760, %v1619_v18 }
  0x5b   : > { %6962 = vmatmul.mubr.f32.vlgmr.msra.gmra.mrb[6].mxu0 %v1078_v57  ;;  %7851 = vmatprep.subr.bf16.mxu0 %v8359_v4  ;;  %v7882_v21 = vpack.c.bf16 %v1606_v15, %v1599_v11 }
  0x5c   : > { %7853 = vmatpush3.bf16.msra.mxu0 %v7852_v58  ;;  %6987 = vmatprep.mubr.msk.f32.mxu0 %vm8360_vm1, %v8361_v13  ;;  %v7885_v20 = vpack.c.bf16 %v1620_v26, %v1613_v46  ;;  %v8954_v58 = vsub.f32 %v8913_v12, %v2040_v53 }
  0x5d   : > { %7854 = vmatprep.subr.bf16.mxu0 %v8359_v4  ;;  %7862 = vmatpush3.bf16.msra.mxu1 %v8727_v50 }
  0x5e   : > { %6998 = vmatprep.subr.mxu1 %v8361_v13 }
  0x60   : > { %7856 = vmatpush3.bf16.msra.mxu0 %v7855_v1 }
  0x61   : > { %6985 = vmatprep.subr.mxu0 %v8361_v13  ;;  %6999 = vmatpush3.msra.mxu1 %v8649_v32 }
  0x62   : > { %7869 = vmatprep.subr.bf16.mxu1 %v8359_v4  ;;  %7001 = vmatmul.mubr.f32.vlgmr.msra.gmra.mrb[8].mxu1 %v1076_v49  ;;  %v8907_v49 = vld [vmem:[%s10173_s5 + $0x88] sm:$0xff] }
  0x63   : > { %7871 = vmatpush3.bf16.msra.mxu1 %v8708_v22  ;;  %7026 = vmatprep.mubr.msk.f32.mxu1 %vm8360_vm1, %v8361_v13  ;;  %v2037_v38 = vand.u32 4294901760, %v8907_v49 }
  0x64   : > { %6986 = vmatpush3.msra.mxu0 %v8673_v41  ;;  %7872 = vmatprep.subr.bf16.mxu1 %v8359_v4  ;;  %v8892_v41 = vld [vmem:[%s10173_s5 + $0x78] sm:$0xff] }
  0x65   : > { %6988 = vmatmul.mubr.f32.vlgmr.msra.gmra.mrb[8].mxu0 %v8699_v29  ;;  %7863 = vmatprep.subr.bf16.mxu0 %v8359_v4  ;;  %v1627_v29 = vand.u32 4294901760, %v1626_v23  ;;  %v2031_v22 = vand.u32 4294901760, %v8892_v41  ;;  %v8945_v55 = vsub.f32 %v8907_v49, %v2037_v38  ;;  %v9041_v28 = vpack.c.bf16 %v2040_v53, %v2037_v38 }
  0x66   : > { %7865 = vmatpush3.bf16.msra.mxu0 %v7864_v39  ;;  %7013 = vmatprep.mubr.msk.f32.mxu0 %vm8360_vm1, %v8361_v13 }
  0x67   : > { %7866 = vmatprep.subr.bf16.mxu0 %v8359_v4  ;;  %7874 = vmatpush3.bf16.msra.mxu1 %v8727_v50  ;;  %v8927_v51 = vsub.f32 %v8892_v41, %v2031_v22  ;;  %v2127_v63 = vand.u32 4294901760, %v8945_v55 }
  0x68   : > { %7024 = vmatprep.subr.mxu1 %v8361_v13 }
  0x69   : > { %v2113_v56 = vand.u32 4294901760, %v8927_v51  ;;  %v2128_v60 = vsub.f32 %v8945_v55, %v2127_v63 }
  0x6a   : > { %7868 = vmatpush3.bf16.msra.mxu0 %v7867_v27 }
  0x6b   : > { %7011 = vmatprep.subr.mxu0 %v8361_v13  ;;  %7025 = vmatpush3.msra.mxu1 %v8649_v32  ;;  %v8885_v32 = vpack.c.bf16 %v1524_v62, %v1521_v59  ;;  %v6412_v59 = vld [vmem:[%s10173_s5 + $0x98] sm:$0xff]  ;;  %v8961_v62 = vmax.f32 %v8696_v45, 0.0  ;;  %v2114_v1 = vsub.f32 %v8927_v51, %v2113_v56  ;;  %v2134_v45 = vand.u32 4294901760, %v8954_v58 }
  0x6c   : > { %7881 = vmatprep.subr.bf16.mxu1 %v8359_v4  ;;  %7027 = vmatmul.mubr.f32.vlgmr.msra.gmra.mrb[10].mxu1 %v8675_v42  ;;  %v8964_v0 = vand.u32 4294901760, %v6412_v59  ;;  %v2129_v11 = vand.u32 4294901760, %v2128_v60 }
  0x6d   : > { %7883 = vmatpush3.bf16.msra.mxu1 %v7882_v21  ;;  %7052 = vmatprep.mubr.msk.f32.mxu1 %vm8360_vm1, %v8361_v13  ;;  %v2028_v33 = vsel %vm501_vm3, %v8961_v62, 0  ;;  %v2115_v47 = vand.u32 4294901760, %v2114_v1  ;;  %v2135_v34 = vsub.f32 %v8954_v58, %v2134_v45 }
  0x6e   : > { %7012 = vmatpush3.msra.mxu0 %v1115_v44  ;;  %7884 = vmatprep.subr.bf16.mxu1 %v8359_v4  ;;  %v1587_v44 = vsub.f32 %v8857_v36, %v1586_v37  ;;  %v8991_v61 = vsub.f32 %v6412_v59, %v8964_v0  ;;  %v8998_v39 = vand.u32 4294901760, %v2028_v33 }
  0x6f   : > { %7014 = vmatmul.mubr.f32.vlgmr.msra.gmra.mrb[10].mxu0 %v8675_v42  ;;  %7875 = vmatprep.subr.bf16.mxu0 %v8359_v4  ;;  %v8897_v42 = vld [vmem:[%s10173_s5 + $0x80] sm:$0xff]  ;;  %v2136_v15 = vand.u32 4294901760, %v2135_v34 }
  0x70   : > { %7877 = vmatpush3.bf16.msra.mxu0 %v8865_v10  ;;  %7039 = vmatprep.mubr.msk.f32.mxu0 %vm8360_vm1, %v8361_v13  ;;  %v2034_v31 = vand.u32 4294901760, %v8897_v42  ;;  %v1588_v50 = vand.u32 4294901760, %v1587_v44  ;;  %v2141_v17 = vand.u32 4294901760, %v8991_v61  ;;  %v9011_v18 = vsub.f32 %v2028_v33, %v8998_v39 }
  0x71   : > { %7878 = vmatprep.subr.bf16.mxu0 %v8359_v4  ;;  %7886 = vmatpush3.bf16.msra.mxu1 %v7885_v20  ;;  %v7921_v9 = vpack.c.bf16 %v2136_v15, %v2129_v11  ;;  %v2536_v44 = vrot.slane %v8961_v62, 1 }
  0x72   : > { %7050 = vmatprep.subr.mxu1 %v8361_v13  ;;  %v8932_v52 = vsub.f32 %v8897_v42, %v2034_v31  ;;  %v9020_v3 = vpack.c.bf16 %v2034_v31, %v2031_v22  ;;  %v2102_v35 = vand.u32 4294901760, %v9011_v18  ;;  %v2142_v27 = vsub.f32 %v8991_v61, %v2141_v17 }
  0x73   : > { %v7927_v22 = vpack.c.bf16 %v8954_v58, %v8945_v55 }
  0x74   : > { %7880 = vmatpush3.bf16.msra.mxu0 %v8885_v32  ;;  %v2120_v57 = vand.u32 4294901760, %v8932_v52 }
  0x75   : > { %7037 = vmatprep.subr.mxu0 %v8361_v13  ;;  %7051 = vmatpush3.msra.mxu1 %v1627_v29 }
  0x76   : > { %7053 = vmatmul.mubr.f32.vlgmr.msra.gmra.mrb[12].mxu1 %v8840_v16  ;;  %7893 = vmatprep.subr.bf16.mxu1 %v8359_v4  ;;  %v2121_v5 = vsub.f32 %v8932_v52, %v2120_v57 }
  0x77   : > { %7895 = vmatpush3.bf16.msra.mxu1 %v8865_v10  ;;  %7078 = vmatprep.mubr.msk.f32.mxu1 %vm8360_vm1, %v8361_v13 }
  0x78   : > { %7038 = vmatpush3.msra.mxu0 %v8806_v30  ;;  %7896 = vmatprep.subr.bf16.mxu1 %v8359_v4  ;;  %v2122_v48 = vand.u32 4294901760, %v2121_v5 }
  0x79   : > { %7040 = vmatmul.mubr.f32.vlgmr.msra.gmra.mrb[12].mxu0 %v1588_v50  ;;  %7887 = vmatprep.subr.bf16.mxu0 %v8359_v4 }
  0x7a   : > { %7889 = vmatpush3.bf16.msra.mxu0 %v7888_v24  ;;  %7065 = vmatprep.mubr.msk.f32.mxu0 %vm8360_vm1, %v8361_v13  ;;  %v7918_v6 = vpack.c.bf16 %v2122_v48, %v2115_v47  ;;  %v6417_v24 = vld [vmem:[%s10173_s5 + $0xc0] sm:$0xff]  ;;  %v7939_v48 = vpack.c.bf16 %v2134_v45, %v2127_v63 }
  0x7b   : > { %7890 = vmatprep.subr.bf16.mxu0 %v8359_v4  ;;  %7898 = vmatpush3.bf16.msra.mxu1 %v8885_v32 }
  0x7c   : > { %7076 = vmatprep.subr.mxu1 %v8361_v13 }
  0x7e   : > { %7892 = vmatpush3.bf16.msra.mxu0 %v7891_v54  ;;  %v9127_v54 = vand.u32 4294901760, %v6417_v24 }
  0x7f   : > { %7063 = vmatprep.subr.mxu0 %v8361_v13  ;;  %7077 = vmatpush3.msra.mxu1 %v8806_v30 }
  0x80   : > { %7905 = vmatprep.subr.bf16.mxu1 %v8359_v4  ;;  %7079 = vmatmul.mubr.f32.vlgmr.msra.gmra.mrb[14].mxu1 %v1586_v37  ;;  %v7924_v37 = vpack.c.bf16 %v8932_v52, %v8927_v51  ;;  %v9155_v52 = vsub.f32 %v6417_v24, %v9127_v54 }
  0x81   : > { %7907 = vmatpush3.bf16.msra.mxu1 %v8865_v10  ;;  %7104 = vmatprep.mubr.msk.f32.mxu1 %vm8360_vm1, %v8361_v13  ;;  %v9074_v10 = vld [vmem:[%s10173_s5 + $0xb8] sm:$0xff] }
  0x82   : > { %7064 = vmatpush3.msra.mxu0 %v8833_v7  ;;  %7908 = vmatprep.subr.bf16.mxu1 %v8359_v4  ;;  %v9053_v7 = vld [vmem:[%s10173_s5 + $0xa8] sm:$0xff]  ;;  %v2551_v42 = vand.u32 4294901760, %v9074_v10  ;;  %v2652_v34 = vand.u32 4294901760, %v9155_v52 }
  0x83   : > { %7066 = vmatmul.mubr.f32.vlgmr.msra.gmra.mrb[14].mxu0 %v8857_v36  ;;  %7899 = vmatprep.subr.bf16.mxu0 %v8359_v4  ;;  %v2545_v26 = vand.u32 4294901760, %v9053_v7  ;;  %v9068_v36 = vld [vmem:[%s10173_s5 + $0xb0] sm:$0xff] }
  0x84   : > { %7901 = vmatpush3.bf16.msra.mxu0 %v7900_v8  ;;  %7091 = vmatprep.mubr.msk.f32.mxu0 %vm8360_vm1, %v8361_v13  ;;  %v2548_v23 = vand.u32 4294901760, %v9068_v36  ;;  %v9119_v50 = vsub.f32 %v9074_v10, %v2551_v42  ;;  %v7936_v8 = vpack.c.bf16 %v2120_v57, %v2113_v56  ;;  %v2653_v45 = vsub.f32 %v9155_v52, %v2652_v34 }
  0x85   : > { %7902 = vmatprep.subr.bf16.mxu0 %v8359_v4  ;;  %7910 = vmatpush3.bf16.msra.mxu1 %v8885_v32  ;;  %v9094_v41 = vsub.f32 %v9053_v7, %v2545_v26 }
  0x86   : > { %7102 = vmatprep.subr.mxu1 %v8361_v13  ;;  %v9110_v31 = vsub.f32 %v9068_v36, %v2548_v23  ;;  %v2645_v5 = vand.u32 4294901760, %v9119_v50 }
  0x87   : > { %v2631_v12 = vand.u32 4294901760, %v9094_v41 }
  0x88   : > { %7904 = vmatpush3.bf16.msra.mxu0 %v7903_v40  ;;  %v2638_v53 = vand.u32 4294901760, %v9110_v31  ;;  %v2646_v60 = vsub.f32 %v9119_v50, %v2645_v5 }
  0x89   : > { %7089 = vmatprep.subr.mxu0 %v8361_v13  ;;  %7103 = vmatpush3.msra.mxu1 %v8806_v30  ;;  %v2016_v30 = vmul.f32 %v2014_v2, %v8510_v14  ;;  %v9048_v14 = vld [vmem:[%s10173_s5 + $0xa0] sm:$0xff]  ;;  %v2632_v1 = vsub.f32 %v9094_v41, %v2631_v12 }
  0x8a   : > { %7917 = vmatprep.subr.bf16.mxu1 %v8359_v4  ;;  %7105 = vmatmul.mubr.f32.vlgmr.msra.gmra.mrb[16].mxu1 %v8840_v16  ;;  %v2542_v46 = vand.u32 4294901760, %v9048_v14  ;;  %v2639_v51 = vsub.f32 %v9110_v31, %v2638_v53  ;;  %v2647_v11 = vand.u32 4294901760, %v2646_v60  ;;  %v9370_v60 = vld [vmem:[%s10173_s5 + $0xf8] sm:$0xff] }
  0x8b   : > { %7919 = vmatpush3.bf16.msra.mxu1 %v7918_v6  ;;  %7130 = vmatprep.mubr.msk.f32.mxu1 %vm8360_vm1, %v8361_v13  ;;  %v9060_v21 = vadd.f32 %v2016_v30, %v8538_v25  ;;  %v2633_v57 = vand.u32 4294901760, %v2632_v1  ;;  %v7975_v1 = vpack.c.bf16 %v2645_v5, %v2638_v53 }
  0x8c   : > { %7090 = vmatpush3.msra.mxu0 %v1625_v43  ;;  %7920 = vmatprep.subr.bf16.mxu1 %v8359_v4  ;;  %v2143_v43 = vand.u32 4294901760, %v2142_v27  ;;  %v9089_v32 = vsub.f32 %v9048_v14, %v2542_v46  ;;  %v2640_v6 = vand.u32 4294901760, %v2639_v51  ;;  %v9183_v55 = vpack.c.bf16 %v2545_v26, %v2542_v46 }
  0x8d   : > { %7092 = vmatmul.mubr.f32.vlgmr.msra.gmra.mrb[16].mxu0 %v8840_v16  ;;  %7911 = vmatprep.subr.bf16.mxu0 %v8359_v4  ;;  %v2103_v16 = vsub.f32 %v9011_v18, %v2102_v35  ;;  %v2020_v20 = vmax.f32 %v9060_v21, 0.0  ;;  %v7963_v26 = vpack.c.bf16 %v9119_v50, %v9110_v31 }
  0x8e   : > { %7913 = vmatpush3.bf16.msra.mxu0 %v9020_v3  ;;  %7117 = vmatprep.mubr.msk.f32.mxu0 %vm8360_vm1, %v8361_v13  ;;  %v2624_v49 = vand.u32 4294901760, %v9089_v32  ;;  %v7957_v58 = vpack.c.bf16 %v2647_v11, %v2640_v6  ;;  %v7960_v30 = vpack.c.bf16 %v9094_v41, %v9089_v32  ;;  %v9384_v6 = vld [vmem:[%s10173_s5 + $0x100] sm:$0xff]  ;;  %v9390_v11 = vld [vmem:[%s10173_s5 + $0x108] sm:$0xff] }
  0x8f   : > { %7914 = vmatprep.subr.bf16.mxu0 %v8359_v4  ;;  %7922 = vmatpush3.bf16.msra.mxu1 %v7921_v9  ;;  %v2104_v25 = vand.u32 4294901760, %v2103_v16  ;;  %v2537_v29 = vrot.slane %v2020_v20, 1  ;;  %v9225_v9 = vld [vmem:[%s10173_s5 + $0xd8] sm:$0xff]  ;;  %v3047_v46 = vrot.slane %v2020_v20, 2 }
  0x90   : > { %7128 = vmatprep.subr.mxu1 %v8361_v13  ;;  %v2625_v59 = vsub.f32 %v9089_v32, %v2624_v49 }
  0x91   : > { %v2538_v38 = vsel %vm497_vm2, %v2536_v44, %v2537_v29 }
  0x92   : > { %7916 = vmatpush3.bf16.msra.mxu0 %v9041_v28  ;;  %v2539_v33 = vsel %vm501_vm3, %v2538_v38, 0  ;;  %v2626_v56 = vand.u32 4294901760, %v2625_v59 }
  0x93   : > { %7115 = vmatprep.subr.mxu0 %v8361_v13  ;;  %7129 = vmatpush3.msra.mxu1 %v2143_v43  ;;  %v9162_v47 = vand.u32 4294901760, %v2539_v33  ;;  %v3046_v43 = vrot.slane %v8961_v62, 2 }
  0x94   : > { %7131 = vmatmul.mubr.f32.vlgmr.msra.gmra.mrb[18].mxu1 %v8998_v39  ;;  %7929 = vmatprep.subr.bf16.mxu1 %v8359_v4  ;;  %v7954_v40 = vpack.c.bf16 %v2633_v57, %v2626_v56 }
  0x95   : > { %7931 = vmatpush3.bf16.msra.mxu1 %v9020_v3  ;;  %7156 = vmatprep.mubr.msk.f32.mxu1 %vm8360_vm1, %v8361_v13  ;;  %v9175_v15 = vsub.f32 %v2539_v33, %v9162_v47  ;;  %v3048_v20 = vsel %vm1508_vm4, %v3046_v43, %v3047_v46 }
  0x96   : > { %7116 = vmatpush3.msra.mxu0 %v8964_v0  ;;  %7932 = vmatprep.subr.bf16.mxu1 %v8359_v4  ;;  %v3049_v24 = vsel %vm501_vm3, %v3048_v20, 0 }
  0x97   : > { %7118 = vmatmul.mubr.f32.vlgmr.msra.gmra.mrb[18].mxu0 %v2104_v25  ;;  %7923 = vmatprep.subr.bf16.mxu0 %v8359_v4  ;;  %v2613_v63 = vand.u32 4294901760, %v9175_v15  ;;  %v6422_v25 = vld [vmem:[%s10173_s5 + $0xe8] sm:$0xff]  ;;  %v9316_v59 = vand.u32 4294901760, %v3049_v24 }
  0x98   : > { %7925 = vmatpush3.bf16.msra.mxu0 %v7924_v37  ;;  %7143 = vmatprep.mubr.msk.f32.mxu0 %vm8360_vm1, %v8361_v13 }
  0x99   : > { %7926 = vmatprep.subr.bf16.mxu0 %v8359_v4  ;;  %7934 = vmatpush3.bf16.msra.mxu1 %v9041_v28  ;;  %v9329_v31 = vsub.f32 %v3049_v24, %v9316_v59 }
  0x9a   : > { %7154 = vmatprep.subr.mxu1 %v8361_v13 }
  0x9b   : > { %v3123_v5 = vand.u32 4294901760, %v9329_v31 }
  0x9c   : > { %7928 = vmatpush3.bf16.msra.mxu0 %v7927_v22  ;;  %v7972_v22 = vpack.c.bf16 %v2631_v12, %v2624_v49 }
  0x9d   : > { %7141 = vmatprep.subr.mxu0 %v8361_v13  ;;  %7155 = vmatpush3.msra.mxu1 %v8964_v0 }
  0x9e   : > { %7941 = vmatprep.subr.bf16.mxu1 %v8359_v4  ;;  %7157 = vmatmul.mubr.f32.vlgmr.msra.gmra.mrb[20].mxu1 %v2102_v35  ;;  %v9231_v35 = vld [vmem:[%s10173_s5 + $0xe0] sm:$0xff] }
  0x9f   : > { %7943 = vmatpush3.bf16.msra.mxu1 %v9020_v3  ;;  %7182 = vmatprep.mubr.msk.f32.mxu1 %vm8360_vm1, %v8361_v13  ;;  %v3061_v16 = vand.u32 4294901760, %v9231_v35 }
  0xa0   : > { %7142 = vmatpush3.msra.mxu0 %v8991_v61  ;;  %7944 = vmatprep.subr.bf16.mxu1 %v8359_v4  ;;  %v9210_v61 = vld [vmem:[%s10173_s5 + $0xc8] sm:$0xff] }
  0xa1   : > { %7144 = vmatmul.mubr.f32.vlgmr.msra.gmra.mrb[20].mxu0 %v9011_v18  ;;  %7935 = vmatprep.subr.bf16.mxu0 %v8359_v4  ;;  %v2654_v18 = vand.u32 4294901760, %v2653_v45  ;;  %v3052_v2 = vand.u32 4294901760, %v9210_v61  ;;  %v9275_v10 = vsub.f32 %v9231_v35, %v3061_v16 }
  0xa2   : > { %7937 = vmatpush3.bf16.msra.mxu0 %v7936_v8  ;;  %7169 = vmatprep.mubr.msk.f32.mxu0 %vm8360_vm1, %v8361_v13 }
  0xa3   : > { %7938 = vmatprep.subr.bf16.mxu0 %v8359_v4  ;;  %7946 = vmatpush3.bf16.msra.mxu1 %v9041_v28  ;;  %v3058_v28 = vand.u32 4294901760, %v9225_v9  ;;  %v9245_v14 = vsub.f32 %v9210_v61, %v3052_v2  ;;  %v3155_v29 = vand.u32 4294901760, %v9275_v10  ;;  %v3556_v61 = vmax.f32 %v8854_v19, 0.0 }
  0xa4   : > { %7180 = vmatprep.subr.mxu1 %v8361_v13 }
  0xa5   : > { %v9266_v36 = vsub.f32 %v9225_v9, %v3058_v28  ;;  %v3134_v62 = vand.u32 4294901760, %v9245_v14  ;;  %v3156_v38 = vsub.f32 %v9275_v10, %v3155_v29  ;;  %v6427_v9 = vld [vmem:[%s10173_s5 + $0x110] sm:$0xff] }
  0xa6   : > { %7940 = vmatpush3.bf16.msra.mxu0 %v7939_v48 }
  0xa7   : > { %7167 = vmatprep.subr.mxu0 %v8361_v13  ;;  %7181 = vmatpush3.msra.mxu1 %v8964_v0  ;;  %v9203_v0 = vpack.c.bf16 %v2551_v42, %v2548_v23  ;;  %v3148_v37 = vand.u32 4294901760, %v9266_v36  ;;  %v9283_v23 = vand.u32 4294901760, %v6422_v25  ;;  %v3135_v42 = vsub.f32 %v9245_v14, %v3134_v62 }
  0xa8   : > { %7953 = vmatprep.subr.bf16.mxu1 %v8359_v4  ;;  %7183 = vmatmul.mubr.f32.vlgmr.msra.gmra.mrb[22].mxu1 %v8998_v39  ;;  %v3157_v56 = vand.u32 4294901760, %v3156_v38  ;;  %v8317_v38 = vld [vmem:[%s10172_s4 + $0x8] sm:$0x3] }
  0xa9   : > { %7955 = vmatpush3.bf16.msra.mxu1 %v7954_v40  ;;  %7208 = vmatprep.mubr.msk.f32.mxu1 %vm8360_vm1, %v8361_v13  ;;  %v3149_v32 = vsub.f32 %v9266_v36, %v3148_v37  ;;  %v9309_v41 = vsub.f32 %v6422_v25, %v9283_v23  ;;  %v3136_v49 = vand.u32 4294901760, %v3135_v42  ;;  %v3577_v40 = vand.u32 4294901760, %v9370_v60 }
  0xaa   : > { %7168 = vmatpush3.msra.mxu0 %v2141_v17  ;;  %7956 = vmatprep.subr.bf16.mxu1 %v8359_v4  ;;  %v2614_v17 = vsub.f32 %v9175_v15, %v2613_v63  ;;  %v8011_v42 = vpack.c.bf16 %v3155_v29, %v3148_v37 }
  0xab   : > { %7170 = vmatmul.mubr.f32.vlgmr.msra.gmra.mrb[22].mxu0 %v8998_v39  ;;  %7947 = vmatprep.subr.bf16.mxu0 %v8359_v4  ;;  %v9215_v39 = vld [vmem:[%s10173_s5 + $0xd0] sm:$0xff]  ;;  %v3162_v8 = vand.u32 4294901760, %v9309_v41  ;;  %v3150_v51 = vand.u32 4294901760, %v3149_v32  ;;  %v9409_v45 = vsub.f32 %v9370_v60, %v3577_v40 }
  0xac   : > { %7949 = vmatpush3.bf16.msra.mxu0 %v9183_v55  ;;  %7195 = vmatprep.mubr.msk.f32.mxu0 %vm8360_vm1, %v8361_v13  ;;  %v3055_v3 = vand.u32 4294901760, %v9215_v39  ;;  %v2615_v27 = vand.u32 4294901760, %v2614_v17  ;;  %v7999_v17 = vpack.c.bf16 %v9275_v10, %v9266_v36  ;;  %v8316_v36 = vld [vmem:[%s10171_s3 + $0x8] sm:$0x3] }
  0xad   : > { %7950 = vmatprep.subr.bf16.mxu0 %v8359_v4  ;;  %7958 = vmatpush3.bf16.msra.mxu1 %v7957_v58  ;;  %v7993_v53 = vpack.c.bf16 %v3157_v56, %v3150_v51  ;;  %v3163_v57 = vsub.f32 %v9309_v41, %v3162_v8  ;;  %v3580_v58 = vand.u32 4294901760, %v9384_v6  ;;  %v9526_v51 = vld [vmem:[%s10173_s5 + $0x118] sm:$0xff]  ;;  %v9531_v56 = vld [vmem:[%s10173_s5 + $0x120] sm:$0xff] }
  0xae   : > { %7206 = vmatprep.subr.mxu1 %v8361_v13  ;;  %v9250_v7 = vsub.f32 %v9215_v39, %v3055_v3  ;;  %v9337_v50 = vpack.c.bf16 %v3055_v3, %v3052_v2  ;;  %v9416_v39 = vstv %s3560_s30  ;;  %v3663_v2 = vand.u32 4294901760, %v9409_v45 }
  0xaf   : > { %v3164_v48 = vand.u32 4294901760, %v3163_v57  ;;  %v9441_v35 = vmul.f32 %v9416_v39, %v3556_v61  ;;  %v9558_v57 = vld [vmem:[%s10173_s5 + $0x130] sm:$0xff] }
  0xb0   : > { %7952 = vmatpush3.bf16.msra.mxu0 %v9203_v0  ;;  %v3141_v21 = vand.u32 4294901760, %v9250_v7 }
  0xb1   : > { %7193 = vmatprep.subr.mxu0 %v8361_v13  ;;  %7207 = vmatpush3.msra.mxu1 %v2654_v18  ;;  %v9425_v18 = vsub.f32 %v9384_v6, %v3580_v58  ;;  %v4079_v6 = vrot.slane %v9441_v35, 1 }
  0xb2   : > { %7209 = vmatmul.mubr.f32.vlgmr.msra.gmra.mrb[24].mxu1 %v9162_v47  ;;  %7965 = vmatprep.subr.bf16.mxu1 %v8359_v4  ;;  %v3142_v44 = vsub.f32 %v9250_v7, %v3141_v21  ;;  %v8008_v46 = vpack.c.bf16 %v3141_v21, %v3134_v62 }
  0xb3   : > { %7967 = vmatpush3.bf16.msra.mxu1 %v9183_v55  ;;  %7234 = vmatprep.mubr.msk.f32.mxu1 %vm8360_vm1, %v8361_v13 }
  0xb4   : > { %7194 = vmatpush3.msra.mxu0 %v9127_v54  ;;  %7968 = vmatprep.subr.bf16.mxu1 %v8359_v4  ;;  %v3143_v12 = vand.u32 4294901760, %v3142_v44  ;;  %v3551_v44 = vld [vmem:[%s8467_s0 + $0x8] sm:$0x3] }
  0xb5   : > { %7196 = vmatmul.mubr.f32.vlgmr.msra.gmra.mrb[24].mxu0 %v2615_v27  ;;  %7959 = vmatprep.subr.bf16.mxu0 %v8359_v4  ;;  %v3670_v27 = vand.u32 4294901760, %v9425_v18  ;;  %v3553_v10 = vmul.f32 %v8316_v36, %v3551_v44 }
  0xb6   : > { %7961 = vmatpush3.bf16.msra.mxu0 %v7960_v30  ;;  %7221 = vmatprep.mubr.msk.f32.mxu0 %vm8360_vm1, %v8361_v13  ;;  %v7990_v33 = vpack.c.bf16 %v3143_v12, %v3136_v49  ;;  %v9444_v30 = vand.u32 4294901760, %v6427_v9 }
  0xb7   : > { %7962 = vmatprep.subr.bf16.mxu0 %v8359_v4  ;;  %7970 = vmatpush3.bf16.msra.mxu1 %v9203_v0 }
  0xb8   : > { %7232 = vmatprep.subr.mxu1 %v8361_v13 }
  0xba   : > { %7964 = vmatpush3.bf16.msra.mxu0 %v7963_v26  ;;  %v3571_v26 = vsel %vm501_vm3, %v9441_v35, 0 }
  0xbb   : > { %7219 = vmatprep.subr.mxu0 %v8361_v13  ;;  %7233 = vmatpush3.msra.mxu1 %v9127_v54  ;;  %v9480_v20 = vand.u32 4294901760, %v3571_v26 }
  0xbc   : > { %7977 = vmatprep.subr.bf16.mxu1 %v8359_v4  ;;  %7235 = vmatmul.mubr.f32.vlgmr.msra.gmra.mrb[26].mxu1 %v2613_v63 }
  0xbd   : > { %7979 = vmatpush3.bf16.msra.mxu1 %v9183_v55  ;;  %7260 = vmatprep.mubr.msk.f32.mxu1 %vm8360_vm1, %v8361_v13  ;;  %v7996_v55 = vpack.c.bf16 %v9250_v7, %v9245_v14  ;;  %v3671_v14 = vsub.f32 %v9425_v18, %v3670_v27  ;;  %v9473_v7 = vsub.f32 %v6427_v9, %v9444_v30 }
  0xbe   : > { %7220 = vmatpush3.msra.mxu0 %v9155_v52  ;;  %7980 = vmatprep.subr.bf16.mxu1 %v8359_v4  ;;  %v9365_v52 = vld [vmem:[%s10173_s5 + $0xf0] sm:$0xff]  ;;  %v9497_v37 = vsub.f32 %v3571_v26, %v9480_v20 }
  0xbf   : > { %7222 = vmatmul.mubr.f32.vlgmr.msra.gmra.mrb[26].mxu0 %v9175_v15  ;;  %7971 = vmatprep.subr.bf16.mxu0 %v8359_v4  ;;  %v3684_v24 = vand.u32 4294901760, %v9473_v7 }
  0xc0   : > { %7973 = vmatpush3.bf16.msra.mxu0 %v7972_v22  ;;  %7247 = vmatprep.mubr.msk.f32.mxu0 %vm8360_vm1, %v8361_v13  ;;  %v3672_v22 = vand.u32 4294901760, %v3671_v14 }
  0xc1   : > { %7974 = vmatprep.subr.bf16.mxu0 %v8359_v4  ;;  %7982 = vmatpush3.bf16.msra.mxu1 %v9203_v0  ;;  %v3583_v0 = vand.u32 4294901760, %v9390_v11 }
  0xc2   : > { %7258 = vmatprep.subr.mxu1 %v8361_v13 }
  0xc3   : > { %v9434_v3 = vsub.f32 %v9390_v11, %v3583_v0 }
  0xc4   : > { %7976 = vmatpush3.bf16.msra.mxu0 %v7975_v1  ;;  %v3555_v1 = vadd.f32 %v8317_v38, %v3553_v10  ;;  %v9691_v10 = vld [vmem:[%s10173_s5 + $0x148] sm:$0xff]  ;;  %v9718_v38 = vld [vmem:[%s10173_s5 + $0x158] sm:$0xff] }
  0xc5   : > { %7245 = vmatprep.subr.mxu0 %v8361_v13  ;;  %7259 = vmatpush3.msra.mxu1 %v9127_v54  ;;  %v9358_v54 = vpack.c.bf16 %v3061_v16, %v3058_v28  ;;  %v3664_v16 = vsub.f32 %v9409_v45, %v3663_v2  ;;  %v3677_v43 = vand.u32 4294901760, %v9434_v3 }
  0xc6   : > { %7989 = vmatprep.subr.bf16.mxu1 %v8359_v4  ;;  %7261 = vmatmul.mubr.f32.vlgmr.msra.gmra.mrb[28].mxu1 %v9162_v47 }
  0xc7   : > { %7991 = vmatpush3.bf16.msra.mxu1 %v7990_v33  ;;  %7286 = vmatprep.mubr.msk.f32.mxu1 %vm8360_vm1, %v8361_v13  ;;  %v3665_v21 = vand.u32 4294901760, %v3664_v16  ;;  %v3678_v25 = vsub.f32 %v9434_v3, %v3677_v43  ;;  %v3645_v33 = vand.u32 4294901760, %v9497_v37 }
  0xc8   : > { %7246 = vmatpush3.msra.mxu0 %v2652_v34  ;;  %7992 = vmatprep.subr.bf16.mxu1 %v8359_v4  ;;  %v3574_v34 = vand.u32 4294901760, %v9365_v52 }
  0xc9   : > { %7248 = vmatmul.mubr.f32.vlgmr.msra.gmra.mrb[28].mxu0 %v9162_v47  ;;  %7983 = vmatprep.subr.bf16.mxu0 %v8359_v4  ;;  %v3124_v47 = vsub.f32 %v9329_v31, %v3123_v5  ;;  %v3679_v49 = vand.u32 4294901760, %v3678_v25 }
  0xca   : > { %7985 = vmatpush3.bf16.msra.mxu0 %v9337_v50  ;;  %7273 = vmatprep.mubr.msk.f32.mxu0 %vm8360_vm1, %v8361_v13  ;;  %v9404_v63 = vsub.f32 %v9365_v52, %v3574_v34  ;;  %v9505_v29 = vpack.c.bf16 %v3577_v40, %v3574_v34  ;;  %v4094_v40 = vand.u32 4294901760, %v9558_v57 }
  0xcb   : > { %7986 = vmatprep.subr.bf16.mxu0 %v8359_v4  ;;  %7994 = vmatpush3.bf16.msra.mxu1 %v7993_v53  ;;  %v3125_v15 = vand.u32 4294901760, %v3124_v47  ;;  %v8029_v12 = vpack.c.bf16 %v3679_v49, %v3672_v22  ;;  %v4088_v53 = vand.u32 4294901760, %v9531_v56 }
  0xcc   : > { %7284 = vmatprep.subr.mxu1 %v8361_v13  ;;  %v3656_v19 = vand.u32 4294901760, %v9404_v63  ;;  %v8032_v60 = vpack.c.bf16 %v9409_v45, %v9404_v63  ;;  %v9604_v61 = vsub.f32 %v9558_v57, %v4094_v40 }
  0xce   : > { %7988 = vmatpush3.bf16.msra.mxu0 %v9358_v54  ;;  %v3657_v28 = vsub.f32 %v9404_v63, %v3656_v19  ;;  %v8044_v14 = vpack.c.bf16 %v3663_v2, %v3656_v19 }
  0xcf   : > { %7271 = vmatprep.subr.mxu0 %v8361_v13  ;;  %7285 = vmatpush3.msra.mxu1 %v3164_v48  ;;  %v9576_v48 = vsub.f32 %v9531_v56, %v4088_v53 }
  0xd0   : > { %7287 = vmatmul.mubr.f32.vlgmr.msra.gmra.mrb[30].mxu1 %v9316_v59  ;;  %8001 = vmatprep.subr.bf16.mxu1 %v8359_v4  ;;  %v3658_v62 = vand.u32 4294901760, %v3657_v28 }
  0xd1   : > { %8003 = vmatpush3.bf16.msra.mxu1 %v9337_v50  ;;  %7312 = vmatprep.mubr.msk.f32.mxu1 %vm8360_vm1, %v8361_v13 }
  0xd2   : > { %7272 = vmatpush3.msra.mxu0 %v9283_v23  ;;  %8004 = vmatprep.subr.bf16.mxu1 %v8359_v4  ;;  %v8026_v32 = vpack.c.bf16 %v3665_v21, %v3658_v62 }
  0xd3   : > { %7274 = vmatmul.mubr.f32.vlgmr.msra.gmra.mrb[30].mxu0 %v3125_v15  ;;  %7995 = vmatprep.subr.bf16.mxu0 %v8359_v4  ;;  %v8035_v15 = vpack.c.bf16 %v9434_v3, %v9425_v18 }
  0xd4   : > { %7997 = vmatpush3.bf16.msra.mxu0 %v7996_v55  ;;  %7299 = vmatprep.mubr.msk.f32.mxu0 %vm8360_vm1, %v8361_v13 }
  0xd5   : > { %7998 = vmatprep.subr.bf16.mxu0 %v8359_v4  ;;  %8006 = vmatpush3.bf16.msra.mxu1 %v9358_v54 }
  0xd6   : > { %7310 = vmatprep.subr.mxu1 %v8361_v13 }
  0xd8   : > { %8000 = vmatpush3.bf16.msra.mxu0 %v7999_v17 }
  0xd9   : > { %7297 = vmatprep.subr.mxu0 %v8361_v13  ;;  %7311 = vmatpush3.msra.mxu1 %v9283_v23 }
  0xda   : > { %8013 = vmatprep.subr.bf16.mxu1 %v8359_v4  ;;  %7313 = vmatmul.mubr.f32.vlgmr.msra.gmra.mrb[32].mxu1 %v3123_v5  ;;  %v9553_v5 = vld [vmem:[%s10173_s5 + $0x128] sm:$0xff] }
  0xdb   : > { %8015 = vmatpush3.bf16.msra.mxu1 %v9337_v50  ;;  %7338 = vmatprep.mubr.msk.f32.mxu1 %vm8360_vm1, %v8361_v13  ;;  %v4085_v50 = vand.u32 4294901760, %v9526_v51  ;;  %v4091_v34 = vand.u32 4294901760, %v9553_v5 }
  0xdc   : > { %7298 = vmatpush3.msra.mxu0 %v9309_v41  ;;  %8016 = vmatprep.subr.bf16.mxu1 %v8359_v4  ;;  %v9538_v41 = vpack.c.bf16 %v3583_v0, %v3580_v58  ;;  %v4174_v58 = vand.u32 4294901760, %v9576_v48 }
  0xdd   : > { %7300 = vmatmul.mubr.f32.vlgmr.msra.gmra.mrb[32].mxu0 %v9329_v31  ;;  %8007 = vmatprep.subr.bf16.mxu0 %v8359_v4  ;;  %v9571_v47 = vsub.f32 %v9526_v51, %v4085_v50  ;;  %v9599_v0 = vsub.f32 %v9553_v5, %v4091_v34  ;;  %v9668_v3 = vpack.c.bf16 %v4088_v53, %v4085_v50 }
  0xde   : > { %8009 = vmatpush3.bf16.msra.mxu0 %v8008_v46  ;;  %7325 = vmatprep.mubr.msk.f32.mxu0 %vm8360_vm1, %v8361_v13  ;;  %v4175_v28 = vsub.f32 %v9576_v48, %v4174_v58  ;;  %v4188_v46 = vand.u32 4294901760, %v9604_v61 }
  0xdf   : > { %8010 = vmatprep.subr.bf16.mxu0 %v8359_v4  ;;  %8018 = vmatpush3.bf16.msra.mxu1 %v9358_v54  ;;  %v4167_v55 = vand.u32 4294901760, %v9571_v47  ;;  %v4181_v16 = vand.u32 4294901760, %v9599_v0  ;;  %v8071_v5 = vpack.c.bf16 %v9604_v61, %v9599_v0 }
  0xe0   : > { %7336 = vmatprep.subr.mxu1 %v8361_v13  ;;  %v4176_v21 = vand.u32 4294901760, %v4175_v28  ;;  %v4189_v19 = vsub.f32 %v9604_v61, %v4188_v46 }
  0xe1   : > { %v4168_v9 = vsub.f32 %v9571_v47, %v4167_v55  ;;  %v4182_v45 = vsub.f32 %v9599_v0, %v4181_v16  ;;  %v8080_v28 = vpack.c.bf16 %v4174_v58, %v4167_v55 }
  0xe2   : > { %8012 = vmatpush3.bf16.msra.mxu0 %v8011_v42  ;;  %v8047_v42 = vpack.c.bf16 %v3677_v43, %v3670_v27 }
  0xe3   : > { %7323 = vmatprep.subr.mxu0 %v8361_v13  ;;  %7337 = vmatpush3.msra.mxu1 %v9283_v23  ;;  %v3685_v23 = vsub.f32 %v9473_v7, %v3684_v24  ;;  %v4169_v63 = vand.u32 4294901760, %v4168_v9  ;;  %v4183_v22 = vand.u32 4294901760, %v4182_v45 }
  0xe4   : > { %8025 = vmatprep.subr.bf16.mxu1 %v8359_v4  ;;  %7339 = vmatmul.mubr.f32.vlgmr.msra.gmra.mrb[34].mxu1 %v9316_v59 }
  0xe5   : > { %8027 = vmatpush3.bf16.msra.mxu1 %v8026_v32  ;;  %7364 = vmatprep.mubr.msk.f32.mxu1 %vm8360_vm1, %v8361_v13  ;;  %v3686_v31 = vand.u32 4294901760, %v3685_v23  ;;  %v8062_v44 = vpack.c.bf16 %v4176_v21, %v4169_v63  ;;  %v4190_v32 = vand.u32 4294901760, %v4189_v19  ;;  %v8068_v23 = vpack.c.bf16 %v9576_v48, %v9571_v47 }
  0xe6   : > { %7324 = vmatpush3.msra.mxu0 %v3162_v8  ;;  %8028 = vmatprep.subr.bf16.mxu1 %v8359_v4  ;;  %v3646_v8 = vsub.f32 %v9497_v37, %v3645_v33 }
  0xe7   : > { %7326 = vmatmul.mubr.f32.vlgmr.msra.gmra.mrb[34].mxu0 %v9316_v59  ;;  %8019 = vmatprep.subr.bf16.mxu0 %v8359_v4  ;;  %v3557_v59 = vmax.f32 %v3555_v1, 0.0  ;;  %v8065_v27 = vpack.c.bf16 %v4190_v32, %v4183_v22 }
  0xe8   : > { %8021 = vmatpush3.bf16.msra.mxu0 %v9505_v29  ;;  %7351 = vmatprep.mubr.msk.f32.mxu0 %vm8360_vm1, %v8361_v13  ;;  %v3647_v52 = vand.u32 4294901760, %v3646_v8  ;;  %v4604_v8 = vand.u32 4294901760, %v9718_v38 }
  0xe9   : > { %8022 = vmatprep.subr.bf16.mxu0 %v8359_v4  ;;  %8030 = vmatpush3.bf16.msra.mxu1 %v8029_v12  ;;  %v9562_v54 = vmul.f32 %v9416_v39, %v3557_v59  ;;  %v6432_v39 = vld [vmem:[%s10173_s5 + $0x138] sm:$0xff]  ;;  %v9712_v12 = vld [vmem:[%s10173_s5 + $0x150] sm:$0xff] }
  0xea   : > { %7362 = vmatprep.subr.mxu1 %v8361_v13  ;;  %v9621_v26 = vand.u32 4294901760, %v6432_v39  ;;  %v4601_v59 = vand.u32 4294901760, %v9712_v12 }
  0xeb   : > { %v4080_v11 = vrot.slane %v9562_v54, 1  ;;  %v4590_v50 = vrot.slane %v9562_v54, 2  ;;  %v9761_v54 = vsub.f32 %v9718_v38, %v4604_v8 }
  0xec   : > { %8024 = vmatpush3.bf16.msra.mxu0 %v9538_v41  ;;  %v9645_v2 = vsub.f32 %v6432_v39, %v9621_v26 }
  0xed   : > { %7349 = vmatprep.subr.mxu0 %v8361_v13  ;;  %7363 = vmatpush3.msra.mxu1 %v3686_v31  ;;  %v4081_v17 = vsel %vm497_vm2, %v4079_v6, %v4080_v11  ;;  %v4589_v31 = vrot.slane %v9441_v35, 2 }
  0xee   : > { %7365 = vmatmul.mubr.f32.vlgmr.msra.gmra.mrb[36].mxu1 %v9480_v20  ;;  %8037 = vmatprep.subr.bf16.mxu1 %v8359_v4  ;;  %v4082_v62 = vsel %vm501_vm3, %v4081_v17, 0  ;;  %v4195_v18 = vand.u32 4294901760, %v9645_v2  ;;  %v4698_v17 = vand.u32 4294901760, %v9761_v54 }
  0xef   : > { %8039 = vmatpush3.bf16.msra.mxu1 %v9505_v29  ;;  %7390 = vmatprep.mubr.msk.f32.mxu1 %vm8360_vm1, %v8361_v13  ;;  %v9647_v25 = vand.u32 4294901760, %v4082_v62  ;;  %v4591_v6 = vsel %vm1508_vm4, %v4589_v31, %v4590_v50 }
  0xf0   : > { %7350 = vmatpush3.msra.mxu0 %v9444_v30  ;;  %8040 = vmatprep.subr.bf16.mxu1 %v8359_v4  ;;  %v4196_v36 = vsub.f32 %v9645_v2, %v4195_v18  ;;  %v4699_v58 = vsub.f32 %v9761_v54, %v4698_v17 }
  0xf1   : > { %7352 = vmatmul.mubr.f32.vlgmr.msra.gmra.mrb[36].mxu0 %v3647_v52  ;;  %8031 = vmatprep.subr.bf16.mxu0 %v8359_v4  ;;  %v9659_v49 = vsub.f32 %v4082_v62, %v9647_v25  ;;  %v4592_v62 = vsel %vm501_vm3, %v4591_v6, 0 }
  0xf2   : > { %8033 = vmatpush3.bf16.msra.mxu0 %v8032_v60  ;;  %7377 = vmatprep.mubr.msk.f32.mxu0 %vm8360_vm1, %v8361_v13  ;;  %v9754_v60 = vsub.f32 %v9712_v12, %v4601_v59  ;;  %v9804_v45 = vand.u32 4294901760, %v4592_v62 }
  0xf3   : > { %8034 = vmatprep.subr.bf16.mxu0 %v8359_v4  ;;  %8042 = vmatpush3.bf16.msra.mxu1 %v9538_v41  ;;  %v4156_v43 = vand.u32 4294901760, %v9659_v49 }
  0xf4   : > { %7388 = vmatprep.subr.mxu1 %v8361_v13  ;;  %v4691_v39 = vand.u32 4294901760, %v9754_v60  ;;  %v9816_v0 = vsub.f32 %v4592_v62, %v9804_v45 }
  0xf6   : > { %8036 = vmatpush3.bf16.msra.mxu0 %v8035_v15  ;;  %v4692_v55 = vsub.f32 %v9754_v60, %v4691_v39 }
  0xf7   : > { %7375 = vmatprep.subr.mxu0 %v8361_v13  ;;  %7389 = vmatpush3.msra.mxu1 %v9444_v30 }
  0xf8   : > { %8049 = vmatprep.subr.bf16.mxu1 %v8359_v4  ;;  %7391 = vmatmul.mubr.f32.vlgmr.msra.gmra.mrb[38].mxu1 %v3645_v33 }
  0xf9   : > { %8051 = vmatpush3.bf16.msra.mxu1 %v9505_v29  ;;  %7416 = vmatprep.mubr.msk.f32.mxu1 %vm8360_vm1, %v8361_v13  ;;  %v4598_v29 = vand.u32 4294901760, %v9691_v10 }
  0xfa   : > { %7376 = vmatpush3.msra.mxu0 %v9473_v7  ;;  %8052 = vmatprep.subr.bf16.mxu1 %v8359_v4  ;;  %v9698_v7 = vpack.c.bf16 %v4094_v40, %v4091_v34  ;;  %v6437_v40 = vld [vmem:[%s10173_s5 + $0x160] sm:$0xff] }
  0xfb   : > { %7378 = vmatmul.mubr.f32.vlgmr.msra.gmra.mrb[38].mxu0 %v9497_v37  ;;  %8043 = vmatprep.subr.bf16.mxu0 %v8359_v4  ;;  %v9778_v9 = vand.u32 4294901760, %v6437_v40 }
  0xfc   : > { %8045 = vmatpush3.bf16.msra.mxu0 %v8044_v14  ;;  %7403 = vmatprep.mubr.msk.f32.mxu0 %vm8360_vm1, %v8361_v13 }
  0xfd   : > { %8046 = vmatprep.subr.bf16.mxu0 %v8359_v4  ;;  %8054 = vmatpush3.bf16.msra.mxu1 %v9538_v41  ;;  %v9733_v41 = vsub.f32 %v9691_v10, %v4598_v29  ;;  %v9802_v21 = vsub.f32 %v6437_v40, %v9778_v9  ;;  %v8095_v10 = vpack.c.bf16 %v4604_v8, %v4601_v59 }
  0xfe   : > { %7414 = vmatprep.subr.mxu1 %v8361_v13 }
  0xff   : > { %v4684_v52 = vand.u32 4294901760, %v9733_v41  ;;  %v4705_v61 = vand.u32 4294901760, %v9802_v21 }
 0x100   : > { %8048 = vmatpush3.bf16.msra.mxu0 %v8047_v42  ;;  %v8083_v42 = vpack.c.bf16 %v4188_v46, %v4181_v16 }
 0x101   : > { %7401 = vmatprep.subr.mxu0 %v8361_v13  ;;  %7415 = vmatpush3.msra.mxu1 %v9444_v30  ;;  %v9686_v30 = vld [vmem:[%s10173_s5 + $0x140] sm:$0xff]  ;;  %v4685_v15 = vsub.f32 %v9733_v41, %v4684_v52 }
 0x102   : > { %8061 = vmatprep.subr.bf16.mxu1 %v8359_v4  ;;  %7417 = vmatmul.mubr.f32.vlgmr.msra.gmra.mrb[40].mxu1 %v9480_v20  ;;  %v4595_v37 = vand.u32 4294901760, %v9686_v30 }
 0x103   : > { %8063 = vmatpush3.bf16.msra.mxu1 %v8062_v44  ;;  %7442 = vmatprep.mubr.msk.f32.mxu1 %vm8360_vm1, %v8361_v13  ;;  %v4686_v48 = vand.u32 4294901760, %v4685_v15 }
 0x104   : > { %7402 = vmatpush3.msra.mxu0 %v3684_v24  ;;  %8064 = vmatprep.subr.bf16.mxu1 %v8359_v4  ;;  %v4197_v24 = vand.u32 4294901760, %v4196_v36  ;;  %v9728_v56 = vsub.f32 %v9686_v30, %v4595_v37  ;;  %v8092_v16 = vpack.c.bf16 %v4598_v29, %v4595_v37  ;;  %v4666_v36 = vand.u32 4294901760, %v9816_v0 }
 0x105   : > { %7404 = vmatmul.mubr.f32.vlgmr.msra.gmra.mrb[40].mxu0 %v9480_v20  ;;  %8055 = vmatprep.subr.bf16.mxu0 %v8359_v4  ;;  %v4157_v20 = vsub.f32 %v9659_v49, %v4156_v43 }
 0x106   : > { %8057 = vmatpush3.bf16.msra.mxu0 %v9668_v3  ;;  %7429 = vmatprep.mubr.msk.f32.mxu0 %vm8360_vm1, %v8361_v13  ;;  %v4677_v57 = vand.u32 4294901760, %v9728_v56  ;;  %v8104_v29 = vpack.c.bf16 %v9733_v41, %v9728_v56  ;;  %v8119_v41 = vpack.c.bf16 %v4698_v17, %v4691_v39 }
 0x107   : > { %8058 = vmatprep.subr.bf16.mxu0 %v8359_v4  ;;  %8066 = vmatpush3.bf16.msra.mxu1 %v8065_v27  ;;  %v4158_v1 = vand.u32 4294901760, %v4157_v20  ;;  %v4700_v27 = vand.u32 4294901760, %v4699_v58 }
 0x108   : > { %7440 = vmatprep.subr.mxu1 %v8361_v13  ;;  %v4678_v11 = vsub.f32 %v9728_v56, %v4677_v57  ;;  %v8116_v8 = vpack.c.bf16 %v4684_v52, %v4677_v57 }
 0x10a   : > { %8060 = vmatpush3.bf16.msra.mxu0 %v9698_v7  ;;  %v4679_v47 = vand.u32 4294901760, %v4678_v11 }
 0x10b   : > { %7427 = vmatprep.subr.mxu0 %v8361_v13  ;;  %7441 = vmatpush3.msra.mxu1 %v4197_v24  ;;  %v676_v33 = vpop.f32.mrb[0].mxu1 }
 0x10c   : > { %7443 = vmatmul.mubr.f32.vlgmr.msra.gmra.mrb[42].mxu1 %v9647_v25  ;;  %8073 = vmatprep.subr.bf16.mxu1 %v8359_v4  ;;  %v6898_v51 = vpop.f32.mrb[1].mxu1  ;;  %v8098_v32 = vpack.c.bf16 %v4686_v48, %v4679_v47 }
 0x10d   : > { %8075 = vmatpush3.bf16.msra.mxu1 %v9668_v3  ;;  %7468 = vmatprep.mubr.msk.f32.mxu1 %vm8360_vm1, %v8361_v13 }
 0x10e   : > { %7428 = vmatpush3.msra.mxu0 %v9621_v26  ;;  %8076 = vmatprep.subr.bf16.mxu1 %v8359_v4 }
 0x10f   : > { %7430 = vmatmul.mubr.f32.vlgmr.msra.gmra.mrb[42].mxu0 %v4158_v1  ;;  %8067 = vmatprep.subr.bf16.mxu0 %v8359_v4 }
 0x110   : > { %8069 = vmatpush3.bf16.msra.mxu0 %v8068_v23  ;;  %v580_v53 = vpop.f32.mrb[0].mxu0  ;;  %7455 = vmatprep.mubr.msk.f32.mxu0 %vm8360_vm1, %v8361_v13 }
 0x111   : > { %v677_v35 = vadd.f32 %v676_v33, %v580_v53  ;;  %v6885_v34 = vpop.f32.mrb[1].mxu0  ;;  %8070 = vmatprep.subr.bf16.mxu0 %v8359_v4  ;;  %8078 = vmatpush3.bf16.msra.mxu1 %v9698_v7  ;;  %v8107_v33 = vpack.c.bf16 %v9761_v54, %v9754_v60 }
 0x112   : > { %7466 = vmatprep.subr.mxu1 %v8361_v13 }
 0x114   : > { %8072 = vmatpush3.bf16.msra.mxu0 %v8071_v5 }
 0x115   : > { %7453 = vmatprep.subr.mxu0 %v8361_v13  ;;  %7467 = vmatpush3.msra.mxu1 %v9621_v26 }
 0x116   : > { %8085 = vmatprep.subr.bf16.mxu1 %v8359_v4  ;;  %7469 = vmatmul.mubr.f32.vlgmr.msra.gmra.mrb[44].mxu1 %v4156_v43  ;;  %v836_v14 = vpop.f32.mrb[2].mxu1 }
 0x117   : > { %8087 = vmatpush3.bf16.msra.mxu1 %v9668_v3  ;;  %v6924_v63 = vpop.f32.mrb[3].mxu1  ;;  %7494 = vmatprep.mubr.msk.f32.mxu1 %vm8360_vm1, %v8361_v13 }
 0x118   : > { %7454 = vmatpush3.msra.mxu0 %v9645_v2  ;;  %8088 = vmatprep.subr.bf16.mxu1 %v8359_v4 }
 0x119   : > { %7456 = vmatmul.mubr.f32.vlgmr.msra.gmra.mrb[44].mxu0 %v9659_v49  ;;  %8079 = vmatprep.subr.bf16.mxu0 %v8359_v4  ;;  %v4693_v49 = vand.u32 4294901760, %v4692_v55 }
 0x11a   : > { %v758_v19 = vpop.f32.mrb[2].mxu0  ;;  %8081 = vmatpush3.bf16.msra.mxu0 %v8080_v28  ;;  %7481 = vmatprep.mubr.msk.f32.mxu0 %vm8360_vm1, %v8361_v13 }
 0x11b   : > { %v759_v44 = vadd.f32 %v758_v19, %v677_v35  ;;  %v6911_v22 = vpop.f32.mrb[3].mxu0  ;;  %8082 = vmatprep.subr.bf16.mxu0 %v8359_v4  ;;  %8090 = vmatpush3.bf16.msra.mxu1 %v9698_v7  ;;  %v8101_v43 = vpack.c.bf16 %v4700_v27, %v4693_v49  ;;  %v4706_v7 = vsub.f32 %v9802_v21, %v4705_v61 }
 0x11c   : > { %7492 = vmatprep.subr.mxu1 %v8361_v13 }
 0x11d   : > { %v837_v3 = vadd.f32 %v836_v14, %v759_v44 }
 0x11e   : > { %8084 = vmatpush3.bf16.msra.mxu0 %v8083_v42 }
 0x11f   : > { %7479 = vmatprep.subr.mxu0 %v8361_v13  ;;  %7493 = vmatpush3.msra.mxu1 %v9621_v26 }
 0x120   : > { %8097 = vmatprep.subr.bf16.mxu1 %v8359_v4  ;;  %7495 = vmatmul.mubr.f32.vlgmr.msra.gmra.mrb[46].mxu1 %v9647_v25 }
 0x121   : > { %8099 = vmatpush3.bf16.msra.mxu1 %v8098_v32  ;;  %v998_v46 = vpop.f32.mrb[4].mxu1  ;;  %7520 = vmatprep.mubr.msk.f32.mxu1 %vm8360_vm1, %v8361_v13 }
 0x122   : > { %7480 = vmatpush3.msra.mxu0 %v4195_v18  ;;  %v6950_v26 = vpop.f32.mrb[5].mxu1  ;;  %8100 = vmatprep.subr.bf16.mxu1 %v8359_v4  ;;  %v4667_v18 = vsub.f32 %v9816_v0, %v4666_v36 }
 0x123   : > { %7482 = vmatmul.mubr.f32.vlgmr.msra.gmra.mrb[46].mxu0 %v9647_v25  ;;  %8091 = vmatprep.subr.bf16.mxu0 %v8359_v4  ;;  %v4707_v25 = vand.u32 4294901760, %v4706_v7 }
 0x124   : > { %v922_v30 = vpop.f32.mrb[4].mxu0  ;;  %8093 = vmatpush3.bf16.msra.mxu0 %v8092_v16  ;;  %7507 = vmatprep.mubr.msk.f32.mxu0 %vm8360_vm1, %v8361_v13  ;;  %v4668_v37 = vand.u32 4294901760, %v4667_v18 }
 0x125   : > { %v923_v20 = vadd.f32 %v922_v30, %v837_v3  ;;  %v6937_v2 = vpop.f32.mrb[5].mxu0  ;;  %8094 = vmatprep.subr.bf16.mxu0 %v8359_v4  ;;  %8102 = vmatpush3.bf16.msra.mxu1 %v8101_v43 }
 0x126   : > { %7518 = vmatprep.subr.mxu1 %v8361_v13 }
 0x127   : > { %v999_v24 = vadd.f32 %v998_v46, %v923_v20 }
 0x128   : > { %8096 = vmatpush3.bf16.msra.mxu0 %v8095_v10 }
 0x129   : > { %7505 = vmatprep.subr.mxu0 %v8361_v13  ;;  %7519 = vmatpush3.msra.mxu1 %v4707_v25 }
 0x12a   : > { %7521 = vmatmul.mubr.f32.vlgmr.msra.gmra.mrb[48].mxu1 %v9804_v45  ;;  %8109 = vmatprep.subr.bf16.mxu1 %v8359_v4 }
 0x12b   : > { %8111 = vmatpush3.bf16.msra.mxu1 %v8092_v16  ;;  %v1176_v12 = vpop.f32.mrb[6].mxu1  ;;  %7546 = vmatprep.mubr.msk.f32.mxu1 %vm8360_vm1, %v8361_v13 }
 0x12c   : > { %7506 = vmatpush3.msra.mxu0 %v9778_v9  ;;  %v6976_v38 = vpop.f32.mrb[7].mxu1  ;;  %8112 = vmatprep.subr.bf16.mxu1 %v8359_v4 }
 0x12d   : > { %7508 = vmatmul.mubr.f32.vlgmr.msra.gmra.mrb[48].mxu0 %v4668_v37  ;;  %8103 = vmatprep.subr.bf16.mxu0 %v8359_v4 }
 0x12e   : > { %v1080_v1 = vpop.f32.mrb[6].mxu0  ;;  %8105 = vmatpush3.bf16.msra.mxu0 %v8104_v29  ;;  %7533 = vmatprep.mubr.msk.f32.mxu0 %vm8360_vm1, %v8361_v13 }
 0x12f   : > { %v1081_v23 = vadd.f32 %v1080_v1, %v999_v24  ;;  %v6963_v51 = vpop.f32.mrb[7].mxu0  ;;  %8106 = vmatprep.subr.bf16.mxu0 %v8359_v4  ;;  %8114 = vmatpush3.bf16.msra.mxu1 %v8095_v10  ;;  %v9899_v1 = vld [vmem:[%s10175_s7] sm:$0xff] }
 0x130   : > { %7544 = vmatprep.subr.mxu1 %v8361_v13 }
 0x131   : > { %v1177_v59 = vadd.f32 %v1176_v12, %v1081_v23  ;;  %v5131_v23 = vand.u32 4294901760, %v9899_v1 }
 0x132   : > { %8108 = vmatpush3.bf16.msra.mxu0 %v8107_v33  ;;  %v5120_v33 = vld [vmem:[%s10175_s7 + $0x8] sm:$0xff] }
 0x133   : > { %7531 = vmatprep.subr.mxu0 %v8361_v13  ;;  %7545 = vmatpush3.msra.mxu1 %v9778_v9  ;;  %v5134_v51 = vand.u32 4294901760, %v5120_v33 }
 0x134   : > { %8121 = vmatprep.subr.bf16.mxu1 %v8359_v4  ;;  %7547 = vmatmul.mubr.f32.vlgmr.msra.gmra.mrb[50].mxu1 %v4666_v36 }
 0x135   : > { %8123 = vmatpush3.bf16.msra.mxu1 %v8092_v16  ;;  %v1336_v31 = vpop.f32.mrb[8].mxu1  ;;  %7572 = vmatprep.mubr.msk.f32.mxu1 %vm8360_vm1, %v8361_v13 }
 0x136   : > { %7532 = vmatpush3.msra.mxu0 %v9802_v21  ;;  %v7002_v50 = vpop.f32.mrb[9].mxu1  ;;  %8124 = vmatprep.subr.bf16.mxu1 %v8359_v4 }
 0x137   : > { %7534 = vmatmul.mubr.f32.vlgmr.msra.gmra.mrb[50].mxu0 %v9816_v0  ;;  %8115 = vmatprep.subr.bf16.mxu0 %v8359_v4  ;;  %v9906_v50 = vsub.f32 %v9899_v1, %v5131_v23 }
 0x138   : > { %v1258_v56 = vpop.f32.mrb[8].mxu0  ;;  %8117 = vmatpush3.bf16.msra.mxu0 %v8116_v8  ;;  %7559 = vmatprep.mubr.msk.f32.mxu0 %vm8360_vm1, %v8361_v13 }
 0x139   : > { %v1259_v53 = vadd.f32 %v1258_v56, %v1177_v59  ;;  %v6989_v5 = vpop.f32.mrb[9].mxu0  ;;  %8118 = vmatprep.subr.bf16.mxu0 %v8359_v4  ;;  %8126 = vmatpush3.bf16.msra.mxu1 %v8095_v10  ;;  %v9908_v56 = vsub.f32 %v5120_v33, %v5134_v51 }
 0x13a   : > { %7570 = vmatprep.subr.mxu1 %v8361_v13 }
 0x13b   : > { %v1337_v57 = vadd.f32 %v1336_v31, %v1259_v53  ;;  %v5122_v53 = vld [vmem:[%s10175_s7 + $0x18] sm:$0xff] }
 0x13c   : > { %8120 = vmatpush3.bf16.msra.mxu0 %v8119_v41  ;;  %v5121_v41 = vld [vmem:[%s10175_s7 + $0x10] sm:$0xff] }
 0x13d   : > { %7557 = vmatprep.subr.mxu0 %v8361_v13  ;;  %7571 = vmatpush3.msra.mxu1 %v9778_v9 }
 0x13e   : > { %7573 = vmatmul.mubr.f32.vlgmr.msra.gmra.mrb[52].mxu1 %v9804_v45  ;;  %8139 = vmatprep.subr.bf16.mxu1 %v8359_v4 }
 0x13f   : > { %v1498_v52 = vpop.f32.mrb[10].mxu1  ;;  %7610 = vmatprep.mubr.msk.f32.mxu1 %vm8360_vm1, %v8361_v13 }
 0x140   : > { %7558 = vmatpush3.msra.mxu0 %v4705_v61  ;;  %v7028_v60 = vpop.f32.mrb[11].mxu1 }
 0x141   : > { %7560 = vmatmul.mubr.f32.vlgmr.msra.gmra.mrb[52].mxu0 %v9804_v45  ;;  %8127 = vmatprep.subr.bf16.mxu0 %v8359_v4  ;;  %v5137_v60 = vand.u32 4294901760, %v5121_v41 }
 0x142   : > { %v1422_v35 = vpop.f32.mrb[10].mxu0  ;;  %7591 = vmatprep.mubr.msk.f32.mxu0 %vm8360_vm1, %v8361_v13 }
 0x143   : > { %v1423_v34 = vadd.f32 %v1422_v35, %v1337_v57  ;;  %v7015_v54 = vpop.f32.mrb[11].mxu0  ;;  %v5216_v57 = vand.u32 4294901760, %v9906_v50  ;;  %v5140_v35 = vand.u32 4294901760, %v5122_v53 }
 0x145   : > { %v1499_v40 = vadd.f32 %v1498_v52, %v1423_v34  ;;  %v5223_v52 = vand.u32 4294901760, %v9908_v56  ;;  %v5217_v34 = vsub.f32 %v9906_v50, %v5216_v57  ;;  %v9983_v33 = vpack.c.bf16 %v5140_v35, %v5137_v60 }
 0x147   : > { %v5224_v54 = vsub.f32 %v9908_v56, %v5223_v52 }
 0x149   : > { %v1686_v6 = vpop.f32.mrb[12].mxu1 }
 0x14a   : > { %v7054_v11 = vpop.f32.mrb[13].mxu1 }
 0x14b   : > { %v5123_v11 = vld [vmem:[%s10175_s7 + $0x20] sm:$0xff] }
 0x14c   : > { %v1590_v15 = vpop.f32.mrb[12].mxu0 }
 0x14d   : > { %v7041_v39 = vpop.f32.mrb[13].mxu0  ;;  %v1687_v17 = vadd.f32 %v1686_v6, %v1590_v15  ;;  %v9926_v6 = vsub.f32 %v5122_v53, %v5140_v35  ;;  %v5124_v15 = vld [vmem:[%s10175_s7 + $0x28] sm:$0xff] }
 0x153   : > { %v1846_v9 = vpop.f32.mrb[14].mxu1 }
 0x154   : > { %v7080_v28 = vpop.f32.mrb[15].mxu1 }
 0x156   : > { %v1768_v14 = vpop.f32.mrb[14].mxu0 }
 0x157   : > { %v1769_v62 = vadd.f32 %v1768_v14, %v1687_v17  ;;  %v7067_v63 = vpop.f32.mrb[15].mxu0  ;;  %v5218_v17 = vand.u32 4294901760, %v5217_v34 }
 0x158   : > { %v5143_v63 = vand.u32 4294901760, %v5123_v11 }
 0x159   : > { %v1847_v47 = vadd.f32 %v1846_v9, %v1769_v62  ;;  %v5225_v9 = vand.u32 4294901760, %v5224_v54  ;;  %v5237_v62 = vand.u32 4294901760, %v9926_v6 }
 0x15d   : > { %v2008_v48 = vpop.f32.mrb[16].mxu1 }
 0x15e   : > { %v7106_v55 = vpop.f32.mrb[17].mxu1 }
 0x160   : > { %v1932_v58 = vpop.f32.mrb[16].mxu0 }
 0x161   : > { %v1933_v21 = vadd.f32 %v1932_v58, %v1847_v47  ;;  %v7093_v45 = vpop.f32.mrb[17].mxu0  ;;  %v5146_v47 = vand.u32 4294901760, %v5124_v15 }
 0x162   : > { %v9944_v45 = vsub.f32 %v5123_v11, %v5143_v63 }
 0x163   : > { %v2009_v19 = vadd.f32 %v2008_v48, %v1933_v21  ;;  %v9936_v48 = vpack.c.bf16 %v5225_v9, %v5218_v17  ;;  %v5238_v21 = vsub.f32 %v9926_v6, %v5237_v62  ;;  %v9991_v53 = vpack.c.bf16 %v5146_v47, %v5143_v63 }
 0x165   : > { %v2012_v42 = vadd.f32 %v2009_v19, %v1499_v40  ;;  %v9924_v40 = vsub.f32 %v5121_v41, %v5137_v60  ;;  %v9946_v19 = vsub.f32 %v5124_v15, %v5146_v47  ;;  %8141 = vmatpush3.bf16.msra.mxu1 %v9936_v48 }
 0x166   : > { %8142 = vmatprep.subr.bf16.mxu1 %v8359_v4 }
 0x167   : > { %v2202_v44 = vpop.f32.mrb[18].mxu1  ;;  %v5230_v28 = vand.u32 4294901760, %v9924_v40  ;;  %v10008_v9 = vpack.c.bf16 %v9926_v6, %v9924_v40 }
 0x168   : > { %v7132_v22 = vpop.f32.mrb[19].mxu1 }
 0x169   : > { %v5231_v55 = vsub.f32 %v9924_v40, %v5230_v28 }
 0x16a   : > { %v2106_v32 = vpop.f32.mrb[18].mxu0 }
 0x16b   : > { %v7119_v49 = vpop.f32.mrb[19].mxu0  ;;  %v2203_v3 = vadd.f32 %v2202_v44, %v2106_v32  ;;  %v5126_v44 = vld [vmem:[%s10175_s7 + $0x38] sm:$0xff] }
 0x16c   : > { %v5232_v49 = vand.u32 4294901760, %v5231_v55 }
 0x171   : > { %v2362_v27 = vpop.f32.mrb[20].mxu1 }
 0x172   : > { %v7158_v0 = vpop.f32.mrb[21].mxu1 }
 0x173   : > { %v5239_v0 = vand.u32 4294901760, %v5238_v21 }
 0x174   : > { %v2284_v61 = vpop.f32.mrb[20].mxu0 }
 0x175   : > { %v2285_v16 = vadd.f32 %v2284_v61, %v2203_v3  ;;  %v7145_v46 = vpop.f32.mrb[21].mxu0  ;;  %v5244_v61 = vand.u32 4294901760, %v9944_v45 }
 0x177   : > { %v2363_v43 = vadd.f32 %v2362_v27, %v2285_v16  ;;  %v5152_v27 = vand.u32 4294901760, %v5126_v44  ;;  %v5251_v16 = vand.u32 4294901760, %v9946_v19 }
 0x17b   : > { %v2524_v36 = vpop.f32.mrb[22].mxu1 }
 0x17c   : > { %v7184_v7 = vpop.f32.mrb[23].mxu1 }
 0x17d   : > { %v9962_v7 = vpack.c.bf16 %v5239_v0, %v5232_v49 }
 0x17e   : > { %v2448_v26 = vpop.f32.mrb[22].mxu0 }
 0x17f   : > { %v2449_v30 = vadd.f32 %v2448_v26, %v2363_v43  ;;  %v7171_v10 = vpop.f32.mrb[23].mxu0  ;;  %v5245_v26 = vsub.f32 %v9944_v45, %v5244_v61  ;;  %8144 = vmatpush3.bf16.msra.mxu1 %v9962_v7 }
 0x180   : > { %8145 = vmatprep.subr.bf16.mxu1 %v8359_v4 }
 0x181   : > { %v2525_v20 = vadd.f32 %v2524_v36, %v2449_v30  ;;  %v9960_v36 = vsub.f32 %v5126_v44, %v5152_v27  ;;  %v5252_v30 = vsub.f32 %v9946_v19, %v5251_v16 }
 0x183   : > { %v2528_v2 = vadd.f32 %v2525_v20, %v2012_v42  ;;  %v5125_v42 = vld [vmem:[%s10175_s7 + $0x30] sm:$0xff] }
 0x184   : > { %v5149_v3 = vand.u32 4294901760, %v5125_v42 }
 0x185   : > { %v2713_v18 = vpop.f32.mrb[24].mxu1 }
 0x186   : > { %v7210_v25 = vpop.f32.mrb[25].mxu1  ;;  %v9958_v43 = vsub.f32 %v5125_v42, %v5149_v3  ;;  %v9998_v35 = vpack.c.bf16 %v5152_v27, %v5149_v3  ;;  %v10022_v3 = vpack.c.bf16 %v5223_v52, %v5216_v57 }
 0x187   : > { %v5246_v25 = vand.u32 4294901760, %v5245_v26 }
 0x188   : > { %v2617_v24 = vpop.f32.mrb[24].mxu0  ;;  %v5258_v20 = vand.u32 4294901760, %v9958_v43  ;;  %v10016_v44 = vpack.c.bf16 %v9960_v36, %v9958_v43 }
 0x189   : > { %v7197_v37 = vpop.f32.mrb[25].mxu0  ;;  %v2714_v29 = vadd.f32 %v2713_v18, %v2617_v24  ;;  %v5265_v18 = vand.u32 4294901760, %v9960_v36  ;;  %v5253_v24 = vand.u32 4294901760, %v5252_v30  ;;  %v10034_v30 = vpack.c.bf16 %v5251_v16, %v5244_v61 }
 0x18b   : > { %v9980_v1 = vpack.c.bf16 %v5253_v24, %v5246_v25  ;;  %v10038_v52 = vpack.c.bf16 %v5265_v18, %v5258_v20 }
 0x18d   : > { %8147 = vmatpush3.bf16.msra.mxu1 %v9980_v1 }
 0x18e   : > { %8148 = vmatprep.subr.bf16.mxu1 %v8359_v4 }
 0x18f   : > { %v2873_v12 = vpop.f32.mrb[26].mxu1 }
 0x190   : > { %v7236_v38 = vpop.f32.mrb[27].mxu1 }
 0x191   : > { %v5266_v38 = vsub.f32 %v9960_v36, %v5265_v18 }
 0x192   : > { %v2795_v59 = vpop.f32.mrb[26].mxu0 }
 0x193   : > { %v2796_v8 = vadd.f32 %v2795_v59, %v2714_v29  ;;  %v7223_v31 = vpop.f32.mrb[27].mxu0  ;;  %v9974_v29 = vpack.c.bf16 %v5134_v51, %v5131_v23 }
 0x195   : > { %v2874_v5 = vadd.f32 %v2873_v12, %v2796_v8  ;;  %v5259_v12 = vsub.f32 %v9958_v43, %v5258_v20  ;;  %8129 = vmatpush3.bf16.msra.mxu0 %v9974_v29  ;;  %v5267_v8 = vand.u32 4294901760, %v5266_v38 }
 0x196   : > { %8130 = vmatprep.subr.bf16.mxu0 %v8359_v4 }
 0x197   : > { %v5260_v59 = vand.u32 4294901760, %v5259_v12 }
 0x199   : > { %v3035_v39 = vpop.f32.mrb[28].mxu1  ;;  %v9988_v41 = vpack.c.bf16 %v5267_v8, %v5260_v59  ;;  %8132 = vmatpush3.bf16.msra.mxu0 %v9983_v33 }
 0x19a   : > { %v7262_v14 = vpop.f32.mrb[29].mxu1  ;;  %8133 = vmatprep.subr.bf16.mxu0 %v8359_v4 }
 0x19b   : > { %8150 = vmatpush3.bf16.msra.mxu1 %v9988_v41 }
 0x19c   : > { %v2959_v58 = vpop.f32.mrb[28].mxu0  ;;  %8163 = vmatprep.subr.bf16.mxu1 %v8359_v4 }
 0x19d   : > { %v2960_v22 = vadd.f32 %v2959_v58, %v2874_v5  ;;  %v7249_v32 = vpop.f32.mrb[29].mxu0  ;;  %8135 = vmatpush3.bf16.msra.mxu0 %v9991_v53  ;;  %v10012_v58 = vpack.c.bf16 %v9946_v19, %v9944_v45 }
 0x19e   : > { %8136 = vmatprep.subr.bf16.mxu0 %v8359_v4 }
 0x19f   : > { %v3036_v46 = vadd.f32 %v3035_v39, %v2960_v22  ;;  %v10004_v39 = vpack.c.bf16 %v9908_v56, %v9906_v50 }
 0x1a1   : > { %v3039_v10 = vadd.f32 %v3036_v46, %v2528_v2  ;;  %8138 = vmatpush3.bf16.msra.mxu0 %v9998_v35  ;;  %v10028_v46 = vpack.c.bf16 %v5237_v62, %v5230_v28 }
 0x1a2   : > { %8151 = vmatprep.subr.bf16.mxu0 %v8359_v4 }
 0x1a3   : > { %v3223_v37 = vpop.f32.mrb[30].mxu1 }
 0x1a4   : > { %v7288_v2 = vpop.f32.mrb[31].mxu1 }
 0x1a6   : > { %v3127_v31 = vpop.f32.mrb[30].mxu0 }
 0x1a7   : > { %v7275_v23 = vpop.f32.mrb[31].mxu0  ;;  %v3224_v51 = vadd.f32 %v3223_v37, %v3127_v31 }
 0x1ad   : > { %v3383_v5 = vpop.f32.mrb[32].mxu1 }
 0x1ae   : > { %v7314_v60 = vpop.f32.mrb[33].mxu1 }
 0x1b0   : > { %v3305_v34 = vpop.f32.mrb[32].mxu0 }
 0x1b1   : > { %v3306_v54 = vadd.f32 %v3305_v34, %v3224_v51  ;;  %v7301_v11 = vpop.f32.mrb[33].mxu0 }
 0x1b3   : > { %v3384_v15 = vadd.f32 %v3383_v5, %v3306_v54 }
 0x1b7   : > { %v3545_v17 = vpop.f32.mrb[34].mxu1 }
 0x1b8   : > { %v7340_v14 = vpop.f32.mrb[35].mxu1 }
 0x1ba   : > { %v3469_v63 = vpop.f32.mrb[34].mxu0 }
 0x1bb   : > { %v3470_v47 = vadd.f32 %v3469_v63, %v3384_v15  ;;  %v7327_v55 = vpop.f32.mrb[35].mxu0 }
 0x1bd   : > { %v3546_v21 = vadd.f32 %v3545_v17, %v3470_v47 }
 0x1bf   : > { %v3549_v42 = vadd.f32 %v3546_v21, %v3039_v10 }
 0x1c1   : > { %v3745_v22 = vpop.f32.mrb[36].mxu1 }
 0x1c2   : > { %v7366_v32 = vpop.f32.mrb[37].mxu1 }
 0x1c4   : > { %v3649_v49 = vpop.f32.mrb[36].mxu0 }
 0x1c5   : > { %v7353_v27 = vpop.f32.mrb[37].mxu0  ;;  %v3746_v0 = vadd.f32 %v3745_v22, %v3649_v49 }
 0x1cb   : > { %v3905_v26 = vpop.f32.mrb[38].mxu1 }
 0x1cc   : > { %v7392_v36 = vpop.f32.mrb[39].mxu1 }
 0x1ce   : > { %v3827_v50 = vpop.f32.mrb[38].mxu0 }
 0x1cf   : > { %v3828_v56 = vadd.f32 %v3827_v50, %v3746_v0  ;;  %v7379_v57 = vpop.f32.mrb[39].mxu0  ;;  %v6438_v50 = vld [vmem:[%s10174_s6] ss:$0 sm:$0xff] }
 0x1d1   : > { %v3906_v40 = vadd.f32 %v3905_v26, %v3828_v56 }
 0x1d5   : > { %v4067_v10 = vpop.f32.mrb[40].mxu1 }
 0x1d6   : > { %v7418_v6 = vpop.f32.mrb[41].mxu1 }
 0x1d8   : > { %v3991_v28 = vpop.f32.mrb[40].mxu0 }
 0x1d9   : > { %v3992_v62 = vadd.f32 %v3991_v28, %v3906_v40  ;;  %v7405_v25 = vpop.f32.mrb[41].mxu0 }
 0x1db   : > { %v4068_v24 = vadd.f32 %v4067_v10, %v3992_v62 }
 0x1dd   : > { %v4071_v37 = vadd.f32 %v4068_v24, %v3549_v42 }
 0x1df   : > { %v4256_v45 = vpop.f32.mrb[42].mxu1 }
 0x1e0   : > { %v7444_v12 = vpop.f32.mrb[43].mxu1 }
 0x1e2   : > { %v4160_v19 = vpop.f32.mrb[42].mxu0 }
 0x1e3   : > { %v7431_v61 = vpop.f32.mrb[43].mxu0  ;;  %v4257_v16 = vadd.f32 %v4256_v45, %v4160_v19 }
 0x1e9   : > { %v4416_v38 = vpop.f32.mrb[44].mxu1 }
 0x1ea   : > { %v7470_v2 = vpop.f32.mrb[45].mxu1 }
 0x1ec   : > { %v4338_v59 = vpop.f32.mrb[44].mxu0 }
 0x1ed   : > { %v4339_v8 = vadd.f32 %v4338_v59, %v4257_v16  ;;  %v7457_v43 = vpop.f32.mrb[45].mxu0 }
 0x1ef   : > { %v4417_v20 = vadd.f32 %v4416_v38, %v4339_v8 }
 0x1f3   : > { %v4578_v18 = vpop.f32.mrb[46].mxu1 }
 0x1f4   : > { %v7496_v31 = vpop.f32.mrb[47].mxu1 }
 0x1f6   : > { %v4502_v23 = vpop.f32.mrb[46].mxu0 }
 0x1f7   : > { %v4503_v51 = vadd.f32 %v4502_v23, %v4417_v20  ;;  %v7483_v5 = vpop.f32.mrb[47].mxu0 }
 0x1f9   : > { %v4579_v60 = vadd.f32 %v4578_v18, %v4503_v51 }
 0x1fb   : > { %v4582_v34 = vadd.f32 %v4579_v60, %v4071_v37 }
 0x1fd   : > { %v4766_v54 = vpop.f32.mrb[48].mxu1 }
 0x1fe   : > { %v7522_v11 = vpop.f32.mrb[49].mxu1 }
 0x200   : > { %v4670_v15 = vpop.f32.mrb[48].mxu0 }
 0x201   : > { %v7509_v17 = vpop.f32.mrb[49].mxu0  ;;  %v4767_v14 = vadd.f32 %v4766_v54, %v4670_v15 }
 0x207   : > { %v4926_v63 = vpop.f32.mrb[50].mxu1 }
 0x208   : > { %v7548_v47 = vpop.f32.mrb[51].mxu1 }
 0x20a   : > { %v4848_v55 = vpop.f32.mrb[50].mxu0 }
 0x20b   : > { %v4849_v21 = vadd.f32 %v4848_v55, %v4767_v14  ;;  %v7535_v42 = vpop.f32.mrb[51].mxu0 }
 0x20d   : > { %v4927_v22 = vadd.f32 %v4926_v63, %v4849_v21 }
 0x211   : > { %v5088_v32 = vpop.f32.mrb[52].mxu1 }
 0x212   : > { %v7574_v49 = vpop.f32.mrb[53].mxu1 }
 0x214   : > { %v5012_v27 = vpop.f32.mrb[52].mxu0 }
 0x215   : > { %v5013_v0 = vadd.f32 %v5012_v27, %v4927_v22  ;;  %v7561_v26 = vpop.f32.mrb[53].mxu0 }
 0x217   : > { %v5089_v36 = vadd.f32 %v5088_v32, %v5013_v0 }
 0x219   : > { %v5092_v56 = vadd.f32 %v5089_v36, %v4582_v34 }
 0x21b   : > { %v5100_v57 = vadd.f32 %v6438_v50, %v5092_v56  ;;  %v5670_v56 = vld [vmem:[%s8457_s18 + $0x1] sm:$0x1] }
 0x21d   : > { %5102 = vst.msk [vmem:[%s8475_s15] sm:$0xff] %vm5101_vm5, %v5100_v57  ;;  %v5103_v40 = vsel %vm5101_vm5, %v5100_v57, 0.0  ;;  %v5110_v61 = vmul.f32 %v5100_v57, %v5100_v57 }
 0x21e   : > { %v5104_v10 = vrot.slane %v5103_v40, 4 }
 0x21f   : > { %v5111_v2 = vsel %vm5101_vm5, %v5110_v61, 0.0 }
 0x220   : > { %v5105_v6 = vadd.f32 %v5104_v10, %v5103_v40  ;;  %v5112_v59 = vrot.slane %v5111_v2, 4 }
 0x222   : > { %v5106_v28 = vrot.slane %v5105_v6, 2  ;;  %v5113_v8 = vadd.f32 %v5112_v59, %v5111_v2 }
 0x224   : > { %v5107_v62 = vadd.f32 %v5106_v28, %v5105_v6  ;;  %v5114_v43 = vrot.slane %v5113_v8, 2 }
 0x226   : > { %v5108_v25 = vrot.slane %v5107_v62, 1  ;;  %v5115_v20 = vadd.f32 %v5114_v43, %v5113_v8 }
 0x228   : > { %v5109_v24 = vadd.f32 %v5108_v25, %v5107_v62  ;;  %v5116_v18 = vrot.slane %v5115_v20, 1 }
 0x22a   : > { %v5128_v37 = vsel %vm5101_vm5, %v5109_v24, 0  ;;  %v5117_v31 = vadd.f32 %v5116_v18, %v5115_v20 }
 0x22b   : > { %v5203_v45 = vand.u32 4294901760, %v5128_v37 }
 0x22c   : > { %v5680_v23 = vsel %vm5101_vm5, %v5117_v31, 0 }
 0x22d   : > { %v5204_v12 = vsub.f32 %v5128_v37, %v5203_v45  ;;  %7611 = vmatmul.mubr.f32.vlgmr.msra.gmra.mrb[54].mxu1 %v5203_v45  ;;  %v5755_v51 = vand.u32 4294901760, %v5680_v23 }
 0x22e   : > { %8165 = vmatpush3.bf16.msra.mxu1 %v9974_v29  ;;  %7648 = vmatprep.mubr.msk.f32.mxu1 %vm8360_vm1, %v8361_v13 }
 0x22f   : > { %8166 = vmatprep.subr.bf16.mxu1 %v8359_v4  ;;  %v5205_v19 = vand.u32 4294901760, %v5204_v12 }
 0x231   : > { %v5206_v16 = vsub.f32 %v5204_v12, %v5205_v19 }
 0x232   : > { %8168 = vmatpush3.bf16.msra.mxu1 %v9983_v33 }
 0x233   : > { %8169 = vmatprep.subr.bf16.mxu1 %v8359_v4  ;;  %v5207_v38 = vand.u32 4294901760, %v5206_v16 }
 0x235   : > { %7592 = vmatmul.mubr.f32.vlgmr.msra.gmra.mrb[54].mxu0 %v5207_v38 }
 0x236   : > { %8153 = vmatpush3.bf16.msra.mxu0 %v10004_v39  ;;  %8171 = vmatpush3.bf16.msra.mxu1 %v9991_v53 }
 0x237   : > { %8154 = vmatprep.subr.bf16.mxu0 %v8359_v4  ;;  %8172 = vmatprep.subr.bf16.mxu1 %v8359_v4 }
 0x238   : > { %7629 = vmatprep.mubr.msk.f32.mxu0 %vm8360_vm1, %v8361_v13 }
 0x23a   : > { %8156 = vmatpush3.bf16.msra.mxu0 %v10008_v9  ;;  %8174 = vmatpush3.bf16.msra.mxu1 %v9998_v35 }
 0x23b   : > { %8157 = vmatprep.subr.bf16.mxu0 %v8359_v4  ;;  %8187 = vmatprep.subr.bf16.mxu1 %v8359_v4 }
 0x23d   : > { %7649 = vmatmul.mubr.f32.vlgmr.msra.gmra.mrb[56].mxu1 %v5205_v19 }
 0x23e   : > { %8159 = vmatpush3.bf16.msra.mxu0 %v10012_v58  ;;  %8189 = vmatpush3.bf16.msra.mxu1 %v9974_v29 }
 0x23f   : > { %8160 = vmatprep.subr.bf16.mxu0 %v8359_v4  ;;  %8190 = vmatprep.subr.bf16.mxu1 %v8359_v4 }
 0x240   : > { %7686 = vmatprep.mubr.msk.f32.mxu1 %vm8360_vm1, %v8361_v13 }
 0x242   : > { %8162 = vmatpush3.bf16.msra.mxu0 %v10016_v44  ;;  %8192 = vmatpush3.bf16.msra.mxu1 %v9983_v33 }
 0x243   : > { %8175 = vmatprep.subr.bf16.mxu0 %v8359_v4  ;;  %8193 = vmatprep.subr.bf16.mxu1 %v8359_v4 }
 0x245   : > { %7630 = vmatmul.mubr.f32.vlgmr.msra.gmra.mrb[56].mxu0 %v5204_v12 }
 0x246   : > { %8177 = vmatpush3.bf16.msra.mxu0 %v10022_v3  ;;  %8195 = vmatpush3.bf16.msra.mxu1 %v9991_v53 }
 0x247   : > { %8178 = vmatprep.subr.bf16.mxu0 %v8359_v4  ;;  %8196 = vmatprep.subr.bf16.mxu1 %v8359_v4 }
 0x248   : > { %7667 = vmatprep.mubr.msk.f32.mxu0 %vm8360_vm1, %v8361_v13 }
 0x24a   : > { %8180 = vmatpush3.bf16.msra.mxu0 %v10028_v46  ;;  %8198 = vmatpush3.bf16.msra.mxu1 %v9998_v35 }
 0x24b   : > { %8181 = vmatprep.subr.bf16.mxu0 %v8359_v4  ;;  %8211 = vmatprep.subr.bf16.mxu1 %v8359_v4 }
 0x24d   : > { %7687 = vmatmul.mubr.f32.vlgmr.msra.gmra.mrb[58].mxu1 %v5203_v45 }
 0x24e   : > { %8183 = vmatpush3.bf16.msra.mxu0 %v10034_v30  ;;  %8213 = vmatpush3.bf16.msra.mxu1 %v9936_v48  ;;  %v5756_v48 = vsub.f32 %v5680_v23, %v5755_v51 }
 0x24f   : > { %8184 = vmatprep.subr.bf16.mxu0 %v8359_v4  ;;  %8214 = vmatprep.subr.bf16.mxu1 %v8359_v4 }
 0x250   : > { %7724 = vmatprep.mubr.msk.f32.mxu1 %vm8360_vm1, %v8361_v13 }
 0x252   : > { %8186 = vmatpush3.bf16.msra.mxu0 %v10038_v52  ;;  %8216 = vmatpush3.bf16.msra.mxu1 %v9962_v7  ;;  %v5757_v7 = vand.u32 4294901760, %v5756_v48 }
 0x253   : > { %8199 = vmatprep.subr.bf16.mxu0 %v8359_v4  ;;  %8217 = vmatprep.subr.bf16.mxu1 %v8359_v4 }
 0x255   : > { %7668 = vmatmul.mubr.f32.vlgmr.msra.gmra.mrb[58].mxu0 %v5203_v45 }
 0x256   : > { %8201 = vmatpush3.bf16.msra.mxu0 %v9974_v29  ;;  %8219 = vmatpush3.bf16.msra.mxu1 %v9980_v1  ;;  %v5758_v1 = vsub.f32 %v5756_v48, %v5757_v7 }
 0x257   : > { %8202 = vmatprep.subr.bf16.mxu0 %v8359_v4  ;;  %8220 = vmatprep.subr.bf16.mxu1 %v8359_v4 }
 0x258   : > { %7705 = vmatprep.mubr.msk.f32.mxu0 %vm8360_vm1, %v8361_v13 }
 0x25a   : > { %8204 = vmatpush3.bf16.msra.mxu0 %v9983_v33  ;;  %8222 = vmatpush3.bf16.msra.mxu1 %v9988_v41  ;;  %v5759_v41 = vand.u32 4294901760, %v5758_v1 }
 0x25b   : > { %8205 = vmatprep.subr.bf16.mxu0 %v8359_v4  ;;  %8235 = vmatprep.subr.bf16.mxu1 %v8359_v4 }
 0x25d   : > { %7725 = vmatmul.mubr.f32.vlgmr.msra.gmra.mrb[60].mxu1 %v5755_v51 }
 0x25e   : > { %8207 = vmatpush3.bf16.msra.mxu0 %v9991_v53  ;;  %8237 = vmatpush3.bf16.msra.mxu1 %v9974_v29 }
 0x25f   : > { %8208 = vmatprep.subr.bf16.mxu0 %v8359_v4  ;;  %8238 = vmatprep.subr.bf16.mxu1 %v8359_v4 }
 0x260   : > { %7762 = vmatprep.mubr.msk.f32.mxu1 %vm8360_vm1, %v8361_v13 }
 0x262   : > { %8210 = vmatpush3.bf16.msra.mxu0 %v9998_v35  ;;  %8240 = vmatpush3.bf16.msra.mxu1 %v9983_v33 }
 0x263   : > { %8223 = vmatprep.subr.bf16.mxu0 %v8359_v4  ;;  %8241 = vmatprep.subr.bf16.mxu1 %v8359_v4 }
 0x265   : > { %7706 = vmatmul.mubr.f32.vlgmr.msra.gmra.mrb[60].mxu0 %v5759_v41 }
 0x266   : > { %8225 = vmatpush3.bf16.msra.mxu0 %v10004_v39  ;;  %8243 = vmatpush3.bf16.msra.mxu1 %v9991_v53 }
 0x267   : > { %8226 = vmatprep.subr.bf16.mxu0 %v8359_v4  ;;  %8244 = vmatprep.subr.bf16.mxu1 %v8359_v4 }
 0x268   : > { %7743 = vmatprep.mubr.msk.f32.mxu0 %vm8360_vm1, %v8361_v13 }
 0x26a   : > { %8228 = vmatpush3.bf16.msra.mxu0 %v10008_v9  ;;  %8246 = vmatpush3.bf16.msra.mxu1 %v9998_v35 }
 0x26b   : > { %8229 = vmatprep.subr.bf16.mxu0 %v8359_v4  ;;  %8259 = vmatprep.subr.bf16.mxu1 %v8359_v4 }
 0x26d   : > { %7763 = vmatmul.mubr.f32.vlgmr.msra.gmra.mrb[62].mxu1 %v5757_v7 }
 0x26e   : > { %8231 = vmatpush3.bf16.msra.mxu0 %v10012_v58  ;;  %8261 = vmatpush3.bf16.msra.mxu1 %v9974_v29 }
 0x26f   : > { %8232 = vmatprep.subr.bf16.mxu0 %v8359_v4  ;;  %8262 = vmatprep.subr.bf16.mxu1 %v8359_v4 }
 0x270   : > { %7800 = vmatprep.mubr.msk.f32.mxu1 %vm8360_vm1, %v8361_v13 }
 0x272   : > { %8234 = vmatpush3.bf16.msra.mxu0 %v10016_v44  ;;  %8264 = vmatpush3.bf16.msra.mxu1 %v9983_v33 }
 0x273   : > { %8247 = vmatprep.subr.bf16.mxu0 %v8359_v4  ;;  %8265 = vmatprep.subr.bf16.mxu1 %v8359_v4 }
 0x275   : > { %7744 = vmatmul.mubr.f32.vlgmr.msra.gmra.mrb[62].mxu0 %v5756_v48 }
 0x276   : > { %8249 = vmatpush3.bf16.msra.mxu0 %v10022_v3  ;;  %8267 = vmatpush3.bf16.msra.mxu1 %v9991_v53 }
 0x277   : > { %8250 = vmatprep.subr.bf16.mxu0 %v8359_v4  ;;  %8268 = vmatprep.subr.bf16.mxu1 %v8359_v4 }
 0x278   : > { %7781 = vmatprep.mubr.msk.f32.mxu0 %vm8360_vm1, %v8361_v13 }
 0x27a   : > { %8252 = vmatpush3.bf16.msra.mxu0 %v10028_v46  ;;  %8270 = vmatpush3.bf16.msra.mxu1 %v9998_v35 }
 0x27b   : > { %8253 = vmatprep.subr.bf16.mxu0 %v8359_v4 }
 0x27d   : > { %7801 = vmatmul.mubr.f32.vlgmr.msra.gmra.mrb[64].mxu1 %v5755_v51 }
 0x27e   : > { %8255 = vmatpush3.bf16.msra.mxu0 %v10034_v30 }
 0x27f   : > { %8256 = vmatprep.subr.bf16.mxu0 %v8359_v4 }
 0x282   : > { %8258 = vmatpush3.bf16.msra.mxu0 %v10038_v52  ;;  %v5118_v52 = vld [vmem:[%s8457_s18] sm:$0x1] }
 0x285   : > { %7782 = vmatmul.mubr.f32.vlgmr.msra.gmra.mrb[64].mxu0 %v5755_v51 }
 0x300   : > { %v5320_v29 = vpop.f32.mrb[54].mxu1 }
 0x301   : > { %v7612_v33 = vpop.f32.mrb[55].mxu1 }
 0x308   : > { %v5209_v53 = vpop.f32.mrb[54].mxu0 }
 0x309   : > { %v5321_v39 = vadd.f32 %v5320_v29, %v5209_v53  ;;  %v7593_v13 = vpop.f32.mrb[55].mxu0 }
 0x310   : > { %v5489_v9 = vpop.f32.mrb[56].mxu1 }
 0x311   : > { %v7650_v58 = vpop.f32.mrb[57].mxu1 }
 0x318   : > { %v5408_v35 = vpop.f32.mrb[56].mxu0 }
 0x319   : > { %v5409_v44 = vadd.f32 %v5408_v35, %v5321_v39  ;;  %v7631_v3 = vpop.f32.mrb[57].mxu0 }
 0x31b   : > { %v5490_v46 = vadd.f32 %v5489_v9, %v5409_v44 }
 0x320   : > { %v5663_v5 = vpop.f32.mrb[58].mxu1 }
 0x321   : > { %v7688_v30 = vpop.f32.mrb[59].mxu1 }
 0x328   : > { %v5584_v60 = vpop.f32.mrb[58].mxu0 }
 0x329   : > { %v5585_v4 = vadd.f32 %v5584_v60, %v5490_v46  ;;  %v7669_v34 = vpop.f32.mrb[59].mxu0 }
 0x32b   : > { %v5664_v54 = vadd.f32 %v5663_v5, %v5585_v4 }
 0x32d   : > { %v5667_v11 = vadd.f32 %v5664_v54, %v5118_v52 }
 0x32f   : > { %5669 = vst.msk [vmem:[%s8457_s18] sm:$0x1] %vm5668_vm6, %v5667_v11 }
 0x330   : > { %v5872_v15 = vpop.f32.mrb[60].mxu1 }
 0x331   : > { %v7726_v17 = vpop.f32.mrb[61].mxu1 }
 0x338   : > { %v5761_v14 = vpop.f32.mrb[60].mxu0 }
 0x339   : > { %v5873_v63 = vadd.f32 %v5872_v15, %v5761_v14  ;;  %v7707_v47 = vpop.f32.mrb[61].mxu0 }
 0x340   : > { %v6041_v55 = vpop.f32.mrb[62].mxu1 }
 0x341   : > { %v7764_v21 = vpop.f32.mrb[63].mxu1 }
 0x348   : > { %v5960_v42 = vpop.f32.mrb[62].mxu0 }
 0x349   : > { %v5961_v22 = vadd.f32 %v5960_v42, %v5873_v63  ;;  %v7745_v32 = vpop.f32.mrb[63].mxu0 }
 0x34b   : > { %v6042_v49 = vadd.f32 %v6041_v55, %v5961_v22 }
 0x350   : > { %v6215_v27 = vpop.f32.mrb[64].mxu1 }
 0x351   : > { %v7802_v0 = vpop.f32.mrb[65].mxu1 }
 0x358   : > { %v6136_v26 = vpop.f32.mrb[64].mxu0 }
 0x359   : > { %v6137_v36 = vadd.f32 %v6136_v26, %v6042_v49  ;;  %v7783_v50 = vpop.f32.mrb[65].mxu0 }
 0x35b   : > { %v6216_v57 = vadd.f32 %v6215_v27, %v6137_v36 }
 0x35d   : > { %v6219_v40 = vadd.f32 %v6216_v57, %v5670_v56 }
 0x35f   : > { %6220 = vst.msk [vmem:[%s8457_s18 + $0x1] sm:$0x1] %vm5668_vm6, %v6219_v40 }
 0x360 PF: > { %s10188_s15 = sld [smem:[#allocation4_spill]]  ;;  %s10189_s30 = sld [smem:[#allocation2_spill]] }
 0x361   : > { %s10190_s10 = sld [smem:[#allocation3_spill]]  ;;  %s10191_s11 = sld [smem:[#allocation5_spill]] }
 0x362   : > { %s10192_s12 = sld [smem:[#allocation6_spill]] }
 0x366   : > { %s20_s13 = sadd.s32 1, %s10188_s15  }
 0x367   : > { %p17_p13 = scmp.ge.s32.totalorder %s20_s13, 18  }
 0x369   :  { %19 = sbr.rel (!%p17_p13) target bundleno = 3 (0x3), region = 112 }

</bundles_post_ra>
